<compile_context>
chip_gen: v7x
topology: tpu7x:2x2x1
jax: 0.10.0
libtpu: 0.0.40
codegen_flags: <defaults>
</compile_context>

<pallas_src>
import functools

import jax
import jax.numpy as jnp
from jax import lax
from jax.experimental import pallas as pl
from jax.experimental.pallas import tpu as pltpu


def _round_up(n, m):
    return ((n + m - 1) // m) * m


# ----------------------------------------------------------------------------
# Generic fused linear kernel (LSTM input projection + fused 4-head MLP)
# ----------------------------------------------------------------------------

def _linear_kernel(x_ref, w_ref, b_ref, o_ref, *, negative_slope):
    y = jnp.dot(x_ref[...], w_ref[...], preferred_element_type=jnp.float32) + b_ref[...]
    if negative_slope is not None:
        y = jnp.where(y > 0, y, negative_slope * y)
    o_ref[...] = y.astype(o_ref.dtype)


def linear(x, w, b, *, negative_slope=None, out_dtype=jnp.float32, block_rows=512):
    """y = x @ w + b (optionally LeakyReLU).  x:(N,Din) bf16, w:(Din,Dout) bf16, b:(1,Dout) f32."""
    N, Din = x.shape
    Dout = w.shape[1]
    tm = N if N <= block_rows else block_rows
    grid = (pl.cdiv(N, tm),)
    cost = pl.CostEstimate(
        flops=2 * N * Din * Dout,
        transcendentals=0,
        bytes_accessed=(N * Din * x.dtype.itemsize + Din * Dout * w.dtype.itemsize
                        + N * Dout * jnp.dtype(out_dtype).itemsize + Dout * 4),
    )
    return pl.pallas_call(
        functools.partial(_linear_kernel, negative_slope=negative_slope),
        out_shape=jax.ShapeDtypeStruct((N, Dout), out_dtype),
        grid=grid,
        in_specs=[
            pl.BlockSpec((tm, Din), lambda i: (i, 0)),
            pl.BlockSpec((Din, Dout), lambda i: (0, 0)),
            pl.BlockSpec((1, Dout), lambda i: (0, 0)),
        ],
        out_specs=pl.BlockSpec((tm, Dout), lambda i: (i, 0)),
        compiler_params=pltpu.CompilerParams(dimension_semantics=("parallel",)),
        cost_estimate=cost,
    )(x, w, b)


# ----------------------------------------------------------------------------
# BiLSTM: both directions interleaved in ONE kernel, time loop bounded by max length
# ----------------------------------------------------------------------------

def _bilstm_scan_kernel(nsteps_ref, xwf_ref, xwb_ref, m_ref, whf_ref, whb_ref, o_ref,
                        hf_sc, cf_sc, hb_sc, cb_sc):
    """Full bidirectional LSTM recurrence.

    nsteps_ref: SMEM (1,) int32   max real (non-pad) length in the batch (loop bound)
    xwf_ref:    (T, B, 4Hp) bf16  forward  x_t @ W_ih + bias, gate order [i|f|o|g]
    xwb_ref:    (T, B, 4Hp) bf16  backward x_t @ W_ih + bias
    m_ref:      (T, B, 1)  f32    1.0 = real token, 0.0 = pad
    whf_ref / whb_ref: (Hp, 4Hp) bf16   hidden->hidden weights per direction
    o_ref:      (T, B, 2Hp) bf16  [h_fwd | h_bwd]; zeros at padded steps
    *_sc:       (B, Hp) f32       recurrent state in VMEM
    """
    Hp = hf_sc.shape[1]
    n = nsteps_ref[0]

    # pad_packed_sequence zero-fills padded steps; rows >= n are never touched by the loop.
    o_ref[...] = jnp.zeros_like(o_ref)
    hf_sc[...] = jnp.zeros_like(hf_sc)
    cf_sc[...] = jnp.zeros_like(cf_sc)
    hb_sc[...] = jnp.zeros_like(hb_sc)
    cb_sc[...] = jnp.zeros_like(cb_sc)

    def gate_math(xw_t, h_prev, c_prev, wh_ref):
        # one fused-gate matmul per direction per step (bf16 -> f32 accumulate)
        g = xw_t.astype(jnp.float32) + jnp.dot(
            h_prev.astype(jnp.bfloat16), wh_ref[...], preferred_element_type=jnp.float32)
        act = jax.nn.sigmoid(g[:, :3 * Hp])            # one EUP pass over contiguous [i|f|o]
        g_g = jnp.tanh(g[:, 3 * Hp:])
        i_g = act[:, :Hp]
        f_g = act[:, Hp:2 * Hp]
        o_g = act[:, 2 * Hp:]
        c_new = f_g * c_prev + i_g * g_g
        h_new = o_g * jnp.tanh(c_new)
        return h_new, c_new

    def step(i, carry):
        tf = i
        tb = n - 1 - i
        # forward direction
        hf_prev = hf_sc[...]
        cf_prev = cf_sc[...]
        h_f, c_f = gate_math(xwf_ref[tf], hf_prev, cf_prev, whf_ref)
        kf = m_ref[tf] > 0.5                                   # (B, 1)
        hf_sc[...] = jnp.where(kf, h_f, hf_prev)               # packed semantics: pads freeze
        cf_sc[...] = jnp.where(kf, c_f, cf_prev)
        o_ref[tf, :, pl.ds(0, Hp)] = jnp.where(kf, h_f, 0.0).astype(o_ref.dtype)
        # backward direction (independent chain, interleaves on the same TensorCore)
        hb_prev = hb_sc[...]
        cb_prev = cb_sc[...]
        h_b, c_b = gate_math(xwb_ref[tb], hb_prev, cb_prev, whb_ref)
        kb = m_ref[tb] > 0.5
        hb_sc[...] = jnp.where(kb, h_b, hb_prev)
        cb_sc[...] = jnp.where(kb, c_b, cb_prev)
        o_ref[tb, :, pl.ds(Hp, Hp)] = jnp.where(kb, h_b, 0.0).astype(o_ref.dtype)
        return carry

    lax.fori_loop(0, n, step, 0)


def _bilstm_layer(layer, x_flat, m_tb1, nsteps):
    """One bidirectional LSTM layer.  x_flat: (T*B, Din) bf16 time-major -> (T*B, 2Hp) bf16."""
    T, B, _ = m_tb1.shape
    G = layer["wh_f"].shape[1]                     # 4*Hp
    Hp = G // 4

    # Fused input projection for both directions (one wide MXU matmul), kept bf16.
    xw = linear(x_flat, layer["wx"], layer["b"], out_dtype=jnp.bfloat16)   # (T*B, 8Hp)
    xw3 = xw.reshape(T, B, 2 * G)                   # free reshape, no data movement

    # TODO(synk): for very large T*B (v7x 64 MiB VMEM) chunk the time axis of xw instead of
    # holding the whole projection resident in VMEM.
    h3 = pl.pallas_call(
        _bilstm_scan_kernel,
        out_shape=jax.ShapeDtypeStruct((T, B, 2 * Hp), jnp.bfloat16),
        grid_spec=pltpu.PrefetchScalarGridSpec(
            num_scalar_prefetch=1,
            grid=(1,),
            in_specs=[
                # same xw array passed twice: each spec reads one direction's column half,
                # so the wrapper never permutes and total HBM read is still exactly one pass.
                pl.BlockSpec((T, B, G), lambda i, n: (0, 0, 0)),
                pl.BlockSpec((T, B, G), lambda i, n: (0, 0, 1)),
                pl.BlockSpec((T, B, 1), lambda i, n: (0, 0, 0)),
                pl.BlockSpec((Hp, G), lambda i, n: (0, 0)),
                pl.BlockSpec((Hp, G), lambda i, n: (0, 0)),
            ],
            out_specs=pl.BlockSpec((T, B, 2 * Hp), lambda i, n: (0, 0, 0)),
            scratch_shapes=[pltpu.VMEM((B, Hp), jnp.float32)] * 4,
        ),
        compiler_params=pltpu.CompilerParams(
            dimension_semantics=("arbitrary",),
            vmem_limit_bytes=64 * 1024 * 1024,
        ),
    )(nsteps, xw3, xw3, m_tb1, layer["wh_f"], layer["wh_b"])

    return h3.reshape(T * B, 2 * Hp)


# ----------------------------------------------------------------------------
# Biaffine attention kernels
# ----------------------------------------------------------------------------

def _arc_biaffine_kernel(x_ref, w_ref, yt_ref, m_ref, o_ref):
    """s[i, j] = x[i] @ W @ y[j]; padded head positions j get -inf (fused mask).

    x: (T, Dx) bf16, w: (Dx, Dy) bf16, yt: (Dy, T) bf16 (pre-transposed), m: (1, T) f32.
    """
    xw = jnp.dot(x_ref[...], w_ref[...], preferred_element_type=jnp.float32)        # (T, Dy)
    s = jnp.dot(xw.astype(jnp.bfloat16), yt_ref[...], preferred_element_type=jnp.float32)
    o_ref[...] = jnp.where(m_ref[...] > 0.5, s, -jnp.inf)


def arc_biaffine(x2, w, yt, mask, T):
    """x2: (B*T, Dx) dependent (bias baked in), w: (Dx, Dy), yt: (B, Dy, T), mask: (B, T)."""
    B = yt.shape[0]
    Dx = x2.shape[1]
    Dy = yt.shape[1]
    m = mask.astype(jnp.float32)[:, None, :]                   # (B, 1, T)
    cost = pl.CostEstimate(
        flops=2 * B * T * Dy * (Dx + T), transcendentals=0,
        bytes_accessed=B * T * (Dx + Dy) * 2 + Dx * Dy * 2 + B * T * T * 4)
    return pl.pallas_call(
        _arc_biaffine_kernel,
        out_shape=jax.ShapeDtypeStruct((B, T, T), jnp.float32),
        grid=(B,),
        in_specs=[
            pl.BlockSpec((T, Dx), lambda b: (b, 0)),
            pl.BlockSpec((Dx, Dy), lambda b: (0, 0)),
            pl.BlockSpec((None, Dy, T), lambda b: (b, 0, 0)),
            pl.BlockSpec((None, 1, T), lambda b: (b, 0, 0)),
        ],
        out_specs=pl.BlockSpec((None, T, T), lambda b: (b, 0, 0)),
        compiler_params=pltpu.CompilerParams(dimension_semantics=("parallel",)),
        cost_estimate=cost,
    )(x2, w, yt, m)


def _rel_biaffine_kernel(x_ref, w_ref, yt_ref, o_ref, *, n_rels):
    """s[r, i, j] = x[i] @ W[r] @ y[j] for all relations at once.

    Stage 1: ONE (T, Dx) @ (Dx, R*Dy) matmul (good MXU fill, no broadcast materialisation).
    Stage 2: per relation, a 128-aligned column slice against the pre-transposed y.
    """
    Dy = yt_ref.shape[0]
    xw = jnp.dot(x_ref[...], w_ref[...], preferred_element_type=jnp.float32)   # (T, R*Dy)
    xw = xw.astype(jnp.bfloat16)
    yt = yt_ref[...]                                                            # (Dy, T)
    for r in range(n_rels):
        s_r = jnp.dot(xw[:, r * Dy:(r + 1) * Dy], yt, preferred_element_type=jnp.float32)
        o_ref[r, :, :] = s_r                                                    # (T, T)


def rel_biaffine(x2, w_flat, yt, n_rels, T):
    """x2: (B*T, Dx) dependent, w_flat: (Dx, R*Dy), yt: (B, Dy, T)  ->  (B, R, T, T)."""
    B = yt.shape[0]
    Dx = x2.shape[1]
    Dy = yt.shape[1]
    R = n_rels
    cost = pl.CostEstimate(
        flops=2 * B * R * T * Dy * (Dx + T), transcendentals=0,
        bytes_accessed=B * T * (Dx + Dy) * 2 + Dx * R * Dy * 2 + B * R * T * T * 4)
    return pl.pallas_call(
        functools.partial(_rel_biaffine_kernel, n_rels=R),
        out_shape=jax.ShapeDtypeStruct((B, R, T, T), jnp.float32),
        grid=(B,),
        in_specs=[
            pl.BlockSpec((T, Dx), lambda b: (b, 0)),
            pl.BlockSpec((Dx, R * Dy), lambda b: (0, 0)),
            pl.BlockSpec((None, Dy, T), lambda b: (b, 0, 0)),
        ],
        out_specs=pl.BlockSpec((None, R, T, T), lambda b: (b, 0, 0, 0)),
        compiler_params=pltpu.CompilerParams(dimension_semantics=("parallel",)),
        cost_estimate=cost,
    )(x2, w_flat, yt)


# ----------------------------------------------------------------------------
# Full forward pass (eval mode: all dropouts are identity)
# ----------------------------------------------------------------------------

def word_tag_parser_forward(params, words, tags, pad_index):
    B, T = words.shape
    mask = words != pad_index                                        # (B, T)
    # batch max length -> SMEM loop bound for the recurrence (pads are no-ops anyway)
    nsteps = jnp.max(jnp.sum(mask.astype(jnp.int32), axis=1)).reshape(1)

    # Embedding gathers stay in XLA; indexing with words.T yields TIME-major activations
    # directly, so there is no standalone (B,T,D) -> (T,B,D) permute.
    x_tm = jnp.concatenate([params["embed"][words.T], params["tag_embed"][tags.T]], axis=-1)
    x_flat = x_tm.reshape(T * B, -1).astype(jnp.bfloat16)            # (T*B, Din0)
    m_tb1 = mask.T.astype(jnp.float32)[:, :, None]                   # (T, B, 1)

    h_flat = x_flat
    for layer in params["lstm"]:
        h_flat = _bilstm_layer(layer, h_flat, m_tb1, nsteps)         # (T*B, 2Hp) bf16

    # Fused 4-head MLP: columns = [arc_h | arc_d | rel_h | rel_d], each block 128-padded,
    # biaffine constant-1 bias feature baked into the MLP bias.  LeakyReLU(0.1).
    na = params["w_arc"].shape[2]
    nr = params["w_rel"].shape[2] - 1
    R = params["w_rel"].shape[0]
    Ah = _round_up(na, 128)
    Ad = _round_up(na + 1, 128)
    Rr = _round_up(nr + 1, 128)

    feats = linear(h_flat, params["mlp_w"], params["mlp_b"], negative_slope=0.1,
                   out_dtype=jnp.bfloat16)                            # (T*B, Ah+Ad+2*Rr)
    d_mlp = feats.shape[1]
    feats = jnp.transpose(feats.reshape(T, B, d_mlp), (1, 0, 2))      # (B, T, d_mlp)

    arc_h = feats[:, :, :Ah]
    arc_d = feats[:, :, Ah:Ah + Ad]
    rel_h = feats[:, :, Ah + Ad:Ah + Ad + Rr]
    rel_d = feats[:, :, Ah + Ad + Rr:]

    # Biaffine weights padded to the lane-aligned feature widths (row/col `na`/`nr` = bias).
    w_arc = jnp.pad(params["w_arc"][0], ((0, Ad - (na + 1)), (0, Ah - na)))      # (Ad, Ah)
    w_rel = jnp.pad(params["w_rel"], ((0, 0), (0, Rr - (nr + 1)), (0, Rr - (nr + 1))))
    w_rel_flat = jnp.transpose(w_rel, (1, 0, 2)).reshape(Rr, R * Rr)             # (Rr, R*Rr)

    # Pre-transpose the head-side features once in XLA so the kernels never transpose.
    arc_h_t = jnp.transpose(arc_h, (0, 2, 1))                        # (B, Ah, T)
    rel_h_t = jnp.transpose(rel_h, (0, 2, 1))                        # (B, Rr, T)

    s_arc = arc_biaffine(arc_d.reshape(B * T, Ad), w_arc, arc_h_t, mask, T)      # (B, T, T)
    s_rel = rel_biaffine(rel_d.reshape(B * T, Rr), w_rel_flat, rel_h_t, R, T)    # (B, R, T, T)

    # TODO(synk): downstream consumers should take (B, R, T, T) directly; R (<128) in the lane
    # position makes an in-kernel permuted store lane-masked, so this last permute stays in XLA.
    s_rel = jnp.transpose(s_rel, (0, 2, 3, 1))                       # (B, T, T, R)
    return s_arc, s_rel


# ----------------------------------------------------------------------------
# Deterministic parameter construction (synthetic; shapes follow the module __init__).
# When porting real PyTorch weights: fuse bias_ih+bias_hh, reorder gates to [i|f|o|g],
# zero-pad the hidden width H -> Hp (multiple of 128) and the MLP head blocks to 128.
# ----------------------------------------------------------------------------

def init_params(key, cfg):
    def nrm(k, shape, scale=0.1, dtype=jnp.float32):
        return (scale * jax.random.normal(k, shape, jnp.float32)).astype(dtype)

    keys = iter(jax.random.split(key, 64))
    H = cfg["n_lstm_hidden"]
    Hp = _round_up(H, 128)
    din0 = cfg["n_embed"] + cfg["n_tag_embed"]
    na, nr, R = cfg["n_mlp_arc"], cfg["n_mlp_rel"], cfg["n_rels"]

    lstm_layers = []
    for layer in range(cfg["n_lstm_layers"]):
        din = din0 if layer == 0 else 2 * Hp
        # weight_ih, both directions, gate order [i|f|o|g]; gate width zero-padded H -> Hp
        wx = nrm(next(keys), (din, 2, 4, H))
        wx = jnp.pad(wx, ((0, 0), (0, 0), (0, 0), (0, Hp - H)))
        wx = wx.reshape(din, 8 * Hp).astype(jnp.bfloat16)
        # weight_hh per direction, zero-padded rows and gate columns
        wh = nrm(next(keys), (2, H, 4, H))
        wh = jnp.pad(wh, ((0, 0), (0, Hp - H), (0, 0), (0, Hp - H)))
        wh = wh.reshape(2, Hp, 4 * Hp).astype(jnp.bfloat16)
        # bias = bias_ih + bias_hh; padded gate entries are zero so padded hidden stays zero
        b = nrm(next(keys), (2, 4, H))
        b = jnp.pad(b, ((0, 0), (0, 0), (0, Hp - H))).reshape(1, 8 * Hp)
        lstm_layers.append({"wx": wx, "wh_f": wh[0], "wh_b": wh[1], "b": b})

    # Fused MLP heads, each block 128-padded; the biaffine "+1" bias feature is produced by
    # setting the MLP bias to 1.0 at the bias column (LeakyReLU(1) == 1, weights there are 0).
    Ah = _round_up(na, 128)
    Ad = _round_up(na + 1, 128)
    Rr = _round_up(nr + 1, 128)

    def head(kw, kb, n_real, n_pad, bias_one):
        w = jnp.pad(nrm(kw, (2 * Hp, n_real)), ((0, 0), (0, n_pad - n_real)))
        b = jnp.pad(nrm(kb, (n_real,)), (0, n_pad - n_real))
        if bias_one:
            b = b.at[n_real].set(1.0)
        return w, b

    w_ah, b_ah = head(next(keys), next(keys), na, Ah, False)   # arc_h  (no bias_y for arc)
    w_ad, b_ad = head(next(keys), next(keys), na, Ad, True)    # arc_d  (bias_x)
    w_rh, b_rh = head(next(keys), next(keys), nr, Rr, True)    # rel_h  (bias_y)
    w_rd, b_rd = head(next(keys), next(keys), nr, Rr, True)    # rel_d  (bias_x)
    mlp_w = jnp.concatenate([w_ah, w_ad, w_rh, w_rd], axis=1).astype(jnp.bfloat16)
    mlp_b = jnp.concatenate([b_ah, b_ad, b_rh, b_rd])[None, :]

    return {
        "embed": nrm(next(keys), (cfg["n_words"], cfg["n_embed"]), scale=1.0),
        "tag_embed": nrm(next(keys), (cfg["n_tags"], cfg["n_tag_embed"]), scale=1.0),
        "lstm": lstm_layers,
        "mlp_w": mlp_w,
        "mlp_b": mlp_b,
        # Biaffine weights: (n_out, n_in + bias_x, n_in + bias_y)
        "w_arc": nrm(next(keys), (1, na + 1, na), dtype=jnp.bfloat16),
        "w_rel": nrm(next(keys), (R, nr + 1, nr + 1), dtype=jnp.bfloat16),
    }


# ----------------------------------------------------------------------------
# Demo
# ----------------------------------------------------------------------------

if __name__ == "__main__":
    cfg = dict(
        n_words=50, n_embed=32,
        n_tags=12, n_tag_embed=16,
        n_lstm_hidden=32, n_lstm_layers=2,
        n_mlp_arc=64, n_mlp_rel=32,
        n_rels=8, pad_index=0, unk_index=1,
    )
    B, T = 2, 8

    key = jax.random.PRNGKey(0)
    k_param, k_words, k_tags = jax.random.split(key, 3)
    params = init_params(k_param, cfg)

    words = jax.random.randint(k_words, (B, T), 2, cfg["n_words"], dtype=jnp.int32)
    words = words.at[1, 6:].set(cfg["pad_index"])     # make sequence 1 shorter (right-padded)
    tags = jax.random.randint(k_tags, (B, T), 0, cfg["n_tags"], dtype=jnp.int32)

    fwd = jax.jit(functools.partial(word_tag_parser_forward, pad_index=cfg["pad_index"]))
    s_arc, s_rel = fwd(params, words, tags)
    jax.block_until_ready((s_arc, s_rel))

    assert s_arc.shape == (B, T, T)
    assert s_rel.shape == (B, T, T, cfg["n_rels"])
    assert bool(jnp.all(jnp.isneginf(s_arc[1, :, 6:])))   # padded head positions are masked
    print("KERNEL_OK")
</pallas_src>

<mosaic_0001>
module attributes {stable_mosaic.version = 11 : i64} {
  func.func @_linear_kernel(%arg0: i32, %arg1: memref<16x48xbf16, #tpu.memory_space<vmem>>, %arg2: memref<48x1024xbf16, #tpu.memory_space<vmem>>, %arg3: memref<1x1024xf32, #tpu.memory_space<vmem>>, %arg4: memref<16x1024xbf16, #tpu.memory_space<vmem>>) attributes {dimension_semantics = [#tpu.dimension_semantics<parallel>], iteration_bounds = array<i64: 1>, scalar_prefetch = 0 : i64, scratch_operands = 0 : i64, tpu.core_type = #tpu.core_type<tc>, window_params = [{transform_indices = @transform_0, window_bounds = array<i64: 16, 48>}, {pipeline_mode = #tpu.pipeline_mode<synchronous>, transform_indices = @transform_1, window_bounds = array<i64: 48, 1024>}, {pipeline_mode = #tpu.pipeline_mode<synchronous>, transform_indices = @transform_2, window_bounds = array<i64: 1, 1024>}, {transform_indices = @transform_3, window_bounds = array<i64: 16, 1024>}]} {
    %c0 = arith.constant 0 : index
    %c0_0 = arith.constant 0 : index
    %0 = vector.load %arg1[%c0, %c0_0] : memref<16x48xbf16, #tpu.memory_space<vmem>>, vector<16x48xbf16>
    %c0_1 = arith.constant 0 : index
    %c0_2 = arith.constant 0 : index
    %1 = vector.load %arg2[%c0_1, %c0_2] : memref<48x1024xbf16, #tpu.memory_space<vmem>>, vector<48x1024xbf16>
    %cst = arith.constant dense<0.000000e+00> : vector<16x1024xf32>
    %2 = tpu.matmul %0, %1, %cst {dimension_numbers = #tpu.dot_dimension_numbers<[1], [0], [0], [1], [0, 0, 1, 1], [], []>} : vector<16x48xbf16>, vector<48x1024xbf16>, vector<16x1024xf32> -> vector<16x1024xf32>
    %c0_3 = arith.constant 0 : index
    %c0_4 = arith.constant 0 : index
    %3 = vector.load %arg3[%c0_3, %c0_4] : memref<1x1024xf32, #tpu.memory_space<vmem>>, vector<1x1024xf32>
    %4 = vector.broadcast %3 : vector<1x1024xf32> to vector<16x1024xf32>
    %5 = arith.addf %2, %4 : vector<16x1024xf32>
    %6 = arith.truncf %5 : vector<16x1024xf32> to vector<16x1024xbf16>
    %c0_5 = arith.constant 0 : index
    %c0_6 = arith.constant 0 : index
    %7 = vector.load %arg4[%c0_5, %c0_6] : memref<16x1024xbf16, #tpu.memory_space<vmem>>, vector<16x1024xbf16>
    tpu.vector_store %arg4[%c0_5, %c0_6], %6 {strides = array<i32>} : memref<16x1024xbf16, #tpu.memory_space<vmem>>, vector<16x1024xbf16>,
    return
  }
  func.func @transform_0(%arg0: i32) -> (i32, i32) {
    %c0_i32 = arith.constant 0 : i32
    %c0_i32_0 = arith.constant 0 : i32
    return %arg0, %c0_i32 : i32, i32
  }
  func.func @transform_1(%arg0: i32) -> (i32, i32) {
    %c0_i32 = arith.constant 0 : i32
    %c0_i32_0 = arith.constant 0 : i32
    %c0_i32_1 = arith.constant 0 : i32
    return %c0_i32, %c0_i32_0 : i32, i32
  }
  func.func @transform_2(%arg0: i32) -> (i32, i32) {
    %c0_i32 = arith.constant 0 : i32
    %c0_i32_0 = arith.constant 0 : i32
    %c0_i32_1 = arith.constant 0 : i32
    return %c0_i32, %c0_i32_0 : i32, i32
  }
  func.func @transform_3(%arg0: i32) -> (i32, i32) {
    %c0_i32 = arith.constant 0 : i32
    %c0_i32_0 = arith.constant 0 : i32
    return %arg0, %c0_i32 : i32, i32
  }
}

module attributes {stable_mosaic.version = 11 : i64} {
  func.func @_bilstm_scan_kernel(%arg0: i32, %arg1: memref<1xi32, #tpu.memory_space<smem>>, %arg2: memref<8x2x512xbf16, #tpu.memory_space<vmem>>, %arg3: memref<8x2x512xbf16, #tpu.memory_space<vmem>>, %arg4: memref<8x2x1xf32, #tpu.memory_space<vmem>>, %arg5: memref<128x512xbf16, #tpu.memory_space<vmem>>, %arg6: memref<128x512xbf16, #tpu.memory_space<vmem>>, %arg7: memref<8x2x256xbf16, #tpu.memory_space<vmem>>, %arg8: memref<2x128xf32, #tpu.memory_space<vmem>>, %arg9: memref<2x128xf32, #tpu.memory_space<vmem>>, %arg10: memref<2x128xf32, #tpu.memory_space<vmem>>, %arg11: memref<2x128xf32, #tpu.memory_space<vmem>>) attributes {dimension_semantics = [#tpu.dimension_semantics<arbitrary>], iteration_bounds = array<i64: 1>, scalar_prefetch = 1 : i64, scratch_operands = 4 : i64, tpu.core_type = #tpu.core_type<tc>, window_params = [{transform_indices = @transform_0, window_bounds = array<i64: 8, 2, 512>}, {transform_indices = @transform_1, window_bounds = array<i64: 8, 2, 512>}, {pipeline_mode = #tpu.pipeline_mode<synchronous>, transform_indices = @transform_2, window_bounds = array<i64: 8, 2, 1>}, {pipeline_mode = #tpu.pipeline_mode<synchronous>, transform_indices = @transform_3, window_bounds = array<i64: 128, 512>}, {pipeline_mode = #tpu.pipeline_mode<synchronous>, transform_indices = @transform_4, window_bounds = array<i64: 128, 512>}, {pipeline_mode = #tpu.pipeline_mode<synchronous>, transform_indices = @transform_5, window_bounds = array<i64: 8, 2, 256>}]} {
    %c0 = arith.constant 0 : index
    %0 = memref.load %arg1[%c0] : memref<1xi32, #tpu.memory_space<smem>>
    %cst = arith.constant 0.000000e+00 : bf16
    %1 = vector.broadcast %cst : bf16 to vector<8x2x256xbf16>
    %c0_0 = arith.constant 0 : index
    %c0_1 = arith.constant 0 : index
    %c0_2 = arith.constant 0 : index
    %2 = vector.load %arg7[%c0_0, %c0_1, %c0_2] : memref<8x2x256xbf16, #tpu.memory_space<vmem>>, vector<8x2x256xbf16>
    tpu.vector_store %arg7[%c0_0, %c0_1, %c0_2], %1 {strides = array<i32>} : memref<8x2x256xbf16, #tpu.memory_space<vmem>>, vector<8x2x256xbf16>,
    %cst_3 = arith.constant 0.000000e+00 : f32
    %3 = vector.broadcast %cst_3 : f32 to vector<2x128xf32>
    %c0_4 = arith.constant 0 : index
    %c0_5 = arith.constant 0 : index
    %4 = vector.load %arg8[%c0_4, %c0_5] : memref<2x128xf32, #tpu.memory_space<vmem>>, vector<2x128xf32>
    tpu.vector_store %arg8[%c0_4, %c0_5], %3 {strides = array<i32>} : memref<2x128xf32, #tpu.memory_space<vmem>>, vector<2x128xf32>,
    %cst_6 = arith.constant 0.000000e+00 : f32
    %5 = vector.broadcast %cst_6 : f32 to vector<2x128xf32>
    %c0_7 = arith.constant 0 : index
    %c0_8 = arith.constant 0 : index
    %6 = vector.load %arg9[%c0_7, %c0_8] : memref<2x128xf32, #tpu.memory_space<vmem>>, vector<2x128xf32>
    tpu.vector_store %arg9[%c0_7, %c0_8], %5 {strides = array<i32>} : memref<2x128xf32, #tpu.memory_space<vmem>>, vector<2x128xf32>,
    %cst_9 = arith.constant 0.000000e+00 : f32
    %7 = vector.broadcast %cst_9 : f32 to vector<2x128xf32>
    %c0_10 = arith.constant 0 : index
    %c0_11 = arith.constant 0 : index
    %8 = vector.load %arg10[%c0_10, %c0_11] : memref<2x128xf32, #tpu.memory_space<vmem>>, vector<2x128xf32>
    tpu.vector_store %arg10[%c0_10, %c0_11], %7 {strides = array<i32>} : memref<2x128xf32, #tpu.memory_space<vmem>>, vector<2x128xf32>,
    %cst_12 = arith.constant 0.000000e+00 : f32
    %9 = vector.broadcast %cst_12 : f32 to vector<2x128xf32>
    %c0_13 = arith.constant 0 : index
    %c0_14 = arith.constant 0 : index
    %10 = vector.load %arg11[%c0_13, %c0_14] : memref<2x128xf32, #tpu.memory_space<vmem>>, vector<2x128xf32>
    tpu.vector_store %arg11[%c0_13, %c0_14], %9 {strides = array<i32>} : memref<2x128xf32, #tpu.memory_space<vmem>>, vector<2x128xf32>,
    %c0_i32 = arith.constant 0 : i32
    %c0_i32_15 = arith.constant 0 : i32
    %11 = arith.subi %0, %c0_i32_15 : i32
    %12 = arith.addi %c0_i32_15, %11 : i32
    %c1_i32 = arith.constant 1 : i32
    scf.for %arg12 = %c0_i32_15 to %12 step %c1_i32  : i32 {
      %c1_i32_16 = arith.constant 1 : i32
      %13 = arith.subi %0, %c1_i32_16 : i32
      %14 = arith.subi %13, %arg12 : i32
      %c0_17 = arith.constant 0 : index
      %c0_18 = arith.constant 0 : index
      %15 = vector.load %arg8[%c0_17, %c0_18] : memref<2x128xf32, #tpu.memory_space<vmem>>, vector<2x128xf32>
      %c0_19 = arith.constant 0 : index
      %c0_20 = arith.constant 0 : index
      %16 = vector.load %arg9[%c0_19, %c0_20] : memref<2x128xf32, #tpu.memory_space<vmem>>, vector<2x128xf32>
      %17 = arith.index_cast %arg12 : i32 to index
      %c0_21 = arith.constant 0 : index
      %c0_22 = arith.constant 0 : index
      %18 = vector.load %arg2[%17, %c0_21, %c0_22] : memref<8x2x512xbf16, #tpu.memory_space<vmem>>, vector<1x2x512xbf16>
      %19 = vector.shape_cast %18 : vector<1x2x512xbf16> to vector<2x512xbf16>
      %20 = arith.extf %19 : vector<2x512xbf16> to vector<2x512xf32>
      %21 = arith.truncf %15 : vector<2x128xf32> to vector<2x128xbf16>
      %c0_23 = arith.constant 0 : index
      %c0_24 = arith.constant 0 : index
      %22 = vector.load %arg5[%c0_23, %c0_24] : memref<128x512xbf16, #tpu.memory_space<vmem>>, vector<128x512xbf16>
      %cst_25 = arith.constant dense<0.000000e+00> : vector<2x512xf32>
      %23 = tpu.matmul %21, %22, %cst_25 {dimension_numbers = #tpu.dot_dimension_numbers<[1], [0], [0], [1], [0, 0, 1, 1], [], []>} : vector<2x128xbf16>, vector<128x512xbf16>, vector<2x512xf32> -> vector<2x512xf32>
      %24 = arith.addf %20, %23 : vector<2x512xf32>
      %25 = vector.extract_strided_slice %24 {offsets = [0, 0], sizes = [2, 384], strides = [1, 1]} : vector<2x512xf32> to vector<2x384xf32>
      %26 = arith.negf %25 : vector<2x384xf32>
      %27 = math.exp %26 : vector<2x384xf32>
      %cst_26 = arith.constant 1.000000e+00 : f32
      %28 = vector.broadcast %cst_26 : f32 to vector<2x384xf32>
      %29 = arith.addf %28, %27 : vector<2x384xf32>
      %30 = arith.divf %28, %29 : vector<2x384xf32>
      %31 = vector.extract_strided_slice %24 {offsets = [0, 384], sizes = [2, 128], strides = [1, 1]} : vector<2x512xf32> to vector<2x128xf32>
      %32 = math.tanh %31 : vector<2x128xf32>
      %33 = vector.extract_strided_slice %30 {offsets = [0, 0], sizes = [2, 128], strides = [1, 1]} : vector<2x384xf32> to vector<2x128xf32>
      %34 = vector.extract_strided_slice %30 {offsets = [0, 128], sizes = [2, 128], strides = [1, 1]} : vector<2x384xf32> to vector<2x128xf32>
      %35 = vector.extract_strided_slice %30 {offsets = [0, 256], sizes = [2, 128], strides = [1, 1]} : vector<2x384xf32> to vector<2x128xf32>
      %36 = arith.mulf %34, %16 : vector<2x128xf32>
      %37 = arith.mulf %33, %32 : vector<2x128xf32>
      %38 = arith.addf %36, %37 : vector<2x128xf32>
      %39 = math.tanh %38 : vector<2x128xf32>
      %40 = arith.mulf %35, %39 : vector<2x128xf32>
      %41 = arith.index_cast %arg12 : i32 to index
      %c0_27 = arith.constant 0 : index
      %c0_28 = arith.constant 0 : index
      %42 = vector.load %arg4[%41, %c0_27, %c0_28] : memref<8x2x1xf32, #tpu.memory_space<vmem>>, vector<1x2x1xf32>
      %43 = vector.shape_cast %42 : vector<1x2x1xf32> to vector<2x1xf32>
      %cst_29 = arith.constant 5.000000e-01 : f32
      %44 = vector.broadcast %cst_29 : f32 to vector<2x1xf32>
      %45 = arith.cmpf ogt, %43, %44 : vector<2x1xf32>
      %46 = vector.shape_cast %45 : vector<2x1xi1> to vector<2x1xi1>
      %47 = vector.broadcast %46 : vector<2x1xi1> to vector<2x128xi1>
      %48 = arith.select %47, %40, %15 : vector<2x128xi1>, vector<2x128xf32>
      %c0_30 = arith.constant 0 : index
      %c0_31 = arith.constant 0 : index
      %49 = vector.load %arg8[%c0_30, %c0_31] : memref<2x128xf32, #tpu.memory_space<vmem>>, vector<2x128xf32>
      tpu.vector_store %arg8[%c0_30, %c0_31], %48 {strides = array<i32>} : memref<2x128xf32, #tpu.memory_space<vmem>>, vector<2x128xf32>,
      %50 = vector.shape_cast %45 : vector<2x1xi1> to vector<2x1xi1>
      %51 = vector.broadcast %50 : vector<2x1xi1> to vector<2x128xi1>
      %52 = arith.select %51, %38, %16 : vector<2x128xi1>, vector<2x128xf32>
      %c0_32 = arith.constant 0 : index
      %c0_33 = arith.constant 0 : index
      %53 = vector.load %arg9[%c0_32, %c0_33] : memref<2x128xf32, #tpu.memory_space<vmem>>, vector<2x128xf32>
      tpu.vector_store %arg9[%c0_32, %c0_33], %52 {strides = array<i32>} : memref<2x128xf32, #tpu.memory_space<vmem>>, vector<2x128xf32>,
      %cst_34 = arith.constant 0.000000e+00 : f32
      %54 = vector.shape_cast %45 : vector<2x1xi1> to vector<2x1xi1>
      %55 = vector.broadcast %54 : vector<2x1xi1> to vector<2x128xi1>
      %56 = vector.broadcast %cst_34 : f32 to vector<2x128xf32>
      %57 = arith.select %55, %40, %56 : vector<2x128xi1>, vector<2x128xf32>
      %58 = arith.truncf %57 : vector<2x128xf32> to vector<2x128xbf16>
      %59 = arith.index_cast %arg12 : i32 to index
      %c0_35 = arith.constant 0 : index
      %c0_36 = arith.constant 0 : index
      %60 = vector.load %arg7[%59, %c0_35, %c0_36] : memref<8x2x256xbf16, #tpu.memory_space<vmem>>, vector<1x2x128xbf16>
      %61 = vector.shape_cast %60 : vector<1x2x128xbf16> to vector<2x128xbf16>
      %62 = vector.shape_cast %58 : vector<2x128xbf16> to vector<1x2x128xbf16>
      tpu.vector_store %arg7[%59, %c0_35, %c0_36], %62 {strides = array<i32>} : memref<8x2x256xbf16, #tpu.memory_space<vmem>>, vector<1x2x128xbf16>,
      %c0_37 = arith.constant 0 : index
      %c0_38 = arith.constant 0 : index
      %63 = vector.load %arg10[%c0_37, %c0_38] : memref<2x128xf32, #tpu.memory_space<vmem>>, vector<2x128xf32>
      %c0_39 = arith.constant 0 : index
      %c0_40 = arith.constant 0 : index
      %64 = vector.load %arg11[%c0_39, %c0_40] : memref<2x128xf32, #tpu.memory_space<vmem>>, vector<2x128xf32>
      %65 = arith.index_cast %14 : i32 to index
      %c0_41 = arith.constant 0 : index
      %c0_42 = arith.constant 0 : index
      %66 = vector.load %arg3[%65, %c0_41, %c0_42] : memref<8x2x512xbf16, #tpu.memory_space<vmem>>, vector<1x2x512xbf16>
      %67 = vector.shape_cast %66 : vector<1x2x512xbf16> to vector<2x512xbf16>
      %68 = arith.extf %67 : vector<2x512xbf16> to vector<2x512xf32>
      %69 = arith.truncf %63 : vector<2x128xf32> to vector<2x128xbf16>
      %c0_43 = arith.constant 0 : index
      %c0_44 = arith.constant 0 : index
      %70 = vector.load %arg6[%c0_43, %c0_44] : memref<128x512xbf16, #tpu.memory_space<vmem>>, vector<128x512xbf16>
      %cst_45 = arith.constant dense<0.000000e+00> : vector<2x512xf32>
      %71 = tpu.matmul %69, %70, %cst_45 {dimension_numbers = #tpu.dot_dimension_numbers<[1], [0], [0], [1], [0, 0, 1, 1], [], []>} : vector<2x128xbf16>, vector<128x512xbf16>, vector<2x512xf32> -> vector<2x512xf32>
      %72 = arith.addf %68, %71 : vector<2x512xf32>
      %73 = vector.extract_strided_slice %72 {offsets = [0, 0], sizes = [2, 384], strides = [1, 1]} : vector<2x512xf32> to vector<2x384xf32>
      %74 = arith.negf %73 : vector<2x384xf32>
      %75 = math.exp %74 : vector<2x384xf32>
      %cst_46 = arith.constant 1.000000e+00 : f32
      %76 = vector.broadcast %cst_46 : f32 to vector<2x384xf32>
      %77 = arith.addf %76, %75 : vector<2x384xf32>
      %78 = arith.divf %76, %77 : vector<2x384xf32>
      %79 = vector.extract_strided_slice %72 {offsets = [0, 384], sizes = [2, 128], strides = [1, 1]} : vector<2x512xf32> to vector<2x128xf32>
      %80 = math.tanh %79 : vector<2x128xf32>
      %81 = vector.extract_strided_slice %78 {offsets = [0, 0], sizes = [2, 128], strides = [1, 1]} : vector<2x384xf32> to vector<2x128xf32>
      %82 = vector.extract_strided_slice %78 {offsets = [0, 128], sizes = [2, 128], strides = [1, 1]} : vector<2x384xf32> to vector<2x128xf32>
      %83 = vector.extract_strided_slice %78 {offsets = [0, 256], sizes = [2, 128], strides = [1, 1]} : vector<2x384xf32> to vector<2x128xf32>
      %84 = arith.mulf %82, %64 : vector<2x128xf32>
      %85 = arith.mulf %81, %80 : vector<2x128xf32>
      %86 = arith.addf %84, %85 : vector<2x128xf32>
      %87 = math.tanh %86 : vector<2x128xf32>
      %88 = arith.mulf %83, %87 : vector<2x128xf32>
      %89 = arith.index_cast %14 : i32 to index
      %c0_47 = arith.constant 0 : index
      %c0_48 = arith.constant 0 : index
      %90 = vector.load %arg4[%89, %c0_47, %c0_48] : memref<8x2x1xf32, #tpu.memory_space<vmem>>, vector<1x2x1xf32>
      %91 = vector.shape_cast %90 : vector<1x2x1xf32> to vector<2x1xf32>
      %cst_49 = arith.constant 5.000000e-01 : f32
      %92 = vector.broadcast %cst_49 : f32 to vector<2x1xf32>
      %93 = arith.cmpf ogt, %91, %92 : vector<2x1xf32>
      %94 = vector.shape_cast %93 : vector<2x1xi1> to vector<2x1xi1>
      %95 = vector.broadcast %94 : vector<2x1xi1> to vector<2x128xi1>
      %96 = arith.select %95, %88, %63 : vector<2x128xi1>, vector<2x128xf32>
      %c0_50 = arith.constant 0 : index
      %c0_51 = arith.constant 0 : index
      %97 = vector.load %arg10[%c0_50, %c0_51] : memref<2x128xf32, #tpu.memory_space<vmem>>, vector<2x128xf32>
      tpu.vector_store %arg10[%c0_50, %c0_51], %96 {strides = array<i32>} : memref<2x128xf32, #tpu.memory_space<vmem>>, vector<2x128xf32>,
      %98 = vector.shape_cast %93 : vector<2x1xi1> to vector<2x1xi1>
      %99 = vector.broadcast %98 : vector<2x1xi1> to vector<2x128xi1>
      %100 = arith.select %99, %86, %64 : vector<2x128xi1>, vector<2x128xf32>
      %c0_52 = arith.constant 0 : index
      %c0_53 = arith.constant 0 : index
      %101 = vector.load %arg11[%c0_52, %c0_53] : memref<2x128xf32, #tpu.memory_space<vmem>>, vector<2x128xf32>
      tpu.vector_store %arg11[%c0_52, %c0_53], %100 {strides = array<i32>} : memref<2x128xf32, #tpu.memory_space<vmem>>, vector<2x128xf32>,
      %cst_54 = arith.constant 0.000000e+00 : f32
      %102 = vector.shape_cast %93 : vector<2x1xi1> to vector<2x1xi1>
      %103 = vector.broadcast %102 : vector<2x1xi1> to vector<2x128xi1>
      %104 = vector.broadcast %cst_54 : f32 to vector<2x128xf32>
      %105 = arith.select %103, %88, %104 : vector<2x128xi1>, vector<2x128xf32>
      %106 = arith.truncf %105 : vector<2x128xf32> to vector<2x128xbf16>
      %107 = arith.index_cast %14 : i32 to index
      %c0_55 = arith.constant 0 : index
      %c128 = arith.constant 128 : index
      %108 = vector.load %arg7[%107, %c0_55, %c128] : memref<8x2x256xbf16, #tpu.memory_space<vmem>>, vector<1x2x128xbf16>
      %109 = vector.shape_cast %108 : vector<1x2x128xbf16> to vector<2x128xbf16>
      %110 = vector.shape_cast %106 : vector<2x128xbf16> to vector<1x2x128xbf16>
      tpu.vector_store %arg7[%107, %c0_55, %c128], %110 {strides = array<i32>} : memref<8x2x256xbf16, #tpu.memory_space<vmem>>, vector<1x2x128xbf16>,
    }
    return
  }
  func.func @transform_0(%arg0: i32, %arg1: memref<1xi32, #tpu.memory_space<smem>>) -> (i32, i32, i32) {
    %c0_i32 = arith.constant 0 : i32
    %c0_i32_0 = arith.constant 0 : i32
    %c0_i32_1 = arith.constant 0 : i32
    %c0_i32_2 = arith.constant 0 : i32
    return %c0_i32, %c0_i32_0, %c0_i32_1 : i32, i32, i32
  }
  func.func @transform_1(%arg0: i32, %arg1: memref<1xi32, #tpu.memory_space<smem>>) -> (i32, i32, i32) {
    %c0_i32 = arith.constant 0 : i32
    %c0_i32_0 = arith.constant 0 : i32
    %c1_i32 = arith.constant 1 : i32
    %c0_i32_1 = arith.constant 0 : i32
    return %c0_i32, %c0_i32_0, %c1_i32 : i32, i32, i32
  }
  func.func @transform_2(%arg0: i32, %arg1: memref<1xi32, #tpu.memory_space<smem>>) -> (i32, i32, i32) {
    %c0_i32 = arith.constant 0 : i32
    %c0_i32_0 = arith.constant 0 : i32
    %c0_i32_1 = arith.constant 0 : i32
    %c0_i32_2 = arith.constant 0 : i32
    return %c0_i32, %c0_i32_0, %c0_i32_1 : i32, i32, i32
  }
  func.func @transform_3(%arg0: i32, %arg1: memref<1xi32, #tpu.memory_space<smem>>) -> (i32, i32) {
    %c0_i32 = arith.constant 0 : i32
    %c0_i32_0 = arith.constant 0 : i32
    %c0_i32_1 = arith.constant 0 : i32
    return %c0_i32, %c0_i32_0 : i32, i32
  }
  func.func @transform_4(%arg0: i32, %arg1: memref<1xi32, #tpu.memory_space<smem>>) -> (i32, i32) {
    %c0_i32 = arith.constant 0 : i32
    %c0_i32_0 = arith.constant 0 : i32
    %c0_i32_1 = arith.constant 0 : i32
    return %c0_i32, %c0_i32_0 : i32, i32
  }
  func.func @transform_5(%arg0: i32, %arg1: memref<1xi32, #tpu.memory_space<smem>>) -> (i32, i32, i32) {
    %c0_i32 = arith.constant 0 : i32
    %c0_i32_0 = arith.constant 0 : i32
    %c0_i32_1 = arith.constant 0 : i32
    %c0_i32_2 = arith.constant 0 : i32
    return %c0_i32, %c0_i32_0, %c0_i32_1 : i32, i32, i32
  }
}

module attributes {stable_mosaic.version = 11 : i64} {
  func.func @_linear_kernel(%arg0: i32, %arg1: memref<16x256xbf16, #tpu.memory_space<vmem>>, %arg2: memref<256x1024xbf16, #tpu.memory_space<vmem>>, %arg3: memref<1x1024xf32, #tpu.memory_space<vmem>>, %arg4: memref<16x1024xbf16, #tpu.memory_space<vmem>>) attributes {dimension_semantics = [#tpu.dimension_semantics<parallel>], iteration_bounds = array<i64: 1>, scalar_prefetch = 0 : i64, scratch_operands = 0 : i64, tpu.core_type = #tpu.core_type<tc>, window_params = [{transform_indices = @transform_0, window_bounds = array<i64: 16, 256>}, {pipeline_mode = #tpu.pipeline_mode<synchronous>, transform_indices = @transform_1, window_bounds = array<i64: 256, 1024>}, {pipeline_mode = #tpu.pipeline_mode<synchronous>, transform_indices = @transform_2, window_bounds = array<i64: 1, 1024>}, {transform_indices = @transform_3, window_bounds = array<i64: 16, 1024>}]} {
    %c0 = arith.constant 0 : index
    %c0_0 = arith.constant 0 : index
    %0 = vector.load %arg1[%c0, %c0_0] : memref<16x256xbf16, #tpu.memory_space<vmem>>, vector<16x256xbf16>
    %c0_1 = arith.constant 0 : index
    %c0_2 = arith.constant 0 : index
    %1 = vector.load %arg2[%c0_1, %c0_2] : memref<256x1024xbf16, #tpu.memory_space<vmem>>, vector<256x1024xbf16>
    %cst = arith.constant dense<0.000000e+00> : vector<16x1024xf32>
    %2 = tpu.matmul %0, %1, %cst {dimension_numbers = #tpu.dot_dimension_numbers<[1], [0], [0], [1], [0, 0, 1, 1], [], []>} : vector<16x256xbf16>, vector<256x1024xbf16>, vector<16x1024xf32> -> vector<16x1024xf32>
    %c0_3 = arith.constant 0 : index
    %c0_4 = arith.constant 0 : index
    %3 = vector.load %arg3[%c0_3, %c0_4] : memref<1x1024xf32, #tpu.memory_space<vmem>>, vector<1x1024xf32>
    %4 = vector.broadcast %3 : vector<1x1024xf32> to vector<16x1024xf32>
    %5 = arith.addf %2, %4 : vector<16x1024xf32>
    %6 = arith.truncf %5 : vector<16x1024xf32> to vector<16x1024xbf16>
    %c0_5 = arith.constant 0 : index
    %c0_6 = arith.constant 0 : index
    %7 = vector.load %arg4[%c0_5, %c0_6] : memref<16x1024xbf16, #tpu.memory_space<vmem>>, vector<16x1024xbf16>
    tpu.vector_store %arg4[%c0_5, %c0_6], %6 {strides = array<i32>} : memref<16x1024xbf16, #tpu.memory_space<vmem>>, vector<16x1024xbf16>,
    return
  }
  func.func @transform_0(%arg0: i32) -> (i32, i32) {
    %c0_i32 = arith.constant 0 : i32
    %c0_i32_0 = arith.constant 0 : i32
    return %arg0, %c0_i32 : i32, i32
  }
  func.func @transform_1(%arg0: i32) -> (i32, i32) {
    %c0_i32 = arith.constant 0 : i32
    %c0_i32_0 = arith.constant 0 : i32
    %c0_i32_1 = arith.constant 0 : i32
    return %c0_i32, %c0_i32_0 : i32, i32
  }
  func.func @transform_2(%arg0: i32) -> (i32, i32) {
    %c0_i32 = arith.constant 0 : i32
    %c0_i32_0 = arith.constant 0 : i32
    %c0_i32_1 = arith.constant 0 : i32
    return %c0_i32, %c0_i32_0 : i32, i32
  }
  func.func @transform_3(%arg0: i32) -> (i32, i32) {
    %c0_i32 = arith.constant 0 : i32
    %c0_i32_0 = arith.constant 0 : i32
    return %arg0, %c0_i32 : i32, i32
  }
}

module attributes {stable_mosaic.version = 11 : i64} {
  func.func @_linear_kernel(%arg0: i32, %arg1: memref<16x256xbf16, #tpu.memory_space<vmem>>, %arg2: memref<256x512xbf16, #tpu.memory_space<vmem>>, %arg3: memref<1x512xf32, #tpu.memory_space<vmem>>, %arg4: memref<16x512xbf16, #tpu.memory_space<vmem>>) attributes {dimension_semantics = [#tpu.dimension_semantics<parallel>], iteration_bounds = array<i64: 1>, scalar_prefetch = 0 : i64, scratch_operands = 0 : i64, tpu.core_type = #tpu.core_type<tc>, window_params = [{transform_indices = @transform_0, window_bounds = array<i64: 16, 256>}, {pipeline_mode = #tpu.pipeline_mode<synchronous>, transform_indices = @transform_1, window_bounds = array<i64: 256, 512>}, {pipeline_mode = #tpu.pipeline_mode<synchronous>, transform_indices = @transform_2, window_bounds = array<i64: 1, 512>}, {transform_indices = @transform_3, window_bounds = array<i64: 16, 512>}]} {
    %c0 = arith.constant 0 : index
    %c0_0 = arith.constant 0 : index
    %0 = vector.load %arg1[%c0, %c0_0] : memref<16x256xbf16, #tpu.memory_space<vmem>>, vector<16x256xbf16>
    %c0_1 = arith.constant 0 : index
    %c0_2 = arith.constant 0 : index
    %1 = vector.load %arg2[%c0_1, %c0_2] : memref<256x512xbf16, #tpu.memory_space<vmem>>, vector<256x512xbf16>
    %cst = arith.constant dense<0.000000e+00> : vector<16x512xf32>
    %2 = tpu.matmul %0, %1, %cst {dimension_numbers = #tpu.dot_dimension_numbers<[1], [0], [0], [1], [0, 0, 1, 1], [], []>} : vector<16x256xbf16>, vector<256x512xbf16>, vector<16x512xf32> -> vector<16x512xf32>
    %c0_3 = arith.constant 0 : index
    %c0_4 = arith.constant 0 : index
    %3 = vector.load %arg3[%c0_3, %c0_4] : memref<1x512xf32, #tpu.memory_space<vmem>>, vector<1x512xf32>
    %4 = vector.broadcast %3 : vector<1x512xf32> to vector<16x512xf32>
    %5 = arith.addf %2, %4 : vector<16x512xf32>
    %cst_5 = arith.constant 0.000000e+00 : f32
    %6 = vector.broadcast %cst_5 : f32 to vector<16x512xf32>
    %7 = arith.cmpf ogt, %5, %6 : vector<16x512xf32>
    %cst_6 = arith.constant 1.000000e-01 : f32
    %8 = vector.broadcast %cst_6 : f32 to vector<16x512xf32>
    %9 = arith.mulf %8, %5 : vector<16x512xf32>
    %10 = arith.select %7, %5, %9 : vector<16x512xi1>, vector<16x512xf32>
    %11 = arith.truncf %10 : vector<16x512xf32> to vector<16x512xbf16>
    %c0_7 = arith.constant 0 : index
    %c0_8 = arith.constant 0 : index
    %12 = vector.load %arg4[%c0_7, %c0_8] : memref<16x512xbf16, #tpu.memory_space<vmem>>, vector<16x512xbf16>
    tpu.vector_store %arg4[%c0_7, %c0_8], %11 {strides = array<i32>} : memref<16x512xbf16, #tpu.memory_space<vmem>>, vector<16x512xbf16>,
    return
  }
  func.func @transform_0(%arg0: i32) -> (i32, i32) {
    %c0_i32 = arith.constant 0 : i32
    %c0_i32_0 = arith.constant 0 : i32
    return %arg0, %c0_i32 : i32, i32
  }
  func.func @transform_1(%arg0: i32) -> (i32, i32) {
    %c0_i32 = arith.constant 0 : i32
    %c0_i32_0 = arith.constant 0 : i32
    %c0_i32_1 = arith.constant 0 : i32
    return %c0_i32, %c0_i32_0 : i32, i32
  }
  func.func @transform_2(%arg0: i32) -> (i32, i32) {
    %c0_i32 = arith.constant 0 : i32
    %c0_i32_0 = arith.constant 0 : i32
    %c0_i32_1 = arith.constant 0 : i32
    return %c0_i32, %c0_i32_0 : i32, i32
  }
  func.func @transform_3(%arg0: i32) -> (i32, i32) {
    %c0_i32 = arith.constant 0 : i32
    %c0_i32_0 = arith.constant 0 : i32
    return %arg0, %c0_i32 : i32, i32
  }
}

module attributes {stable_mosaic.version = 11 : i64} {
  func.func @_arc_biaffine_kernel(%arg0: i32, %arg1: memref<8x128xbf16, #tpu.memory_space<vmem>>, %arg2: memref<128x128xbf16, #tpu.memory_space<vmem>>, %arg3: memref<1x128x8xbf16, #tpu.memory_space<vmem>>, %arg4: memref<1x1x8xf32, #tpu.memory_space<vmem>>, %arg5: memref<1x8x8xf32, #tpu.memory_space<vmem>>) attributes {dimension_semantics = [#tpu.dimension_semantics<parallel>], iteration_bounds = array<i64: 2>, scalar_prefetch = 0 : i64, scratch_operands = 0 : i64, tpu.core_type = #tpu.core_type<tc>, window_params = [{transform_indices = @transform_0, window_bounds = array<i64: 8, 128>}, {pipeline_mode = #tpu.pipeline_mode<synchronous>, transform_indices = @transform_1, window_bounds = array<i64: 128, 128>}, {transform_indices = @transform_2, window_bounds = array<i64: 1, 128, 8>}, {transform_indices = @transform_3, window_bounds = array<i64: 1, 1, 8>}, {transform_indices = @transform_4, window_bounds = array<i64: 1, 8, 8>}]} {
    %c0 = arith.constant 0 : index
    %c0_0 = arith.constant 0 : index
    %0 = vector.load %arg1[%c0, %c0_0] : memref<8x128xbf16, #tpu.memory_space<vmem>>, vector<8x128xbf16>
    %c0_1 = arith.constant 0 : index
    %c0_2 = arith.constant 0 : index
    %1 = vector.load %arg2[%c0_1, %c0_2] : memref<128x128xbf16, #tpu.memory_space<vmem>>, vector<128x128xbf16>
    %cst = arith.constant dense<0.000000e+00> : vector<8x128xf32>
    %2 = tpu.matmul %0, %1, %cst {dimension_numbers = #tpu.dot_dimension_numbers<[1], [0], [0], [1], [0, 0, 1, 1], [], []>} : vector<8x128xbf16>, vector<128x128xbf16>, vector<8x128xf32> -> vector<8x128xf32>
    %3 = arith.truncf %2 : vector<8x128xf32> to vector<8x128xbf16>
    %c0_3 = arith.constant 0 : index
    %c0_4 = arith.constant 0 : index
    %c0_5 = arith.constant 0 : index
    %4 = vector.load %arg3[%c0_3, %c0_4, %c0_5] : memref<1x128x8xbf16, #tpu.memory_space<vmem>>, vector<1x128x8xbf16>
    %5 = vector.shape_cast %4 : vector<1x128x8xbf16> to vector<128x8xbf16>
    %cst_6 = arith.constant dense<0.000000e+00> : vector<8x8xf32>
    %6 = tpu.matmul %3, %5, %cst_6 {dimension_numbers = #tpu.dot_dimension_numbers<[1], [0], [0], [1], [0, 0, 1, 1], [], []>} : vector<8x128xbf16>, vector<128x8xbf16>, vector<8x8xf32> -> vector<8x8xf32>
    %c0_7 = arith.constant 0 : index
    %c0_8 = arith.constant 0 : index
    %c0_9 = arith.constant 0 : index
    %7 = vector.load %arg4[%c0_7, %c0_8, %c0_9] : memref<1x1x8xf32, #tpu.memory_space<vmem>>, vector<1x1x8xf32>
    %8 = vector.shape_cast %7 : vector<1x1x8xf32> to vector<1x8xf32>
    %cst_10 = arith.constant 5.000000e-01 : f32
    %9 = vector.broadcast %cst_10 : f32 to vector<1x8xf32>
    %10 = arith.cmpf ogt, %8, %9 : vector<1x8xf32>
    %cst_11 = arith.constant 0xFF800000 : f32
    %11 = vector.shape_cast %10 : vector<1x8xi1> to vector<1x8xi1>
    %12 = vector.broadcast %11 : vector<1x8xi1> to vector<8x8xi1>
    %13 = vector.broadcast %cst_11 : f32 to vector<8x8xf32>
    %14 = arith.select %12, %6, %13 : vector<8x8xi1>, vector<8x8xf32>
    %c0_12 = arith.constant 0 : index
    %c0_13 = arith.constant 0 : index
    %c0_14 = arith.constant 0 : index
    %15 = vector.load %arg5[%c0_12, %c0_13, %c0_14] : memref<1x8x8xf32, #tpu.memory_space<vmem>>, vector<1x8x8xf32>
    %16 = vector.shape_cast %15 : vector<1x8x8xf32> to vector<8x8xf32>
    %17 = vector.shape_cast %14 : vector<8x8xf32> to vector<1x8x8xf32>
    tpu.vector_store %arg5[%c0_12, %c0_13, %c0_14], %17 {strides = array<i32>} : memref<1x8x8xf32, #tpu.memory_space<vmem>>, vector<1x8x8xf32>,
    return
  }
  func.func @transform_0(%arg0: i32) -> (i32, i32) {
    %c0_i32 = arith.constant 0 : i32
    %c0_i32_0 = arith.constant 0 : i32
    return %arg0, %c0_i32 : i32, i32
  }
  func.func @transform_1(%arg0: i32) -> (i32, i32) {
    %c0_i32 = arith.constant 0 : i32
    %c0_i32_0 = arith.constant 0 : i32
    %c0_i32_1 = arith.constant 0 : i32
    return %c0_i32, %c0_i32_0 : i32, i32
  }
  func.func @transform_2(%arg0: i32) -> (i32, i32, i32) {
    %c0_i32 = arith.constant 0 : i32
    %c0_i32_0 = arith.constant 0 : i32
    %c0_i32_1 = arith.constant 0 : i32
    return %arg0, %c0_i32, %c0_i32_0 : i32, i32, i32
  }
  func.func @transform_3(%arg0: i32) -> (i32, i32, i32) {
    %c0_i32 = arith.constant 0 : i32
    %c0_i32_0 = arith.constant 0 : i32
    %c0_i32_1 = arith.constant 0 : i32
    return %arg0, %c0_i32, %c0_i32_0 : i32, i32, i32
  }
  func.func @transform_4(%arg0: i32) -> (i32, i32, i32) {
    %c0_i32 = arith.constant 0 : i32
    %c0_i32_0 = arith.constant 0 : i32
    %c0_i32_1 = arith.constant 0 : i32
    return %arg0, %c0_i32, %c0_i32_0 : i32, i32, i32
  }
}

module attributes {stable_mosaic.version = 11 : i64} {
  func.func @_rel_biaffine_kernel(%arg0: i32, %arg1: memref<8x128xbf16, #tpu.memory_space<vmem>>, %arg2: memref<128x1024xbf16, #tpu.memory_space<vmem>>, %arg3: memref<1x128x8xbf16, #tpu.memory_space<vmem>>, %arg4: memref<1x8x8x8xf32, #tpu.memory_space<vmem>>) attributes {dimension_semantics = [#tpu.dimension_semantics<parallel>], iteration_bounds = array<i64: 2>, scalar_prefetch = 0 : i64, scratch_operands = 0 : i64, tpu.core_type = #tpu.core_type<tc>, window_params = [{transform_indices = @transform_0, window_bounds = array<i64: 8, 128>}, {pipeline_mode = #tpu.pipeline_mode<synchronous>, transform_indices = @transform_1, window_bounds = array<i64: 128, 1024>}, {transform_indices = @transform_2, window_bounds = array<i64: 1, 128, 8>}, {transform_indices = @transform_3, window_bounds = array<i64: 1, 8, 8, 8>}]} {
    %c0 = arith.constant 0 : index
    %c0_0 = arith.constant 0 : index
    %0 = vector.load %arg1[%c0, %c0_0] : memref<8x128xbf16, #tpu.memory_space<vmem>>, vector<8x128xbf16>
    %c0_1 = arith.constant 0 : index
    %c0_2 = arith.constant 0 : index
    %1 = vector.load %arg2[%c0_1, %c0_2] : memref<128x1024xbf16, #tpu.memory_space<vmem>>, vector<128x1024xbf16>
    %cst = arith.constant dense<0.000000e+00> : vector<8x1024xf32>
    %2 = tpu.matmul %0, %1, %cst {dimension_numbers = #tpu.dot_dimension_numbers<[1], [0], [0], [1], [0, 0, 1, 1], [], []>} : vector<8x128xbf16>, vector<128x1024xbf16>, vector<8x1024xf32> -> vector<8x1024xf32>
    %3 = arith.truncf %2 : vector<8x1024xf32> to vector<8x1024xbf16>
    %c0_3 = arith.constant 0 : index
    %c0_4 = arith.constant 0 : index
    %c0_5 = arith.constant 0 : index
    %4 = vector.load %arg3[%c0_3, %c0_4, %c0_5] : memref<1x128x8xbf16, #tpu.memory_space<vmem>>, vector<1x128x8xbf16>
    %5 = vector.shape_cast %4 : vector<1x128x8xbf16> to vector<128x8xbf16>
    %6 = vector.extract_strided_slice %3 {offsets = [0, 0], sizes = [8, 128], strides = [1, 1]} : vector<8x1024xbf16> to vector<8x128xbf16>
    %cst_6 = arith.constant dense<0.000000e+00> : vector<8x8xf32>
    %7 = tpu.matmul %6, %5, %cst_6 {dimension_numbers = #tpu.dot_dimension_numbers<[1], [0], [0], [1], [0, 0, 1, 1], [], []>} : vector<8x128xbf16>, vector<128x8xbf16>, vector<8x8xf32> -> vector<8x8xf32>
    %c0_7 = arith.constant 0 : index
    %c0_8 = arith.constant 0 : index
    %c0_9 = arith.constant 0 : index
    %c0_10 = arith.constant 0 : index
    %8 = vector.load %arg4[%c0_7, %c0_8, %c0_9, %c0_10] : memref<1x8x8x8xf32, #tpu.memory_space<vmem>>, vector<1x1x8x8xf32>
    %9 = vector.shape_cast %8 : vector<1x1x8x8xf32> to vector<8x8xf32>
    %10 = vector.shape_cast %7 : vector<8x8xf32> to vector<1x1x8x8xf32>
    tpu.vector_store %arg4[%c0_7, %c0_8, %c0_9, %c0_10], %10 {strides = array<i32>} : memref<1x8x8x8xf32, #tpu.memory_space<vmem>>, vector<1x1x8x8xf32>,
    %11 = vector.extract_strided_slice %3 {offsets = [0, 128], sizes = [8, 128], strides = [1, 1]} : vector<8x1024xbf16> to vector<8x128xbf16>
    %cst_11 = arith.constant dense<0.000000e+00> : vector<8x8xf32>
    %12 = tpu.matmul %11, %5, %cst_11 {dimension_numbers = #tpu.dot_dimension_numbers<[1], [0], [0], [1], [0, 0, 1, 1], [], []>} : vector<8x128xbf16>, vector<128x8xbf16>, vector<8x8xf32> -> vector<8x8xf32>
    %c0_12 = arith.constant 0 : index
    %c1 = arith.constant 1 : index
    %c0_13 = arith.constant 0 : index
    %c0_14 = arith.constant 0 : index
    %13 = vector.load %arg4[%c0_12, %c1, %c0_13, %c0_14] : memref<1x8x8x8xf32, #tpu.memory_space<vmem>>, vector<1x1x8x8xf32>
    %14 = vector.shape_cast %13 : vector<1x1x8x8xf32> to vector<8x8xf32>
    %15 = vector.shape_cast %12 : vector<8x8xf32> to vector<1x1x8x8xf32>
    tpu.vector_store %arg4[%c0_12, %c1, %c0_13, %c0_14], %15 {strides = array<i32>} : memref<1x8x8x8xf32, #tpu.memory_space<vmem>>, vector<1x1x8x8xf32>,
    %16 = vector.extract_strided_slice %3 {offsets = [0, 256], sizes = [8, 128], strides = [1, 1]} : vector<8x1024xbf16> to vector<8x128xbf16>
    %cst_15 = arith.constant dense<0.000000e+00> : vector<8x8xf32>
    %17 = tpu.matmul %16, %5, %cst_15 {dimension_numbers = #tpu.dot_dimension_numbers<[1], [0], [0], [1], [0, 0, 1, 1], [], []>} : vector<8x128xbf16>, vector<128x8xbf16>, vector<8x8xf32> -> vector<8x8xf32>
    %c0_16 = arith.constant 0 : index
    %c2 = arith.constant 2 : index
    %c0_17 = arith.constant 0 : index
    %c0_18 = arith.constant 0 : index
    %18 = vector.load %arg4[%c0_16, %c2, %c0_17, %c0_18] : memref<1x8x8x8xf32, #tpu.memory_space<vmem>>, vector<1x1x8x8xf32>
    %19 = vector.shape_cast %18 : vector<1x1x8x8xf32> to vector<8x8xf32>
    %20 = vector.shape_cast %17 : vector<8x8xf32> to vector<1x1x8x8xf32>
    tpu.vector_store %arg4[%c0_16, %c2, %c0_17, %c0_18], %20 {strides = array<i32>} : memref<1x8x8x8xf32, #tpu.memory_space<vmem>>, vector<1x1x8x8xf32>,
    %21 = vector.extract_strided_slice %3 {offsets = [0, 384], sizes = [8, 128], strides = [1, 1]} : vector<8x1024xbf16> to vector<8x128xbf16>
    %cst_19 = arith.constant dense<0.000000e+00> : vector<8x8xf32>
    %22 = tpu.matmul %21, %5, %cst_19 {dimension_numbers = #tpu.dot_dimension_numbers<[1], [0], [0], [1], [0, 0, 1, 1], [], []>} : vector<8x128xbf16>, vector<128x8xbf16>, vector<8x8xf32> -> vector<8x8xf32>
    %c0_20 = arith.constant 0 : index
    %c3 = arith.constant 3 : index
    %c0_21 = arith.constant 0 : index
    %c0_22 = arith.constant 0 : index
    %23 = vector.load %arg4[%c0_20, %c3, %c0_21, %c0_22] : memref<1x8x8x8xf32, #tpu.memory_space<vmem>>, vector<1x1x8x8xf32>
    %24 = vector.shape_cast %23 : vector<1x1x8x8xf32> to vector<8x8xf32>
    %25 = vector.shape_cast %22 : vector<8x8xf32> to vector<1x1x8x8xf32>
    tpu.vector_store %arg4[%c0_20, %c3, %c0_21, %c0_22], %25 {strides = array<i32>} : memref<1x8x8x8xf32, #tpu.memory_space<vmem>>, vector<1x1x8x8xf32>,
    %26 = vector.extract_strided_slice %3 {offsets = [0, 512], sizes = [8, 128], strides = [1, 1]} : vector<8x1024xbf16> to vector<8x128xbf16>
    %cst_23 = arith.constant dense<0.000000e+00> : vector<8x8xf32>
    %27 = tpu.matmul %26, %5, %cst_23 {dimension_numbers = #tpu.dot_dimension_numbers<[1], [0], [0], [1], [0, 0, 1, 1], [], []>} : vector<8x128xbf16>, vector<128x8xbf16>, vector<8x8xf32> -> vector<8x8xf32>
    %c0_24 = arith.constant 0 : index
    %c4 = arith.constant 4 : index
    %c0_25 = arith.constant 0 : index
    %c0_26 = arith.constant 0 : index
    %28 = vector.load %arg4[%c0_24, %c4, %c0_25, %c0_26] : memref<1x8x8x8xf32, #tpu.memory_space<vmem>>, vector<1x1x8x8xf32>
    %29 = vector.shape_cast %28 : vector<1x1x8x8xf32> to vector<8x8xf32>
    %30 = vector.shape_cast %27 : vector<8x8xf32> to vector<1x1x8x8xf32>
    tpu.vector_store %arg4[%c0_24, %c4, %c0_25, %c0_26], %30 {strides = array<i32>} : memref<1x8x8x8xf32, #tpu.memory_space<vmem>>, vector<1x1x8x8xf32>,
    %31 = vector.extract_strided_slice %3 {offsets = [0, 640], sizes = [8, 128], strides = [1, 1]} : vector<8x1024xbf16> to vector<8x128xbf16>
    %cst_27 = arith.constant dense<0.000000e+00> : vector<8x8xf32>
    %32 = tpu.matmul %31, %5, %cst_27 {dimension_numbers = #tpu.dot_dimension_numbers<[1], [0], [0], [1], [0, 0, 1, 1], [], []>} : vector<8x128xbf16>, vector<128x8xbf16>, vector<8x8xf32> -> vector<8x8xf32>
    %c0_28 = arith.constant 0 : index
    %c5 = arith.constant 5 : index
    %c0_29 = arith.constant 0 : index
    %c0_30 = arith.constant 0 : index
    %33 = vector.load %arg4[%c0_28, %c5, %c0_29, %c0_30] : memref<1x8x8x8xf32, #tpu.memory_space<vmem>>, vector<1x1x8x8xf32>
    %34 = vector.shape_cast %33 : vector<1x1x8x8xf32> to vector<8x8xf32>
    %35 = vector.shape_cast %32 : vector<8x8xf32> to vector<1x1x8x8xf32>
    tpu.vector_store %arg4[%c0_28, %c5, %c0_29, %c0_30], %35 {strides = array<i32>} : memref<1x8x8x8xf32, #tpu.memory_space<vmem>>, vector<1x1x8x8xf32>,
    %36 = vector.extract_strided_slice %3 {offsets = [0, 768], sizes = [8, 128], strides = [1, 1]} : vector<8x1024xbf16> to vector<8x128xbf16>
    %cst_31 = arith.constant dense<0.000000e+00> : vector<8x8xf32>
    %37 = tpu.matmul %36, %5, %cst_31 {dimension_numbers = #tpu.dot_dimension_numbers<[1], [0], [0], [1], [0, 0, 1, 1], [], []>} : vector<8x128xbf16>, vector<128x8xbf16>, vector<8x8xf32> -> vector<8x8xf32>
    %c0_32 = arith.constant 0 : index
    %c6 = arith.constant 6 : index
    %c0_33 = arith.constant 0 : index
    %c0_34 = arith.constant 0 : index
    %38 = vector.load %arg4[%c0_32, %c6, %c0_33, %c0_34] : memref<1x8x8x8xf32, #tpu.memory_space<vmem>>, vector<1x1x8x8xf32>
    %39 = vector.shape_cast %38 : vector<1x1x8x8xf32> to vector<8x8xf32>
    %40 = vector.shape_cast %37 : vector<8x8xf32> to vector<1x1x8x8xf32>
    tpu.vector_store %arg4[%c0_32, %c6, %c0_33, %c0_34], %40 {strides = array<i32>} : memref<1x8x8x8xf32, #tpu.memory_space<vmem>>, vector<1x1x8x8xf32>,
    %41 = vector.extract_strided_slice %3 {offsets = [0, 896], sizes = [8, 128], strides = [1, 1]} : vector<8x1024xbf16> to vector<8x128xbf16>
    %cst_35 = arith.constant dense<0.000000e+00> : vector<8x8xf32>
    %42 = tpu.matmul %41, %5, %cst_35 {dimension_numbers = #tpu.dot_dimension_numbers<[1], [0], [0], [1], [0, 0, 1, 1], [], []>} : vector<8x128xbf16>, vector<128x8xbf16>, vector<8x8xf32> -> vector<8x8xf32>
    %c0_36 = arith.constant 0 : index
    %c7 = arith.constant 7 : index
    %c0_37 = arith.constant 0 : index
    %c0_38 = arith.constant 0 : index
    %43 = vector.load %arg4[%c0_36, %c7, %c0_37, %c0_38] : memref<1x8x8x8xf32, #tpu.memory_space<vmem>>, vector<1x1x8x8xf32>
    %44 = vector.shape_cast %43 : vector<1x1x8x8xf32> to vector<8x8xf32>
    %45 = vector.shape_cast %42 : vector<8x8xf32> to vector<1x1x8x8xf32>
    tpu.vector_store %arg4[%c0_36, %c7, %c0_37, %c0_38], %45 {strides = array<i32>} : memref<1x8x8x8xf32, #tpu.memory_space<vmem>>, vector<1x1x8x8xf32>,
    return
  }
  func.func @transform_0(%arg0: i32) -> (i32, i32) {
    %c0_i32 = arith.constant 0 : i32
    %c0_i32_0 = arith.constant 0 : i32
    return %arg0, %c0_i32 : i32, i32
  }
  func.func @transform_1(%arg0: i32) -> (i32, i32) {
    %c0_i32 = arith.constant 0 : i32
    %c0_i32_0 = arith.constant 0 : i32
    %c0_i32_1 = arith.constant 0 : i32
    return %c0_i32, %c0_i32_0 : i32, i32
  }
  func.func @transform_2(%arg0: i32) -> (i32, i32, i32) {
    %c0_i32 = arith.constant 0 : i32
    %c0_i32_0 = arith.constant 0 : i32
    %c0_i32_1 = arith.constant 0 : i32
    return %arg0, %c0_i32, %c0_i32_0 : i32, i32, i32
  }
  func.func @transform_3(%arg0: i32) -> (i32, i32, i32, i32) {
    %c0_i32 = arith.constant 0 : i32
    %c0_i32_0 = arith.constant 0 : i32
    %c0_i32_1 = arith.constant 0 : i32
    %c0_i32_2 = arith.constant 0 : i32
    return %arg0, %c0_i32, %c0_i32_0, %c0_i32_1 : i32, i32, i32, i32
  }
}

</mosaic_0001>

<bundles_post_ra>
// kernel: word_tag_parser_forward.7
= control target key start
LH: loop header
LB: loop body
LE: loop exit
PB: predicated region body
PF: predicated region fallthrough
CT: control target
= control target key end

     0   :  { %v491_v3 = vmov 0   ;;  %vm208_vm0 = vcmask 392192   ;;  %v43_v50 = vlaneseq  ;;  %s622_s1 = inlined_call_operand.vmem [shape: bf16[48,1024], index: 1, kind: input, shape index: {}]   ;;  %s623_s0 = inlined_call_operand.vmem [shape: bf16[16,48], index: 0, kind: input, shape index: {}]   ;;  %s624_s2 = inlined_call_operand.vmem [shape: f32[1,1024], index: 2, kind: input, shape index: {}]   ;;  %s625_s3 = inlined_call_operand.vmem [shape: bf16[16,1024], index: 3, kind: output, shape index: {}]  }
   0x1   :  { %v17_v0 = vld [vmem:[%s622_s1] sm:$0xff]  ;;  %v18_v2 = vld [vmem:[%s622_s1 + $0x8] sm:$0xff]  ;;  %244 = vmatprep.mubr.bf16.mxu0 %v491_v3  ;;  %287 = vmatprep.mubr.bf16.mxu1 %v491_v3  ;;  %v19_v23 = vld [vmem:[%s622_s1 + $0x10] sm:$0xff] }
   0x2   :  { %v21_v1 = vld [vmem:[%s622_s1 + $0x20] sm:$0xff]  ;;  %v22_v5 = vld [vmem:[%s622_s1 + $0x28] sm:$0xff]  ;;  %v23_v24 = vld [vmem:[%s622_s1 + $0x30] sm:$0xff]  ;;  %v44_v51 = vshrl.u32 %v43_v50, 7 }
   0x3   :  { %v446_v4 = vcombine.high %v17_v0, %v21_v1  ;;  %v445_v6 = vcombine.low %v17_v0, %v21_v1  ;;  %v25_v7 = vld [vmem:[%s622_s1 + $0x40] sm:$0xff]  ;;  %v448_v9 = vcombine.high %v18_v2, %v22_v5  ;;  %v447_v10 = vcombine.low %v18_v2, %v22_v5  ;;  %v26_v12 = vld [vmem:[%s622_s1 + $0x48] sm:$0xff]  ;;  %v20_v25 = vld [vmem:[%s622_s1 + $0x18] sm:$0xff] }
   0x4   :  { %v29_v8 = vld [vmem:[%s622_s1 + $0x60] sm:$0xff]  ;;  %v30_v13 = vld [vmem:[%s622_s1 + $0x68] sm:$0xff]  ;;  %v24_v26 = vld [vmem:[%s622_s1 + $0x38] sm:$0xff]  ;;  %v450_v29 = vcombine.high %v19_v23, %v23_v24  ;;  %v449_v36 = vcombine.low %v19_v23, %v23_v24  ;;  %v45_v52 = vsub.s32 0, %v44_v51  ;;  %v53_v54 = vsub.s32 2, %v44_v51 }
   0x5   :  { %v454_v11 = vcombine.high %v25_v7, %v29_v8  ;;  %v33_v14 = vld [vmem:[%s622_s1 + $0x80] sm:$0xff]  ;;  %212 = vmatprep.subr.bf16.mxu0 %v446_v4  ;;  %v456_v15 = vcombine.high %v26_v12, %v30_v13  ;;  %v34_v17 = vld [vmem:[%s622_s1 + $0x88] sm:$0xff]  ;;  %255 = vmatprep.subr.bf16.mxu1 %v448_v9  ;;  %v453_v19 = vcombine.low %v25_v7, %v29_v8  ;;  %v27_v31 = vld [vmem:[%s622_s1 + $0x50] sm:$0xff]  ;;  %v49_v55 = vsub.s32 1, %v44_v51 }
   0x6   :  { %v37_v16 = vld [vmem:[%s622_s1 + $0xa0] sm:$0xff]  ;;  %v38_v18 = vld [vmem:[%s622_s1 + $0xa8] sm:$0xff]  ;;  %213 = vmatpush1.bf16.msra.mxu0 %v445_v6  ;;  %256 = vmatpush1.bf16.msra.mxu1 %v447_v10  ;;  %v455_v20 = vcombine.low %v26_v12, %v30_v13  ;;  %v452_v30 = vcombine.high %v20_v25, %v24_v26  ;;  %v31_v32 = vld [vmem:[%s622_s1 + $0x70] sm:$0xff]  ;;  %v451_v37 = vcombine.low %v20_v25, %v24_v26  ;;  %v57_v56 = vsub.s32 3, %v44_v51 }
   0x7   :  { %214 = vmatprep.subr.bf16.mxu0 %v454_v11  ;;  %v462_v21 = vcombine.high %v33_v14, %v37_v16  ;;  %257 = vmatprep.subr.bf16.mxu1 %v456_v15  ;;  %v464_v22 = vcombine.high %v34_v17, %v38_v18  ;;  %v461_v27 = vcombine.low %v33_v14, %v37_v16  ;;  %v490_v33 = vld [vmem:[%s623_s0] sm:$0xff]   ;;  %v28_v34 = vld [vmem:[%s622_s1 + $0x58] sm:$0xff]  ;;  %v35_v40 = vld [vmem:[%s622_s1 + $0x90] sm:$0xff]  ;;  %v61_v15 = vsub.s32 4, %v44_v51 }
   0x8   :  { %v463_v28 = vcombine.low %v34_v17, %v38_v18  ;;  %v32_v35 = vld [vmem:[%s622_s1 + $0x78] sm:$0xff]  ;;  %v458_v38 = vcombine.high %v27_v31, %v31_v32  ;;  %v39_v41 = vld [vmem:[%s622_s1 + $0xb0] sm:$0xff]  ;;  %v457_v44 = vcombine.low %v27_v31, %v31_v32  ;;  %v41_v53 = vld [vmem:[%s624_s2] sm:$0xff]  ;;  %v69_v17 = vsub.s32 6, %v44_v51 }
   0x9   :  { %v460_v39 = vcombine.high %v28_v34, %v32_v35  ;;  %v36_v42 = vld [vmem:[%s622_s1 + $0x98] sm:$0xff]  ;;  %v459_v45 = vcombine.low %v28_v34, %v32_v35  ;;  %v466_v46 = vcombine.high %v35_v40, %v39_v41  ;;  %v465_v48 = vcombine.low %v35_v40, %v39_v41 }
   0xa   :  { %215 = vmatpush1.bf16.msra.mxu0 %v453_v19  ;;  %258 = vmatpush1.bf16.msra.mxu1 %v455_v20  ;;  %v40_v43 = vld [vmem:[%s622_s1 + $0xb8] sm:$0xff]  ;;  %v46_v57 = vrot.slane %v41_v53, %v45_v52  ;;  %v54_v58 = vrot.slane %v41_v53, %v53_v54  ;;  %v50_v59 = vrot.slane %v41_v53, %v49_v55  ;;  %v65_v18 = vsub.s32 5, %v44_v51 }
   0xb   :  { %216 = vmatprep.subr.bf16.mxu0 %v462_v21  ;;  %259 = vmatprep.subr.bf16.mxu1 %v464_v22  ;;  %v468_v47 = vcombine.high %v36_v42, %v40_v43  ;;  %v467_v49 = vcombine.low %v36_v42, %v40_v43  ;;  %v58_v60 = vrot.slane %v41_v53, %v57_v56  ;;  %v73_v20 = vsub.s32 7, %v44_v51 }
   0xc   :  { %v62_v21 = vrot.slane %v41_v53, %v61_v15  ;;  %v70_v22 = vrot.slane %v41_v53, %v69_v17  ;;  %v66_v23 = vrot.slane %v41_v53, %v65_v18 }
   0xd   :  { %v74_v24 = vrot.slane %v41_v53, %v73_v20 }
   0xe   :  { %217 = vmatpush1.bf16.msra.mxu0 %v461_v27  ;;  %260 = vmatpush1.bf16.msra.mxu1 %v463_v28 }
   0xf   :  { %298 = vmatprep.subr.bf16.mxu0 %v450_v29  ;;  %341 = vmatprep.subr.bf16.mxu1 %v452_v30 }
  0x11   :  { %469 = vmatmul.mubr.msk.bf16.vlgmr.msra.gmra.mrb[0].mxu0 %vm208_vm0, %v490_v33  ;;  %470 = vmatmul.mubr.msk.bf16.vlgmr.msra.gmra.mrb[0].mxu1 %vm208_vm0, %v490_v33 }
  0x12   :  { %299 = vmatpush1.bf16.msra.mxu0 %v449_v36  ;;  %342 = vmatpush1.bf16.msra.mxu1 %v451_v37 }
  0x13   :  { %300 = vmatprep.subr.bf16.mxu0 %v458_v38  ;;  %343 = vmatprep.subr.bf16.mxu1 %v460_v39 }
  0x14   :  { %330 = vmatprep.mubr.bf16.mxu0 %v491_v3  ;;  %373 = vmatprep.mubr.bf16.mxu1 %v491_v3 }
  0x16   :  { %301 = vmatpush1.bf16.msra.mxu0 %v457_v44  ;;  %344 = vmatpush1.bf16.msra.mxu1 %v459_v45 }
  0x17   :  { %302 = vmatprep.subr.bf16.mxu0 %v466_v46  ;;  %345 = vmatprep.subr.bf16.mxu1 %v468_v47 }
  0x1a   :  { %303 = vmatpush1.bf16.msra.mxu0 %v465_v48  ;;  %346 = vmatpush1.bf16.msra.mxu1 %v467_v49 }
  0x1d   :  { %471 = vmatmul.mubr.msk.bf16.vlgmr.msra.gmra.mrb[4].mxu0 %vm208_vm0, %v490_v33  ;;  %472 = vmatmul.mubr.msk.bf16.vlgmr.msra.gmra.mrb[4].mxu1 %vm208_vm0, %v490_v33 }
  0xe4   :  { %v246_v61 = vpop.f32.mrb[0].mxu0  ;;  %v289_v63 = vpop.f32.mrb[0].mxu1 }
  0xe5   :  { %v247_v62 = vadd.f32 %v246_v61, %v46_v57  ;;  %v248_v0 = vpop.f32.mrb[1].mxu0  ;;  %v290_v1 = vadd.f32 %v289_v63, %v54_v58  ;;  %v291_v3 = vpop.f32.mrb[1].mxu1 }
  0xe6   :  { %v249_v2 = vadd.f32 %v248_v0, %v50_v59  ;;  %v250_v4 = vpop.f32.mrb[2].mxu0  ;;  %v292_v5 = vadd.f32 %v291_v3, %v58_v60  ;;  %v293_v7 = vpop.f32.mrb[2].mxu1 }
  0xe7   :  { %v251_v6 = vadd.f32 %v250_v4, %v46_v57  ;;  %v252_v8 = vpop.f32.mrb[3].mxu0  ;;  %v294_v10 = vadd.f32 %v293_v7, %v54_v58  ;;  %v295_v12 = vpop.f32.mrb[3].mxu1 }
  0xe8   :  { %v481_v9 = vpack.c.bf16 %v249_v2, %v247_v62  ;;  %v253_v11 = vadd.f32 %v252_v8, %v50_v59  ;;  %v482_v13 = vpack.c.bf16 %v292_v5, %v290_v1  ;;  %v296_v14 = vadd.f32 %v295_v12, %v58_v60 }
  0xea   :  { %432 = vst [vmem:[%s625_s3] sm:$0xff] %v481_v9  ;;  %v485_v16 = vpack.c.bf16 %v253_v11, %v251_v6  ;;  %433 = vst [vmem:[%s625_s3 + $0x8] sm:$0xff] %v482_v13  ;;  %v486_v19 = vpack.c.bf16 %v296_v14, %v294_v10 }
  0xec   :  { %436 = vst [vmem:[%s625_s3 + $0x20] sm:$0xff] %v485_v16  ;;  %437 = vst [vmem:[%s625_s3 + $0x28] sm:$0xff] %v486_v19 }
  0xf0   :  { %v332_v25 = vpop.f32.mrb[4].mxu0  ;;  %v375_v27 = vpop.f32.mrb[4].mxu1 }
  0xf1   :  { %v333_v26 = vadd.f32 %v332_v25, %v62_v21  ;;  %v334_v28 = vpop.f32.mrb[5].mxu0  ;;  %v376_v29 = vadd.f32 %v375_v27, %v70_v22  ;;  %v377_v31 = vpop.f32.mrb[5].mxu1 }
  0xf2   :  { %v335_v30 = vadd.f32 %v334_v28, %v66_v23  ;;  %v336_v32 = vpop.f32.mrb[6].mxu0  ;;  %v378_v33 = vadd.f32 %v377_v31, %v74_v24  ;;  %v379_v35 = vpop.f32.mrb[6].mxu1 }
  0xf3   :  { %v337_v34 = vadd.f32 %v336_v32, %v62_v21  ;;  %v338_v36 = vpop.f32.mrb[7].mxu0  ;;  %v380_v38 = vadd.f32 %v379_v35, %v70_v22  ;;  %v381_v40 = vpop.f32.mrb[7].mxu1 }
  0xf4   :  { %v483_v37 = vpack.c.bf16 %v335_v30, %v333_v26  ;;  %v339_v39 = vadd.f32 %v338_v36, %v66_v23  ;;  %v484_v41 = vpack.c.bf16 %v378_v33, %v376_v29  ;;  %v382_v42 = vadd.f32 %v381_v40, %v74_v24 }
  0xf6   :  { %434 = vst [vmem:[%s625_s3 + $0x10] sm:$0xff] %v483_v37  ;;  %v487_v43 = vpack.c.bf16 %v339_v39, %v337_v34  ;;  %435 = vst [vmem:[%s625_s3 + $0x18] sm:$0xff] %v484_v41  ;;  %v488_v44 = vpack.c.bf16 %v382_v42, %v380_v38 }
  0xf8   :  { %438 = vst [vmem:[%s625_s3 + $0x30] sm:$0xff] %v487_v43  ;;  %439 = vst [vmem:[%s625_s3 + $0x38] sm:$0xff] %v488_v44 }

// kernel: word_tag_parser_forward.8
= control target key start
LH: loop header
LB: loop body
LE: loop exit
PB: predicated region body
PF: predicated region fallthrough
CT: control target
= control target key end

     0   :  { %12 = vsyncpa [#allocation9], 0  ;;  %s1407_s0 = inlined_call_operand.<no memory space> [shape: s32[1], index: 0, kind: input, shape index: {}]   ;;  %s1408_s1 = inlined_call_operand.hbm [shape: bf16[8,2,1024], index: 1, kind: input, shape index: {}, may-alias: {1,2}]   ;;  %s1409_s2 = inlined_call_operand.hbm [shape: bf16[8,2,1024], index: 2, kind: input, shape index: {}, may-alias: {1,2}]   ;;  %s1410_s3 = inlined_call_operand.hbm [shape: f32[8,2,1], index: 3, kind: input, shape index: {}]   ;;  %s1411_s4 = inlined_call_operand.hbm [shape: bf16[128,512], index: 4, kind: input, shape index: {}]   ;;  %s1412_s5 = inlined_call_operand.hbm [shape: bf16[128,512], index: 5, kind: input, shape index: {}]   ;;  %s1413_s6 = inlined_call_operand.hbm [shape: bf16[8,2,256], index: 6, kind: output, shape index: {}]  }
   0x1   :  { %13 = vsyncpa [#allocation12], 0 }
   0x2   :  { %14 = vsyncpa [#allocation15], 0 }
   0x3   :  { %15 = vsyncpa [#allocation10], 0  ;;  %s1248_s23 = scalar_lea.hbm %s1409_s2, 64  ;;  %s1193_s24 = smov [#allocation11]  }
   0x4   :  { %s34_s25 = sshll.u32 %s1193_s24, 4  ;;  %s1194_s26 = smov [#allocation14]   ;;  %s35_s25 = int_to_ptr.vmem [resolvable:$true] %s34_s25 }
   0x5   :  { %s58_s27 = sshll.u32 %s1194_s26, 4  ;;  %s1066_s30 = scalar_lea.hbm %s1409_s2, 576  ;;  %s1250_s27 = int_to_ptr.vmem [resolvable:$true] %s58_s27 }
   0x6   :  { %p1043_p0 = scmp.ne.s32.totalorder %s1248_s23, %s1066_s30  ;;  %s1044_s9 = scalar_lea.hbm %s1409_s2, 1024 }
   0x7   :  { %p1045_p1 = scmp.lt.u32.totalorder %s1248_s23, %s1409_s2  ;;  %p1046_p2 = scmp.lt.u32.totalorder %s1044_s9, %s1066_s30 }
   0x8   :  { %p1048_p4 = scmp.lt.u32.totalorder %s1066_s30, %s1248_s23 }
   0x9   :  { %p1047_p3 = por %p1046_p2, %p1045_p1 }
   0xb   :  { %p1049_p5 = por %p1048_p4, %p1047_p3 }
   0xd   :  { %p1050_p6 = pnand %p1049_p5, %p1043_p0 }
   0xf   :  { %1053 = shalt.err (!%p1050_p6)
}
  0x10   :  { %s1054_s12 = scalar_lea.vmem %s35_s25, 512  ;;  %p1059_p8 = scmp.lt.s32.totalorder %s35_s25, %s35_s25 }
  0x11   :  { %p1055_p7 = scmp.ne.s32.totalorder %s35_s25, %s1054_s12  ;;  %p1060_p9 = scmp.lt.s32.totalorder %s1054_s12, %s1054_s12 }
  0x13   :  { %p1061_p10 = por %p1060_p9, %p1059_p8 }
  0x15   :  { %p1062_p11 = pnand %p1061_p10, %p1055_p7 }
  0x17   :  { %1065 = shalt.err (!%p1062_p11)
}
  0x18   :  { %s1195_s13 = smov 128   ;;  %s1196_s14 = smov 64  }
  0x19   :  { %s1197_s15 = smov 4   ;;  %s1067_s17 = scalar_lea.hbm %s1411_s4, 4096 }
  0x1a   :  { %40 = dma.hbm_to_vmem [thread:$0]  %s1248_s23, 512, %s35_s25, [#allocation12], %s1195_s13, %s1196_s14, %s1197_s15  }
  0x1b   :  { %p1068_p12 = scmp.ne.s32.totalorder %s1411_s4, %s1067_s17  ;;  %p1071_p13 = scmp.lt.u32.totalorder %s1067_s17, %s1411_s4 }
  0x1d   :  { %p1073_p0 = pnand %p1071_p13, %p1068_p12 }
  0x1f   :  { %1076 = shalt.err (!%p1073_p0)
}
  0x20   :  { %s1077_s22 = scalar_lea.vmem %s1250_s27, 4096  ;;  %p1082_p2 = scmp.lt.s32.totalorder %s1250_s27, %s1250_s27 }
  0x21   :  { %p1078_p1 = scmp.ne.s32.totalorder %s1250_s27, %s1077_s22  ;;  %p1083_p3 = scmp.lt.s32.totalorder %s1077_s22, %s1077_s22 }
  0x23   :  { %p1084_p4 = por %p1083_p3, %p1082_p2 }
  0x25   :  { %p1085_p5 = pnand %p1084_p4, %p1078_p1 }
  0x27   :  { %1088 = shalt.err (!%p1085_p5)
}
  0x28   :  { %s1198_s23 = smov 256   ;;  %s1199_s24 = smov 16  }
  0x29   :  { %64 = dma.hbm_to_vmem [thread:$0]  %s1411_s4, 4096, %s1250_s27, [#allocation15], %s1198_s23, %s1198_s23, %s1199_s24  }
  0x2a   :  { %s1200_s28 = smov [#allocation8]   ;;  %s1201_s30 = smov [#allocation13]  }
  0x2b   :  { %s21_s29 = sshll.u32 %s1200_s28, 4  ;;  %s46_s7 = sshll.u32 %s1201_s30, 4  ;;  %s22_s29 = int_to_ptr.vmem [resolvable:$true] %s21_s29  ;;  %s1288_s7 = int_to_ptr.vmem [resolvable:$true] %s46_s7 }
  0x2c   :  { %s1089_s10 = scalar_lea.hbm %s1408_s1, 512  ;;  %s1091_s17 = scalar_lea.hbm %s1408_s1, 1024 }
  0x2d   :  { %p1090_p6 = scmp.ne.s32.totalorder %s1408_s1, %s1089_s10  ;;  %p1092_p7 = scmp.lt.u32.totalorder %s1091_s17, %s1089_s10 }
  0x2e   :  { %p1093_p8 = scmp.lt.u32.totalorder %s1089_s10, %s1408_s1 }
  0x30   :  { %p1094_p9 = por %p1093_p8, %p1092_p7 }
  0x32   :  { %p1095_p10 = pnand %p1094_p9, %p1090_p6 }
  0x34   :  { %1098 = shalt.err (!%p1095_p10)
}
  0x35   :  { %s1099_s18 = scalar_lea.vmem %s22_s29, 512  ;;  %p1104_p12 = scmp.lt.s32.totalorder %s22_s29, %s22_s29 }
  0x36   :  { %p1100_p11 = scmp.ne.s32.totalorder %s22_s29, %s1099_s18  ;;  %p1105_p13 = scmp.lt.s32.totalorder %s1099_s18, %s1099_s18 }
  0x38   :  { %p1106_p0 = por %p1105_p13, %p1104_p12 }
  0x3a   :  { %p1107_p1 = pnand %p1106_p0, %p1100_p11 }
  0x3c   :  { %1110 = shalt.err (!%p1107_p1)
}
  0x3d   :  { %27 = dma.hbm_to_vmem [thread:$0]  %s1408_s1, 512, %s22_s29, [#allocation9], %s1195_s13, %s1196_s14, %s1197_s15  }
  0x3e   :  { %s1111_s25 = scalar_lea.hbm %s1410_s3, 256 }
  0x3f   :  { %p1112_p2 = scmp.ne.s32.totalorder %s1410_s3, %s1111_s25  ;;  %p1115_p3 = scmp.lt.u32.totalorder %s1111_s25, %s1410_s3 }
  0x41   :  { %p1117_p4 = pnand %p1115_p3, %p1112_p2 }
  0x43   :  { %1120 = shalt.err (!%p1117_p4)
}
  0x44   :  { %s1121_s9 = scalar_lea.vmem %s1288_s7, 256  ;;  %p1126_p6 = scmp.lt.s32.totalorder %s1288_s7, %s1288_s7 }
  0x45   :  { %p1122_p5 = scmp.ne.s32.totalorder %s1288_s7, %s1121_s9  ;;  %p1127_p7 = scmp.lt.s32.totalorder %s1121_s9, %s1121_s9 }
  0x47   :  { %p1128_p8 = por %p1127_p7, %p1126_p6 }
  0x49   :  { %p1129_p9 = pnand %p1128_p8, %p1122_p5 }
  0x4b   :  { %1132 = shalt.err (!%p1129_p9)
}
  0x4c   :  { %s1202_s1 = smov 32   ;;  %s1203_s13 = smov 2  }
  0x4d   :  { %52 = dma.hbm_to_vmem [thread:$0]  %s1410_s3, 256, %s1288_s7, [#allocation12], %s1202_s1, %s1202_s1, %s1203_s13  }
  0x4e   :  { %s1204_s29 = smov [#allocation16]   ;;  %s1133_s2 = scalar_lea.hbm %s1412_s5, 4096 }
  0x4f   :  { %s70_s10 = sshll.u32 %s1204_s29, 4  ;;  %p1134_p10 = scmp.ne.s32.totalorder %s1412_s5, %s1133_s2  ;;  %s71_s10 = int_to_ptr.vmem [resolvable:$true] %s70_s10 }
  0x50   :  { %p1137_p11 = scmp.lt.u32.totalorder %s1133_s2, %s1412_s5 }
  0x52   :  { %p1139_p12 = pnand %p1137_p11, %p1134_p10 }
  0x54   :  { %1142 = shalt.err (!%p1139_p12)
}
  0x55   :  { %s1143_s18 = scalar_lea.vmem %s71_s10, 4096  ;;  %p1148_p0 = scmp.lt.s32.totalorder %s71_s10, %s71_s10 }
  0x56   :  { %p1144_p13 = scmp.ne.s32.totalorder %s71_s10, %s1143_s18  ;;  %p1149_p1 = scmp.lt.s32.totalorder %s1143_s18, %s1143_s18 }
  0x58   :  { %p1150_p2 = por %p1149_p1, %p1148_p0 }
  0x5a   :  { %p1151_p3 = pnand %p1150_p2, %p1144_p13 }
  0x5c   :  { %1154 = shalt.err (!%p1151_p3)
}
  0x5d   :  { %76 = dma.hbm_to_vmem [thread:$0]  %s1412_s5, 4096, %s71_s10, [#allocation15], %s1198_s23, %s1198_s23, %s1199_s24  }
  0x5e   :  { %1181 = dma.done.wait [#allocation9], 512  }
  0x5f   :  { %1182 = vsyncadd [#allocation9], 4294966784 }
  0x60   :  { %1183 = dma.done.wait [#allocation12], 768  }
  0x61   :  { %1184 = vsyncadd [#allocation12], 4294966528 }
  0x62   :  { %1185 = dma.done.wait [#allocation15], 8192  }
  0x63   :  { %1186 = vsyncadd [#allocation15], 4294959104  ;;  %v1205_v0 = vmov 0   ;;  %v1206_v1 = vmov 0.0   ;;  %p832_p4 = scmp.le.s32.totalorder %s1407_s0, 0 }
  0x64   :  { %94 = vst [vmem:[#allocation17] sm:$0x3] %v1205_v0  ;;  %95 = vst [vmem:[#allocation17 + $0x2] sm:$0x3] %v1205_v0  ;;  %s1346_s24 = smov (!%p832_p4), 0  }
  0x65   :  { %96 = vst [vmem:[#allocation17 + $0x4] sm:$0x3] %v1205_v0  ;;  %97 = vst [vmem:[#allocation17 + $0x6] sm:$0x3] %v1205_v0  ;;  %829 = sbr.rel (%p832_p4) target bundleno = 445 (0x1bd), region = 68 }
  0x66   :  { %98 = vst [vmem:[#allocation17 + $0x8] sm:$0x3] %v1205_v0  ;;  %99 = vst [vmem:[#allocation17 + $0xa] sm:$0x3] %v1205_v0 }
  0x67   :  { %100 = vst [vmem:[#allocation17 + $0xc] sm:$0x3] %v1205_v0  ;;  %101 = vst [vmem:[#allocation17 + $0xe] sm:$0x3] %v1205_v0 }
  0x68   :  { %102 = vst [vmem:[#allocation2] sm:$0x3] %v1206_v1  ;;  %103 = vst [vmem:[#allocation3] sm:$0x3] %v1206_v1 }
  0x69   :  { %104 = vst [vmem:[#allocation4] sm:$0x3] %v1206_v1  ;;  %105 = vst [vmem:[#allocation5] sm:$0x3] %v1206_v1 }
  0x6c LB: > { %v930_v2 = vld [vmem:[#allocation14 + $0x4] ss:$16 sps:$4 sm:$0xff]   ;;  %v932_v3 = vld [vmem:[#allocation14 + $0xc] ss:$16 sps:$4 sm:$0xff]   ;;  %v1207_v4 = vmov 0   ;;  %s833_s21 = sadd.s32 4294967295, %s1407_s0  ;;  %s1191_s24 = sphi %s1346_s24, %s109_s24  }
  0x6d   : > { %345 = vmatprep.mubr.bf16.mxu0 %v1207_v4  ;;  %386 = vmatprep.mubr.bf16.mxu1 %v1207_v4  ;;  %v934_v5 = vld [vmem:[#allocation14] ss:$16 sps:$4 sm:$0xff]   ;;  %v935_v6 = vld [vmem:[#allocation14 + $0x8] ss:$16 sps:$4 sm:$0xff]   ;;  %v936_v7 = vld [vmem:[#allocation14 + $0x24] ss:$16 sps:$4 sm:$0xff]   ;;  %s1362_s22 = ssub.s32 %s833_s21, %s1191_s24 }
  0x6e   : > { %313 = vmatprep.subr.bf16.mxu0 %v930_v2  ;;  %929 = vset.pattern.permute.xlu0 %v1207_v4  ;;  %v938_v8 = vld [vmem:[#allocation14 + $0x2c] ss:$16 sps:$4 sm:$0xff]   ;;  %v940_v9 = vld [vmem:[#allocation14 + $0x20] ss:$16 sps:$4 sm:$0xff]   ;;  %v941_v10 = vld [vmem:[#allocation14 + $0x28] ss:$16 sps:$4 sm:$0xff]  }
  0x6f   : > { %354 = vmatprep.subr.bf16.mxu1 %v932_v3  ;;  %314 = vmatpush1.bf16.msra.mxu0 %v934_v5  ;;  %v942_v11 = vld [vmem:[#allocation14 + $0x44] ss:$16 sps:$4 sm:$0xff]   ;;  %v944_v12 = vld [vmem:[#allocation14 + $0x4c] ss:$16 sps:$4 sm:$0xff]   ;;  %v946_v13 = vld [vmem:[#allocation14 + $0x40] ss:$16 sps:$4 sm:$0xff]  }
  0x70   : > { %355 = vmatpush1.bf16.msra.mxu1 %v935_v6  ;;  %315 = vmatprep.subr.bf16.mxu0 %v936_v7  ;;  %v947_v14 = vld [vmem:[#allocation14 + $0x48] ss:$16 sps:$4 sm:$0xff]   ;;  %v948_v15 = vld [vmem:[#allocation14 + $0x64] ss:$16 sps:$4 sm:$0xff]   ;;  %v950_v16 = vld [vmem:[#allocation14 + $0x6c] ss:$16 sps:$4 sm:$0xff]  }
  0x71   : > { %356 = vmatprep.subr.bf16.mxu1 %v938_v8  ;;  %v952_v17 = vld [vmem:[#allocation14 + $0x60] ss:$16 sps:$4 sm:$0xff]   ;;  %v953_v18 = vld [vmem:[#allocation14 + $0x68] ss:$16 sps:$4 sm:$0xff]   ;;  %v954_v19 = vld [vmem:[#allocation14 + $0x84] ss:$16 sps:$4 sm:$0xff]  }
  0x72   : > { %v956_v20 = vld [vmem:[#allocation14 + $0x8c] ss:$16 sps:$4 sm:$0xff]   ;;  %v958_v21 = vld [vmem:[#allocation14 + $0x80] ss:$16 sps:$4 sm:$0xff]   ;;  %v959_v22 = vld [vmem:[#allocation14 + $0x88] ss:$16 sps:$4 sm:$0xff]  }
  0x73   : > { %316 = vmatpush1.bf16.msra.mxu0 %v940_v9  ;;  %v960_v23 = vld [vmem:[#allocation14 + $0xa4] ss:$16 sps:$4 sm:$0xff]   ;;  %v962_v24 = vld [vmem:[#allocation14 + $0xac] ss:$16 sps:$4 sm:$0xff]   ;;  %v964_v25 = vld [vmem:[#allocation14 + $0xa0] ss:$16 sps:$4 sm:$0xff]  }
  0x74   : > { %357 = vmatpush1.bf16.msra.mxu1 %v941_v10  ;;  %317 = vmatprep.subr.bf16.mxu0 %v942_v11  ;;  %v965_v26 = vld [vmem:[#allocation14 + $0xa8] ss:$16 sps:$4 sm:$0xff]   ;;  %v966_v27 = vld [vmem:[#allocation14 + $0xc4] ss:$16 sps:$4 sm:$0xff]   ;;  %v968_v28 = vld [vmem:[#allocation14 + $0xcc] ss:$16 sps:$4 sm:$0xff]  }
  0x75   : > { %358 = vmatprep.subr.bf16.mxu1 %v944_v12  ;;  %v970_v29 = vld [vmem:[#allocation14 + $0xc0] ss:$16 sps:$4 sm:$0xff]   ;;  %v971_v30 = vld [vmem:[#allocation14 + $0xc8] ss:$16 sps:$4 sm:$0xff]   ;;  %v972_v31 = vld [vmem:[#allocation14 + $0xe4] ss:$16 sps:$4 sm:$0xff]  }
  0x76   : > { %v974_v32 = vld [vmem:[#allocation14 + $0xec] ss:$16 sps:$4 sm:$0xff]   ;;  %v976_v33 = vld [vmem:[#allocation14 + $0xe0] ss:$16 sps:$4 sm:$0xff]   ;;  %v977_v34 = vld [vmem:[#allocation14 + $0xe8] ss:$16 sps:$4 sm:$0xff]  }
  0x77   : > { %318 = vmatpush1.bf16.msra.mxu0 %v946_v13  ;;  %v1354_v35 = vld [vmem:[#allocation2] sm:$0x3]  ;;  %v980_v36 = vld [vmem:[#allocation16 + $0x4] ss:$16 sps:$4 sm:$0xff]   ;;  %v983_v37 = vld [vmem:[#allocation16 + $0xc] ss:$16 sps:$4 sm:$0xff]   ;;  %v404_v13 = vlaneseq }
  0x78   : > { %359 = vmatpush1.bf16.msra.mxu1 %v947_v14  ;;  %319 = vmatprep.subr.bf16.mxu0 %v948_v15  ;;  %v120_v38 = vpack.c.bf16 %v1354_v35, %v1354_v35  ;;  %v978_v39 = vld [vmem:[#allocation16] ss:$16 sps:$4 sm:$0xff]   ;;  %v981_v40 = vld [vmem:[#allocation16 + $0x8] ss:$16 sps:$4 sm:$0xff]   ;;  %v986_v41 = vld [vmem:[#allocation16 + $0x24] ss:$16 sps:$4 sm:$0xff]  }
  0x79   : > { %360 = vmatprep.subr.bf16.mxu1 %v950_v16  ;;  %v989_v42 = vld [vmem:[#allocation16 + $0x2c] ss:$16 sps:$4 sm:$0xff]   ;;  %v984_v43 = vld [vmem:[#allocation16 + $0x20] ss:$16 sps:$4 sm:$0xff]   ;;  %v987_v44 = vld [vmem:[#allocation16 + $0x28] ss:$16 sps:$4 sm:$0xff]  }
  0x7a   : > { %v992_v45 = vld [vmem:[#allocation16 + $0x44] ss:$16 sps:$4 sm:$0xff]   ;;  %v995_v46 = vld [vmem:[#allocation16 + $0x4c] ss:$16 sps:$4 sm:$0xff]   ;;  %s868_s25 = sshll.u32 %s1191_s24, 1  ;;  %s903_s26 = sshll.u32 %s1362_s22, 1 }
  0x7b   : > { %320 = vmatpush1.bf16.msra.mxu0 %v952_v17  ;;  %v990_v47 = vld [vmem:[#allocation16 + $0x40] ss:$16 sps:$4 sm:$0xff]   ;;  %v993_v48 = vld [vmem:[#allocation16 + $0x48] ss:$16 sps:$4 sm:$0xff]   ;;  %v998_v49 = vld [vmem:[#allocation16 + $0x64] ss:$16 sps:$4 sm:$0xff]  }
  0x7c   : > { %361 = vmatpush1.bf16.msra.mxu1 %v953_v18  ;;  %321 = vmatprep.subr.bf16.mxu0 %v954_v19  ;;  %v1001_v50 = vld [vmem:[#allocation16 + $0x6c] ss:$16 sps:$4 sm:$0xff]   ;;  %v996_v51 = vld [vmem:[#allocation16 + $0x60] ss:$16 sps:$4 sm:$0xff]   ;;  %s439_s28 = scalar_lea.vmem [#allocation13], %s868_s25  ;;  %s780_s30 = scalar_lea.vmem [#allocation13], %s903_s26 }
  0x7d   : > { %362 = vmatprep.subr.bf16.mxu1 %v956_v20  ;;  %v440_v52 = vld [vmem:[%s439_s28] sm:$0x3]  ;;  %v1004_v55 = vld [vmem:[#allocation16 + $0x84] ss:$16 sps:$4 sm:$0xff]   ;;  %v1007_v56 = vld [vmem:[#allocation16 + $0x8c] ss:$16 sps:$4 sm:$0xff]  }
  0x7e   : > { %v999_v53 = vld [vmem:[#allocation16 + $0x68] ss:$16 sps:$4 sm:$0xff]   ;;  %vm441_vm0 = vcmp.gt.f32.partialorder %v440_v52, 0.5  ;;  %v1002_v59 = vld [vmem:[#allocation16 + $0x80] ss:$16 sps:$4 sm:$0xff]   ;;  %s834_s8 = sshll.u32 %s1191_s24, 2 }
  0x7f   : > { %322 = vmatpush1.bf16.msra.mxu0 %v958_v21  ;;  %v781_v54 = vld [vmem:[%s780_s30] sm:$0x3]  ;;  %v442_v57 = vsel %vm441_vm0, 1, %v1207_v4  ;;  %v1010_v61 = vld [vmem:[#allocation16 + $0xa4] ss:$16 sps:$4 sm:$0xff]   ;;  %v405_v15 = vshrl.u32 %v404_v13, 7 }
  0x80   : > { %363 = vmatpush1.bf16.msra.mxu1 %v959_v22  ;;  %323 = vmatprep.subr.bf16.mxu0 %v960_v23  ;;  %vm782_vm1 = vcmp.gt.f32.partialorder %v781_v54, 0.5  ;;  %v1005_v60 = vld [vmem:[#allocation16 + $0x88] ss:$16 sps:$4 sm:$0xff]   ;;  %v1013_v62 = vld [vmem:[#allocation16 + $0xac] ss:$16 sps:$4 sm:$0xff]   ;;  %s117_s9 = scalar_lea.vmem [#allocation8], %s834_s8 }
  0x81   : > { %364 = vmatprep.subr.bf16.mxu1 %v962_v24  ;;  %444 = vperm.xlu0 %929, %v442_v57   ;;  %v783_v58 = vsel %vm782_vm1, 1, %v1207_v4  ;;  %v1008_v63 = vld [vmem:[#allocation16 + $0xa0] ss:$16 sps:$4 sm:$0xff]   ;;  %v1011_v0 = vld [vmem:[#allocation16 + $0xa8] ss:$16 sps:$4 sm:$0xff]   ;;  %s869_s14 = sshll.u32 %s1362_s22, 2 }
  0x82   : > { %v1016_v1 = vld [vmem:[#allocation16 + $0xc4] ss:$16 sps:$4 sm:$0xff]   ;;  %v1019_v2 = vld [vmem:[#allocation16 + $0xcc] ss:$16 sps:$4 sm:$0xff]   ;;  %v1014_v3 = vld [vmem:[#allocation16 + $0xc0] ss:$16 sps:$4 sm:$0xff]  }
  0x83   : > { %324 = vmatpush1.bf16.msra.mxu0 %v964_v25  ;;  %v1022_v5 = vld [vmem:[#allocation16 + $0xe4] ss:$16 sps:$4 sm:$0xff]   ;;  %v1025_v6 = vld [vmem:[#allocation16 + $0xec] ss:$16 sps:$4 sm:$0xff]   ;;  %v1020_v7 = vld [vmem:[#allocation16 + $0xe0] ss:$16 sps:$4 sm:$0xff]  }
  0x84   : > { %365 = vmatpush1.bf16.msra.mxu1 %v965_v26  ;;  %325 = vmatprep.subr.bf16.mxu0 %v966_v27  ;;  %v1023_v8 = vld [vmem:[#allocation16 + $0xe8] ss:$16 sps:$4 sm:$0xff]   ;;  %v1374_v9 = vld [vmem:[#allocation4] sm:$0x3]  ;;  %v1208_v11 = vmov 1983009808  }
  0x85   : > { %366 = vmatprep.subr.bf16.mxu1 %v968_v28  ;;  %785 = vperm.xlu0 %929, %v783_v58   ;;  %v461_v10 = vpack.c.bf16 %v1374_v9, %v1374_v9  ;;  %v402_v12 = vunpack.c.l.s4 %v1208_v11  ;;  %v118_v19 = vld [vmem:[%s117_s9] sm:$0xf]  ;;  %s458_s15 = scalar_lea.vmem [#allocation11], %s869_s14  ;;  %s453_s29 = scalar_lea.vmem [#allocation17], %s868_s25  ;;  %v456_v11 = vld [vmem:[#allocation5] sm:$0x3] }
  0x86   : > { %v119_v28 = vunpack.c.l.bf16 %v118_v19  ;;  %s794_s10 = scalar_lea.vmem [#allocation17], %s903_s26  ;;  %s109_s24 = sadd.s32 1, %s1191_s24  }
  0x87   : > { %326 = vmatpush1.bf16.msra.mxu0 %v970_v29  ;;  %v403_v14 = vunpack.c.0.s8 %v402_v12  ;;  %p108_p5 = scmp.ge.s32.totalorder %s109_s24, %s1407_s0 }
  0x88   : > { %367 = vmatpush1.bf16.msra.mxu1 %v971_v30  ;;  %327 = vmatprep.subr.bf16.mxu0 %v972_v31 }
  0x89   : > { %368 = vmatprep.subr.bf16.mxu1 %v974_v32  ;;  %v406_v18 = vsub.s32 %v403_v14, %v405_v15 }
  0x8b   : > { %328 = vmatpush1.bf16.msra.mxu0 %v976_v33 }
  0x8c   : > { %369 = vmatpush1.bf16.msra.mxu1 %v977_v34  ;;  %654 = vmatprep.subr.bf16.mxu0 %v980_v36 }
  0x8d   : > { %695 = vmatprep.subr.bf16.mxu1 %v983_v37 }
  0x8e   : > { %346 = vmatmul.mubr.bf16.vlgmr.msra.gmra.mrb[0].mxu0 %v120_v38 }
  0x8f   : > { %387 = vmatmul.mubr.bf16.vlgmr.msra.gmra.mrb[0].mxu1 %v120_v38  ;;  %655 = vmatpush1.bf16.msra.mxu0 %v978_v39 }
  0x90   : > { %696 = vmatpush1.bf16.msra.mxu1 %v981_v40  ;;  %656 = vmatprep.subr.bf16.mxu0 %v986_v41  ;;  %v459_v40 = vld [vmem:[%s458_s15] sm:$0xf] }
  0x91   : > { %697 = vmatprep.subr.bf16.mxu1 %v989_v42  ;;  %686 = vmatprep.mubr.bf16.mxu0 %v1207_v4 }
  0x92   : > { %727 = vmatprep.mubr.bf16.mxu1 %v1207_v4  ;;  %v1017_v4 = vld [vmem:[#allocation16 + $0xc8] ss:$16 sps:$4 sm:$0xff]  }
  0x93   : > { %657 = vmatpush1.bf16.msra.mxu0 %v984_v43 }
  0x94   : > { %698 = vmatpush1.bf16.msra.mxu1 %v987_v44  ;;  %658 = vmatprep.subr.bf16.mxu0 %v992_v45 }
  0x95   : > { %699 = vmatprep.subr.bf16.mxu1 %v995_v46 }
  0x97   : > { %659 = vmatpush1.bf16.msra.mxu0 %v990_v47 }
  0x98   : > { %700 = vmatpush1.bf16.msra.mxu1 %v993_v48  ;;  %660 = vmatprep.subr.bf16.mxu0 %v998_v49 }
  0x99   : > { %701 = vmatprep.subr.bf16.mxu1 %v1001_v50  ;;  %v115_v50 = vld [vmem:[#allocation3] sm:$0x3] }
  0x9b   : > { %661 = vmatpush1.bf16.msra.mxu0 %v996_v51  ;;  %v460_v51 = vunpack.c.l.bf16 %v459_v40 }
  0x9c   : > { %702 = vmatpush1.bf16.msra.mxu1 %v999_v53  ;;  %662 = vmatprep.subr.bf16.mxu0 %v1004_v55 }
  0x9d   : > { %703 = vmatprep.subr.bf16.mxu1 %v1007_v56 }
  0x9f   : > { %663 = vmatpush1.bf16.msra.mxu0 %v1002_v59 }
  0xa0   : > { %704 = vmatpush1.bf16.msra.mxu1 %v1005_v60  ;;  %664 = vmatprep.subr.bf16.mxu0 %v1010_v61 }
  0xa1   : > { %705 = vmatprep.subr.bf16.mxu1 %v1013_v62 }
  0xa3   : > { %665 = vmatpush1.bf16.msra.mxu0 %v1008_v63 }
  0xa4   : > { %706 = vmatpush1.bf16.msra.mxu1 %v1011_v0  ;;  %666 = vmatprep.subr.bf16.mxu0 %v1016_v1 }
  0xa5   : > { %707 = vmatprep.subr.bf16.mxu1 %v1019_v2 }
  0xa7   : > { %667 = vmatpush1.bf16.msra.mxu0 %v1014_v3 }
  0xa8   : > { %708 = vmatpush1.bf16.msra.mxu1 %v1017_v4  ;;  %668 = vmatprep.subr.bf16.mxu0 %v1022_v5 }
  0xa9   : > { %709 = vmatprep.subr.bf16.mxu1 %v1025_v6 }
  0xab   : > { %669 = vmatpush1.bf16.msra.mxu0 %v1020_v7 }
  0xac   : > { %710 = vmatpush1.bf16.msra.mxu1 %v1023_v8 }
  0xae   : > { %687 = vmatmul.mubr.bf16.vlgmr.msra.gmra.mrb[4].mxu0 %v461_v10 }
  0xaf   : > { %728 = vmatmul.mubr.bf16.vlgmr.msra.gmra.mrb[4].mxu1 %v461_v10 }
 0x100   : > { %v445_v54 = vpop.permute.xlu0 %444 }
 0x101   : > { %vm446_vm2 = vcmp.eq.s32.totalorder %v445_v54, 1 }
 0x104   : > { %v786_v12 = vpop.permute.xlu0 %785 }
 0x105   : > { %vm787_vm3 = vcmp.eq.s32.totalorder %v786_v12, 1 }
 0x161   : > { %v347_v16 = vpop.f32.mrb[0].mxu0 }
 0x162   : > { %v388_v17 = vpop.f32.mrb[0].mxu1  ;;  %v349_v20 = vpop.f32.mrb[1].mxu0 }
 0x163   : > { %v390_v21 = vpop.f32.mrb[1].mxu1  ;;  %v399_v22 = vcombine.low %v347_v16, %v349_v20  ;;  %v351_v24 = vpop.f32.mrb[2].mxu0 }
 0x164   : > { %v400_v23 = vcombine.low %v388_v17, %v390_v21  ;;  %v392_v25 = vpop.f32.mrb[2].mxu1  ;;  %v352_v26 = vpop.f32.mrb[3].mxu0 }
 0x165   : > { %v393_v27 = vpop.f32.mrb[3].mxu1  ;;  %v407_v29 = vrot.slane %v399_v22, %v406_v18 }
 0x166   : > { %v414_v30 = vrot.slane %v400_v23, %v406_v18 }
 0x168   : > { %v415_v31 = vcombine.low %v407_v29, %v414_v30 }
 0x16a   : > { %v417_v32 = vadd.f32 %v415_v31, %v119_v28 }
 0x16c   : > { %v867_v33 = vmul.f32 -1.442695, %v417_v32  ;;  %v425_v37 = vrot.slane %v417_v32, 6 }
 0x16e   : > { %1026 = vpow2.f32 %v867_v33 }
 0x178   : > { %v1027_v34 = vpop.eup %1026 }
 0x179   : > { %v421_v36 = vadd.f32 1.0, %v1027_v34 }
 0x17b   : > { %1028 = vrcp.f32 %v421_v36 }
 0x17c   : > { %1030 = vtanh.f32 %v425_v37 }
 0x181   : > { %v688_v38 = vpop.f32.mrb[4].mxu0 }
 0x182   : > { %v729_v39 = vpop.f32.mrb[4].mxu1  ;;  %v690_v41 = vpop.f32.mrb[5].mxu0 }
 0x183   : > { %v731_v42 = vpop.f32.mrb[5].mxu1  ;;  %v740_v43 = vcombine.low %v688_v38, %v690_v41  ;;  %v692_v45 = vpop.f32.mrb[6].mxu0 }
 0x184   : > { %v741_v44 = vcombine.low %v729_v39, %v731_v42  ;;  %v733_v46 = vpop.f32.mrb[6].mxu1  ;;  %v693_v48 = vpop.f32.mrb[7].mxu0 }
 0x185   : > { %v1029_v47 = vpop.eup %1028  ;;  %v734_v49 = vpop.f32.mrb[7].mxu1  ;;  %v748_v52 = vrot.slane %v740_v43, %v406_v18 }
 0x186   : > { %v755_v53 = vrot.slane %v741_v44, %v406_v18  ;;  %v429_v55 = vrot.slane %v1029_v47, 2  ;;  %v1031_v56 = vpop.eup %1030  ;;  %v435_v0 = vrot.slane %v1029_v47, 4 }
 0x187   : > { %v432_v59 = vmul.f32 %v1031_v56, %v1029_v47 }
 0x188   : > { %v756_v57 = vcombine.low %v748_v52, %v755_v53  ;;  %v431_v58 = vmul.f32 %v429_v55, %v115_v50 }
 0x18a   : > { %v758_v60 = vadd.f32 %v756_v57, %v460_v51  ;;  %v433_v61 = vadd.f32 %v432_v59, %v431_v58 }
 0x18c   : > { %v902_v62 = vmul.f32 -1.442695, %v758_v60  ;;  %1032 = vtanh.f32 %v433_v61  ;;  %v449_v63 = vsel %vm446_vm2, %v433_v61, %v115_v50  ;;  %v766_v5 = vrot.slane %v758_v60, 6 }
 0x18d   : > { %450 = vst [vmem:[#allocation3] sm:$0x3] %v449_v63 }
 0x18e   : > { %1034 = vpow2.f32 %v902_v62 }
 0x196   : > { %v1033_v1 = vpop.eup %1032 }
 0x197   : > { %v437_v2 = vmul.f32 %v1033_v1, %v435_v0 }
 0x198   : > { %v1035_v3 = vpop.eup %1034 }
 0x199   : > { %v762_v4 = vadd.f32 1.0, %v1035_v3  ;;  %v447_v6 = vsel %vm446_vm2, %v437_v2, %v1354_v35  ;;  %v451_v7 = vsel %vm446_vm2, %v437_v2, 0.0 }
 0x19a   : > { %448 = vst [vmem:[#allocation2] sm:$0x3] %v447_v6  ;;  %v452_v8 = vpack.c.bf16 %v451_v7, %v451_v7 }
 0x19b   : > { %1036 = vrcp.f32 %v762_v4 }
 0x19c   : > { %454 = vst [vmem:[%s453_s29] sm:$0x1] %v452_v8  ;;  %1038 = vtanh.f32 %v766_v5 }
 0x1a5   : > { %v1037_v10 = vpop.eup %1036 }
 0x1a6   : > { %v770_v13 = vrot.slane %v1037_v10, 2  ;;  %v1039_v14 = vpop.eup %1038  ;;  %v776_v18 = vrot.slane %v1037_v10, 4 }
 0x1a7   : > { %v773_v16 = vmul.f32 %v1039_v14, %v1037_v10 }
 0x1a8   : > { %v772_v15 = vmul.f32 %v770_v13, %v456_v11 }
 0x1aa   : > { %v774_v17 = vadd.f32 %v773_v16, %v772_v15 }
 0x1ac   : > { %1040 = vtanh.f32 %v774_v17  ;;  %v790_v35 = vsel %vm787_vm3, %v774_v17, %v456_v11 }
 0x1ad   : > { %791 = vst [vmem:[#allocation5] sm:$0x3] %v790_v35 }
 0x1b6   : > { %v1041_v19 = vpop.eup %1040  ;;  %111 = sbr.rel (!%p108_p5) target bundleno = 108 (0x6c), region = 74 }
 0x1b7   : > { %v778_v20 = vmul.f32 %v1041_v19, %v776_v18 }
 0x1b9   : > { %v788_v21 = vsel %vm787_vm3, %v778_v20, %v1374_v9  ;;  %v792_v22 = vsel %vm787_vm3, %v778_v20, 0.0 }
 0x1ba   : > { %789 = vst [vmem:[#allocation4] sm:$0x3] %v788_v21  ;;  %v793_v23 = vpack.c.bf16 %v792_v22, %v792_v22 }
 0x1bc   : > { %795 = vst [vmem:[%s794_s10 + $0x1] sm:$0x1] %v793_v23 }
 0x1bd PF:  { %s1209_s2 = smov [#allocation17]  }
 0x1be   :  { %s801_s16 = sshll.u32 %s1209_s2, 4  ;;  %s802_s16 = int_to_ptr.vmem [resolvable:$true] %s801_s16 }
 0x1bf   :  { %s1155_s17 = scalar_lea.vmem %s802_s16, 256  ;;  %p1160_p7 = scmp.lt.s32.totalorder %s802_s16, %s802_s16 }
 0x1c0   :  { %p1156_p6 = scmp.ne.s32.totalorder %s802_s16, %s1155_s17  ;;  %p1161_p8 = scmp.lt.s32.totalorder %s1155_s17, %s1155_s17 }
 0x1c2   :  { %p1162_p9 = por %p1161_p8, %p1160_p7 }
 0x1c4   :  { %p1163_p10 = pnand %p1162_p9, %p1156_p6 }
 0x1c6   :  { %1166 = shalt.err (!%p1163_p10)
}
 0x1c7   :  { %s1167_s18 = scalar_lea.hbm %s1413_s6, 256 }
 0x1c8   :  { %p1168_p11 = scmp.ne.s32.totalorder %s1413_s6, %s1167_s18  ;;  %p1171_p12 = scmp.lt.u32.totalorder %s1167_s18, %s1413_s6 }
 0x1ca   :  { %p1173_p13 = pnand %p1171_p12, %p1168_p11 }
 0x1cc   :  { %1176 = shalt.err (!%p1173_p13)
}
 0x1cd   :  { %807 = dma.vmem_to_hbm [thread:$0]  %s802_s16, 256, %s1413_s6, [#allocation10], %s1202_s1, %s1202_s1, %s1203_s13  }
 0x1ce   :  { %1187 = dma.done.wait [#allocation10], 256  }
 0x1cf   :  { %1188 = vsyncadd [#allocation10], 4294967040 }
 0x1d0   :  { %811 = vsyncpa [#allocation9], 1 }
 0x1d1   :  { %812 = vsyncpa [#allocation12], 1 }
 0x1d2   :  { %813 = vsyncpa [#allocation15], 1 }
 0x1d3   :  { %814 = vsyncpa [#allocation10], 1 }

// kernel: word_tag_parser_forward.9
= control target key start
LH: loop header
LB: loop body
LE: loop exit
PB: predicated region body
PF: predicated region fallthrough
CT: control target
= control target key end

     0   :  { %8 = vsyncpa [#allocation3], 0  ;;  %s1259_s12 = smov [#allocation2]   ;;  %s1339_s0 = inlined_call_operand.vmem [shape: bf16[16,256], index: 0, kind: input, shape index: {}]   ;;  %s1340_s1 = inlined_call_operand.hbm [shape: bf16[256,1024], index: 1, kind: input, shape index: {}]   ;;  %s1341_s2 = inlined_call_operand.vmem [shape: f32[1,1024], index: 2, kind: input, shape index: {}]   ;;  %s1342_s3 = inlined_call_operand.vmem [shape: bf16[16,1024], index: 3, kind: output, shape index: {}]  }
   0x1   :  { %s16_s13 = sshll.u32 %s1259_s12, 4  ;;  %s1235_s16 = scalar_lea.hbm %s1340_s1, 16384  ;;  %s17_s13 = int_to_ptr.vmem [resolvable:$true] %s16_s13 }
   0x2   :  { %p1236_p0 = scmp.ne.s32.totalorder %s1340_s1, %s1235_s16  ;;  %p1239_p1 = scmp.lt.u32.totalorder %s1235_s16, %s1340_s1 }
   0x4   :  { %p1241_p2 = pnand %p1239_p1, %p1236_p0 }
   0x6   :  { %1244 = shalt.err (!%p1241_p2)
}
   0x7   :  { %s1245_s21 = scalar_lea.vmem %s17_s13, 16384  ;;  %p1250_p4 = scmp.lt.s32.totalorder %s17_s13, %s17_s13 }
   0x8   :  { %p1246_p3 = scmp.ne.s32.totalorder %s17_s13, %s1245_s21  ;;  %p1251_p5 = scmp.lt.s32.totalorder %s1245_s21, %s1245_s21 }
   0xa   :  { %p1252_p6 = por %p1251_p5, %p1250_p4 }
   0xc   :  { %p1253_p7 = pnand %p1252_p6, %p1246_p3 }
   0xe   :  { %1256 = shalt.err (!%p1253_p7)
}
   0xf   :  { %s1260_s22 = smov 512   ;;  %s1261_s23 = smov 32  }
  0x10   :  { %22 = dma.hbm_to_vmem [thread:$0]  %s1340_s1, 16384, %s17_s13, [#allocation3], %s1260_s22, %s1260_s22, %s1261_s23  }
  0x11   :  { %1257 = dma.done.wait [#allocation3], 16384  }
  0x12   :  { %1258 = vsyncadd [#allocation3], 4294950912  ;;  %v30_v0 = vld [vmem:[#allocation2] sm:$0xff]  ;;  %v31_v2 = vld [vmem:[#allocation2 + $0x8] sm:$0xff] }
  0x13   :  { %v34_v1 = vld [vmem:[#allocation2 + $0x20] sm:$0xff]  ;;  %v35_v4 = vld [vmem:[#allocation2 + $0x28] sm:$0xff] }
  0x14   :  { %v1086_v3 = vcombine.high %v30_v0, %v34_v1  ;;  %v1085_v5 = vcombine.low %v30_v0, %v34_v1  ;;  %v38_v6 = vld [vmem:[#allocation2 + $0x40] sm:$0xff]  ;;  %v1088_v8 = vcombine.high %v31_v2, %v35_v4  ;;  %v1087_v9 = vcombine.low %v31_v2, %v35_v4  ;;  %v39_v11 = vld [vmem:[#allocation2 + $0x48] sm:$0xff] }
  0x15   :  { %v42_v7 = vld [vmem:[#allocation2 + $0x60] sm:$0xff]  ;;  %v43_v12 = vld [vmem:[#allocation2 + $0x68] sm:$0xff] }
  0x16   :  { %v1094_v10 = vcombine.high %v38_v6, %v42_v7  ;;  %v46_v13 = vld [vmem:[#allocation2 + $0x80] sm:$0xff]  ;;  %850 = vmatprep.subr.bf16.mxu0 %v1086_v3  ;;  %v1096_v14 = vcombine.high %v39_v11, %v43_v12  ;;  %v47_v16 = vld [vmem:[#allocation2 + $0x88] sm:$0xff]  ;;  %893 = vmatprep.subr.bf16.mxu1 %v1088_v8  ;;  %v1093_v18 = vcombine.low %v38_v6, %v42_v7 }
  0x17   :  { %v50_v15 = vld [vmem:[#allocation2 + $0xa0] sm:$0xff]  ;;  %v51_v17 = vld [vmem:[#allocation2 + $0xa8] sm:$0xff]  ;;  %851 = vmatpush1.bf16.msra.mxu0 %v1085_v5  ;;  %894 = vmatpush1.bf16.msra.mxu1 %v1087_v9  ;;  %v1095_v19 = vcombine.low %v39_v11, %v43_v12 }
  0x18   :  { %852 = vmatprep.subr.bf16.mxu0 %v1094_v10  ;;  %v1102_v20 = vcombine.high %v46_v13, %v50_v15  ;;  %895 = vmatprep.subr.bf16.mxu1 %v1096_v14  ;;  %v1104_v21 = vcombine.high %v47_v16, %v51_v17  ;;  %v54_v22 = vld [vmem:[#allocation2 + $0xc0] sm:$0xff]  ;;  %v55_v24 = vld [vmem:[#allocation2 + $0xc8] sm:$0xff]  ;;  %v1101_v26 = vcombine.low %v46_v13, %v50_v15 }
  0x19   :  { %v58_v23 = vld [vmem:[#allocation2 + $0xe0] sm:$0xff]  ;;  %v59_v25 = vld [vmem:[#allocation2 + $0xe8] sm:$0xff]  ;;  %v1103_v27 = vcombine.low %v47_v16, %v51_v17 }
  0x1a   :  { %v1110_v28 = vcombine.high %v54_v22, %v58_v23  ;;  %v1112_v29 = vcombine.high %v55_v24, %v59_v25  ;;  %v62_v30 = vld [vmem:[#allocation2 + $0x100] sm:$0xff]  ;;  %v63_v32 = vld [vmem:[#allocation2 + $0x108] sm:$0xff]  ;;  %v1109_v34 = vcombine.low %v54_v22, %v58_v23  ;;  %v1111_v35 = vcombine.low %v55_v24, %v59_v25 }
  0x1b   :  { %853 = vmatpush1.bf16.msra.mxu0 %v1093_v18  ;;  %896 = vmatpush1.bf16.msra.mxu1 %v1095_v19  ;;  %v66_v31 = vld [vmem:[#allocation2 + $0x120] sm:$0xff]  ;;  %v67_v33 = vld [vmem:[#allocation2 + $0x128] sm:$0xff] }
  0x1c   :  { %854 = vmatprep.subr.bf16.mxu0 %v1102_v20  ;;  %897 = vmatprep.subr.bf16.mxu1 %v1104_v21  ;;  %v1118_v36 = vcombine.high %v62_v30, %v66_v31  ;;  %v1120_v37 = vcombine.high %v63_v32, %v67_v33  ;;  %v70_v38 = vld [vmem:[#allocation2 + $0x140] sm:$0xff]  ;;  %v71_v40 = vld [vmem:[#allocation2 + $0x148] sm:$0xff]  ;;  %v1117_v42 = vcombine.low %v62_v30, %v66_v31 }
  0x1d   :  { %v74_v39 = vld [vmem:[#allocation2 + $0x160] sm:$0xff]  ;;  %v75_v41 = vld [vmem:[#allocation2 + $0x168] sm:$0xff]  ;;  %v1119_v43 = vcombine.low %v63_v32, %v67_v33 }
  0x1e   :  { %v1126_v44 = vcombine.high %v70_v38, %v74_v39  ;;  %v1128_v45 = vcombine.high %v71_v40, %v75_v41  ;;  %v78_v46 = vld [vmem:[#allocation2 + $0x180] sm:$0xff]  ;;  %v79_v48 = vld [vmem:[#allocation2 + $0x188] sm:$0xff]  ;;  %v1125_v50 = vcombine.low %v70_v38, %v74_v39  ;;  %v1127_v51 = vcombine.low %v71_v40, %v75_v41 }
  0x1f   :  { %855 = vmatpush1.bf16.msra.mxu0 %v1101_v26  ;;  %898 = vmatpush1.bf16.msra.mxu1 %v1103_v27  ;;  %v82_v47 = vld [vmem:[#allocation2 + $0x1a0] sm:$0xff]  ;;  %v83_v49 = vld [vmem:[#allocation2 + $0x1a8] sm:$0xff] }
  0x20   :  { %856 = vmatprep.subr.bf16.mxu0 %v1110_v28  ;;  %899 = vmatprep.subr.bf16.mxu1 %v1112_v29  ;;  %v1134_v52 = vcombine.high %v78_v46, %v82_v47  ;;  %v1136_v53 = vcombine.high %v79_v48, %v83_v49  ;;  %v86_v54 = vld [vmem:[#allocation2 + $0x1c0] sm:$0xff]  ;;  %v87_v57 = vld [vmem:[#allocation2 + $0x1c8] sm:$0xff]  ;;  %v1133_v59 = vcombine.low %v78_v46, %v82_v47 }
  0x21   :  { %v90_v55 = vld [vmem:[#allocation2 + $0x1e0] sm:$0xff]  ;;  %v91_v58 = vld [vmem:[#allocation2 + $0x1e8] sm:$0xff]  ;;  %v1135_v60 = vcombine.low %v79_v48, %v83_v49 }
  0x22   :  { %v1297_v56 = vld [vmem:[%s1339_s0 + $0x4] ss:$8 sps:$4 sm:$0xff]   ;;  %v1142_v61 = vcombine.high %v86_v54, %v90_v55  ;;  %v1144_v62 = vcombine.high %v87_v57, %v91_v58  ;;  %v1141_v3 = vcombine.low %v86_v54, %v90_v55  ;;  %v1143_v4 = vcombine.low %v87_v57, %v91_v58 }
  0x23   :  { %857 = vmatpush1.bf16.msra.mxu0 %v1109_v34  ;;  %900 = vmatpush1.bf16.msra.mxu1 %v1111_v35  ;;  %v94_v63 = vld [vmem:[#allocation2 + $0x200] sm:$0xff]  ;;  %v95_v1 = vld [vmem:[#allocation2 + $0x208] sm:$0xff] }
  0x24   :  { %858 = vmatprep.subr.bf16.mxu0 %v1118_v36  ;;  %901 = vmatprep.subr.bf16.mxu1 %v1120_v37  ;;  %v98_v0 = vld [vmem:[#allocation2 + $0x220] sm:$0xff]  ;;  %v99_v2 = vld [vmem:[#allocation2 + $0x228] sm:$0xff] }
  0x25   :  { %882 = vmatprep.mubr.bf16.mxu0 %v1297_v56  ;;  %925 = vmatprep.mubr.bf16.mxu1 %v1297_v56  ;;  %v1150_v5 = vcombine.high %v94_v63, %v98_v0  ;;  %v1152_v6 = vcombine.high %v95_v1, %v99_v2  ;;  %v102_v7 = vld [vmem:[#allocation2 + $0x240] sm:$0xff]  ;;  %v103_v9 = vld [vmem:[#allocation2 + $0x248] sm:$0xff]  ;;  %v1149_v11 = vcombine.low %v94_v63, %v98_v0  ;;  %v32_v0 = vld [vmem:[#allocation2 + $0x10] sm:$0xff] }
  0x26   :  { %v106_v8 = vld [vmem:[#allocation2 + $0x260] sm:$0xff]  ;;  %v107_v10 = vld [vmem:[#allocation2 + $0x268] sm:$0xff]  ;;  %v1151_v12 = vcombine.low %v95_v1, %v99_v2  ;;  %v36_v1 = vld [vmem:[#allocation2 + $0x30] sm:$0xff] }
  0x27   :  { %859 = vmatpush1.bf16.msra.mxu0 %v1117_v42  ;;  %902 = vmatpush1.bf16.msra.mxu1 %v1119_v43  ;;  %v1158_v13 = vcombine.high %v102_v7, %v106_v8  ;;  %v1160_v14 = vcombine.high %v103_v9, %v107_v10  ;;  %v110_v15 = vld [vmem:[#allocation2 + $0x280] sm:$0xff]  ;;  %v111_v17 = vld [vmem:[#allocation2 + $0x288] sm:$0xff]  ;;  %v1157_v19 = vcombine.low %v102_v7, %v106_v8  ;;  %v33_v2 = vld [vmem:[#allocation2 + $0x18] sm:$0xff] }
  0x28   :  { %860 = vmatprep.subr.bf16.mxu0 %v1126_v44  ;;  %903 = vmatprep.subr.bf16.mxu1 %v1128_v45  ;;  %v114_v16 = vld [vmem:[#allocation2 + $0x2a0] sm:$0xff]  ;;  %v115_v18 = vld [vmem:[#allocation2 + $0x2a8] sm:$0xff]  ;;  %v1159_v20 = vcombine.low %v103_v9, %v107_v10  ;;  %v40_v8 = vld [vmem:[#allocation2 + $0x50] sm:$0xff] }
  0x29   :  { %v1166_v21 = vcombine.high %v110_v15, %v114_v16  ;;  %v1168_v22 = vcombine.high %v111_v17, %v115_v18  ;;  %v118_v23 = vld [vmem:[#allocation2 + $0x2c0] sm:$0xff]  ;;  %v119_v25 = vld [vmem:[#allocation2 + $0x2c8] sm:$0xff]  ;;  %v1165_v27 = vcombine.low %v110_v15, %v114_v16  ;;  %v1167_v28 = vcombine.low %v111_v17, %v115_v18  ;;  %v44_v9 = vld [vmem:[#allocation2 + $0x70] sm:$0xff] }
  0x2a   :  { %v122_v24 = vld [vmem:[#allocation2 + $0x2e0] sm:$0xff]  ;;  %v123_v26 = vld [vmem:[#allocation2 + $0x2e8] sm:$0xff]  ;;  %v1098_v15 = vcombine.high %v40_v8, %v44_v9  ;;  %v48_v17 = vld [vmem:[#allocation2 + $0x90] sm:$0xff] }
  0x2b   :  { %861 = vmatpush1.bf16.msra.mxu0 %v1125_v50  ;;  %904 = vmatpush1.bf16.msra.mxu1 %v1127_v51  ;;  %v1174_v29 = vcombine.high %v118_v23, %v122_v24  ;;  %v1176_v30 = vcombine.high %v119_v25, %v123_v26  ;;  %v126_v31 = vld [vmem:[#allocation2 + $0x300] sm:$0xff]  ;;  %v127_v33 = vld [vmem:[#allocation2 + $0x308] sm:$0xff]  ;;  %v1173_v35 = vcombine.low %v118_v23, %v122_v24  ;;  %v52_v18 = vld [vmem:[#allocation2 + $0xb0] sm:$0xff] }
  0x2c   :  { %862 = vmatprep.subr.bf16.mxu0 %v1134_v52  ;;  %905 = vmatprep.subr.bf16.mxu1 %v1136_v53  ;;  %v130_v32 = vld [vmem:[#allocation2 + $0x320] sm:$0xff]  ;;  %v131_v34 = vld [vmem:[#allocation2 + $0x328] sm:$0xff]  ;;  %v1175_v36 = vcombine.low %v119_v25, %v123_v26  ;;  %v1106_v23 = vcombine.high %v48_v17, %v52_v18  ;;  %v56_v25 = vld [vmem:[#allocation2 + $0xd0] sm:$0xff] }
  0x2d   :  { %v1182_v37 = vcombine.high %v126_v31, %v130_v32  ;;  %v1184_v38 = vcombine.high %v127_v33, %v131_v34  ;;  %v134_v39 = vld [vmem:[#allocation2 + $0x340] sm:$0xff]  ;;  %v135_v41 = vld [vmem:[#allocation2 + $0x348] sm:$0xff]  ;;  %v1181_v43 = vcombine.low %v126_v31, %v130_v32  ;;  %v1183_v44 = vcombine.low %v127_v33, %v131_v34  ;;  %v60_v26 = vld [vmem:[#allocation2 + $0xf0] sm:$0xff] }
  0x2e   :  { %v138_v40 = vld [vmem:[#allocation2 + $0x360] sm:$0xff]  ;;  %v139_v42 = vld [vmem:[#allocation2 + $0x368] sm:$0xff]  ;;  %v1114_v31 = vcombine.high %v56_v25, %v60_v26  ;;  %v64_v33 = vld [vmem:[#allocation2 + $0x110] sm:$0xff] }
  0x2f   :  { %863 = vmatpush1.bf16.msra.mxu0 %v1133_v59  ;;  %906 = vmatpush1.bf16.msra.mxu1 %v1135_v60  ;;  %v1190_v45 = vcombine.high %v134_v39, %v138_v40  ;;  %v1192_v46 = vcombine.high %v135_v41, %v139_v42  ;;  %v142_v47 = vld [vmem:[#allocation2 + $0x380] sm:$0xff]  ;;  %v143_v49 = vld [vmem:[#allocation2 + $0x388] sm:$0xff]  ;;  %v1189_v51 = vcombine.low %v134_v39, %v138_v40  ;;  %v68_v34 = vld [vmem:[#allocation2 + $0x130] sm:$0xff] }
  0x30   :  { %864 = vmatprep.subr.bf16.mxu0 %v1142_v61  ;;  %907 = vmatprep.subr.bf16.mxu1 %v1144_v62  ;;  %v146_v48 = vld [vmem:[#allocation2 + $0x3a0] sm:$0xff]  ;;  %v147_v50 = vld [vmem:[#allocation2 + $0x3a8] sm:$0xff]  ;;  %v1191_v52 = vcombine.low %v135_v41, %v139_v42  ;;  %v1122_v39 = vcombine.high %v64_v33, %v68_v34  ;;  %v72_v40 = vld [vmem:[#allocation2 + $0x150] sm:$0xff] }
  0x31   :  { %v1198_v53 = vcombine.high %v142_v47, %v146_v48  ;;  %v1200_v54 = vcombine.high %v143_v49, %v147_v50  ;;  %v150_v55 = vld [vmem:[#allocation2 + $0x3c0] sm:$0xff]  ;;  %v151_v58 = vld [vmem:[#allocation2 + $0x3c8] sm:$0xff]  ;;  %v1197_v60 = vcombine.low %v142_v47, %v146_v48  ;;  %v1199_v61 = vcombine.low %v143_v49, %v147_v50  ;;  %v76_v41 = vld [vmem:[#allocation2 + $0x170] sm:$0xff] }
  0x32   :  { %v154_v57 = vld [vmem:[#allocation2 + $0x3e0] sm:$0xff]  ;;  %v155_v59 = vld [vmem:[#allocation2 + $0x3e8] sm:$0xff]  ;;  %v73_v42 = vld [vmem:[#allocation2 + $0x158] sm:$0xff] }
  0x33   :  { %865 = vmatpush1.bf16.msra.mxu0 %v1141_v3  ;;  %908 = vmatpush1.bf16.msra.mxu1 %v1143_v4  ;;  %v1206_v62 = vcombine.high %v150_v55, %v154_v57  ;;  %v1208_v63 = vcombine.high %v151_v58, %v155_v59  ;;  %v37_v3 = vld [vmem:[#allocation2 + $0x38] sm:$0xff]  ;;  %v1205_v4 = vcombine.low %v150_v55, %v154_v57  ;;  %v1304_v10 = vld [vmem:[%s1339_s0] ss:$8 sps:$4 sm:$0xff]   ;;  %v80_v48 = vld [vmem:[#allocation2 + $0x190] sm:$0xff] }
  0x34   :  { %866 = vmatprep.subr.bf16.mxu0 %v1150_v5  ;;  %909 = vmatprep.subr.bf16.mxu1 %v1152_v6  ;;  %v1207_v5 = vcombine.low %v151_v58, %v155_v59  ;;  %v1090_v6 = vcombine.high %v32_v0, %v36_v1  ;;  %v1092_v7 = vcombine.high %v33_v2, %v37_v3  ;;  %v84_v49 = vld [vmem:[#allocation2 + $0x1b0] sm:$0xff]  ;;  %v81_v50 = vld [vmem:[#allocation2 + $0x198] sm:$0xff] }
  0x35   :  { %v88_v57 = vld [vmem:[#allocation2 + $0x1d0] sm:$0xff]  ;;  %v89_v59 = vld [vmem:[#allocation2 + $0x1d8] sm:$0xff] }
  0x36   :  { %v92_v58 = vld [vmem:[#allocation2 + $0x1f0] sm:$0xff] }
  0x37   :  { %867 = vmatpush1.bf16.msra.mxu0 %v1149_v11  ;;  %910 = vmatpush1.bf16.msra.mxu1 %v1151_v12  ;;  %v41_v11 = vld [vmem:[#allocation2 + $0x58] sm:$0xff] }
  0x38   :  { %868 = vmatprep.subr.bf16.mxu0 %v1158_v13  ;;  %911 = vmatprep.subr.bf16.mxu1 %v1160_v14  ;;  %v45_v12 = vld [vmem:[#allocation2 + $0x78] sm:$0xff]  ;;  %v1089_v13 = vcombine.low %v32_v0, %v36_v1  ;;  %v1091_v14 = vcombine.low %v33_v2, %v37_v3  ;;  %v96_v1 = vld [vmem:[#allocation2 + $0x210] sm:$0xff] }
  0x39   :  { %v1100_v16 = vcombine.high %v41_v11, %v45_v12  ;;  %v100_v2 = vld [vmem:[#allocation2 + $0x230] sm:$0xff]  ;;  %v97_v3 = vld [vmem:[#allocation2 + $0x218] sm:$0xff] }
  0x3b   :  { %869 = vmatpush1.bf16.msra.mxu0 %v1157_v19  ;;  %912 = vmatpush1.bf16.msra.mxu1 %v1159_v20  ;;  %v49_v19 = vld [vmem:[#allocation2 + $0x98] sm:$0xff] }
  0x3c   :  { %870 = vmatprep.subr.bf16.mxu0 %v1166_v21  ;;  %913 = vmatprep.subr.bf16.mxu1 %v1168_v22  ;;  %v53_v20 = vld [vmem:[#allocation2 + $0xb8] sm:$0xff]  ;;  %v1097_v21 = vcombine.low %v40_v8, %v44_v9  ;;  %v1099_v22 = vcombine.low %v41_v11, %v45_v12  ;;  %v104_v9 = vld [vmem:[#allocation2 + $0x250] sm:$0xff] }
  0x3d   :  { %v1108_v24 = vcombine.high %v49_v19, %v53_v20  ;;  %v108_v11 = vld [vmem:[#allocation2 + $0x270] sm:$0xff]  ;;  %v105_v12 = vld [vmem:[#allocation2 + $0x258] sm:$0xff] }
  0x3f   :  { %871 = vmatpush1.bf16.msra.mxu0 %v1165_v27  ;;  %914 = vmatpush1.bf16.msra.mxu1 %v1167_v28  ;;  %v57_v27 = vld [vmem:[#allocation2 + $0xd8] sm:$0xff] }
  0x40   :  { %872 = vmatprep.subr.bf16.mxu0 %v1174_v29  ;;  %915 = vmatprep.subr.bf16.mxu1 %v1176_v30  ;;  %v61_v28 = vld [vmem:[#allocation2 + $0xf8] sm:$0xff]  ;;  %v1105_v29 = vcombine.low %v48_v17, %v52_v18  ;;  %v1107_v30 = vcombine.low %v49_v19, %v53_v20  ;;  %v112_v18 = vld [vmem:[#allocation2 + $0x290] sm:$0xff] }
  0x41   :  { %v1116_v32 = vcombine.high %v57_v27, %v61_v28  ;;  %v116_v19 = vld [vmem:[#allocation2 + $0x2b0] sm:$0xff]  ;;  %v113_v20 = vld [vmem:[#allocation2 + $0x298] sm:$0xff] }
  0x43   :  { %873 = vmatpush1.bf16.msra.mxu0 %v1173_v35  ;;  %916 = vmatpush1.bf16.msra.mxu1 %v1175_v36  ;;  %v65_v35 = vld [vmem:[#allocation2 + $0x118] sm:$0xff] }
  0x44   :  { %874 = vmatprep.subr.bf16.mxu0 %v1182_v37  ;;  %917 = vmatprep.subr.bf16.mxu1 %v1184_v38  ;;  %v69_v36 = vld [vmem:[#allocation2 + $0x138] sm:$0xff]  ;;  %v1113_v37 = vcombine.low %v56_v25, %v60_v26  ;;  %v1115_v38 = vcombine.low %v57_v27, %v61_v28  ;;  %v120_v26 = vld [vmem:[#allocation2 + $0x2d0] sm:$0xff] }
  0x45   :  { %v124_v27 = vld [vmem:[#allocation2 + $0x2f0] sm:$0xff]  ;;  %v121_v28 = vld [vmem:[#allocation2 + $0x2d8] sm:$0xff] }
  0x47   :  { %875 = vmatpush1.bf16.msra.mxu0 %v1181_v43  ;;  %918 = vmatpush1.bf16.msra.mxu1 %v1183_v44  ;;  %v77_v43 = vld [vmem:[#allocation2 + $0x178] sm:$0xff]  ;;  %v1121_v44 = vcombine.low %v64_v33, %v68_v34  ;;  %v128_v34 = vld [vmem:[#allocation2 + $0x310] sm:$0xff] }
  0x48   :  { %876 = vmatprep.subr.bf16.mxu0 %v1190_v45  ;;  %919 = vmatprep.subr.bf16.mxu1 %v1192_v46  ;;  %v1123_v45 = vcombine.low %v65_v35, %v69_v36  ;;  %v1130_v46 = vcombine.high %v72_v40, %v76_v41  ;;  %v1132_v47 = vcombine.high %v73_v42, %v77_v43 }
  0x4b   :  { %877 = vmatpush1.bf16.msra.mxu0 %v1189_v51  ;;  %920 = vmatpush1.bf16.msra.mxu1 %v1191_v52  ;;  %v85_v51 = vld [vmem:[#allocation2 + $0x1b8] sm:$0xff]  ;;  %v1129_v52 = vcombine.low %v72_v40, %v76_v41  ;;  %v136_v41 = vld [vmem:[#allocation2 + $0x350] sm:$0xff] }
  0x4c   :  { %878 = vmatprep.subr.bf16.mxu0 %v1198_v53  ;;  %921 = vmatprep.subr.bf16.mxu1 %v1200_v54  ;;  %v1131_v53 = vcombine.low %v73_v42, %v77_v43  ;;  %v1138_v54 = vcombine.high %v80_v48, %v84_v49  ;;  %v1140_v55 = vcombine.high %v81_v50, %v85_v51  ;;  %v140_v42 = vld [vmem:[#allocation2 + $0x370] sm:$0xff]  ;;  %v137_v43 = vld [vmem:[#allocation2 + $0x358] sm:$0xff] }
  0x4f   :  { %879 = vmatpush1.bf16.msra.mxu0 %v1197_v60  ;;  %922 = vmatpush1.bf16.msra.mxu1 %v1199_v61  ;;  %v93_v60 = vld [vmem:[#allocation2 + $0x1f8] sm:$0xff]  ;;  %v1137_v61 = vcombine.low %v80_v48, %v84_v49  ;;  %v144_v49 = vld [vmem:[#allocation2 + $0x390] sm:$0xff] }
  0x50   :  { %880 = vmatprep.subr.bf16.mxu0 %v1206_v62  ;;  %923 = vmatprep.subr.bf16.mxu1 %v1208_v63  ;;  %v1139_v62 = vcombine.low %v81_v50, %v85_v51  ;;  %v1146_v63 = vcombine.high %v88_v57, %v92_v58  ;;  %v1148_v0 = vcombine.high %v89_v59, %v93_v60  ;;  %v148_v50 = vld [vmem:[#allocation2 + $0x3b0] sm:$0xff]  ;;  %v145_v51 = vld [vmem:[#allocation2 + $0x398] sm:$0xff] }
  0x53   :  { %881 = vmatpush1.bf16.msra.mxu0 %v1205_v4  ;;  %924 = vmatpush1.bf16.msra.mxu1 %v1207_v5  ;;  %v101_v4 = vld [vmem:[#allocation2 + $0x238] sm:$0xff]  ;;  %v1145_v5 = vcombine.low %v88_v57, %v92_v58  ;;  %v152_v58 = vld [vmem:[#allocation2 + $0x3d0] sm:$0xff] }
  0x54   :  { %936 = vmatprep.subr.bf16.mxu0 %v1090_v6  ;;  %979 = vmatprep.subr.bf16.mxu1 %v1092_v7  ;;  %v1147_v6 = vcombine.low %v89_v59, %v93_v60  ;;  %v1154_v7 = vcombine.high %v96_v1, %v100_v2  ;;  %v1156_v8 = vcombine.high %v97_v3, %v101_v4  ;;  %v156_v59 = vld [vmem:[#allocation2 + $0x3f0] sm:$0xff]  ;;  %v153_v60 = vld [vmem:[#allocation2 + $0x3d8] sm:$0xff] }
  0x56   :  { %883 = vmatmul.mubr.bf16.vlgmr.msra.gmra.mrb[0].mxu0 %v1304_v10  ;;  %926 = vmatmul.mubr.bf16.vlgmr.msra.gmra.mrb[0].mxu1 %v1304_v10 }
  0x57   :  { %937 = vmatpush1.bf16.msra.mxu0 %v1089_v13  ;;  %980 = vmatpush1.bf16.msra.mxu1 %v1091_v14  ;;  %v109_v13 = vld [vmem:[#allocation2 + $0x278] sm:$0xff]  ;;  %v1153_v14 = vcombine.low %v96_v1, %v100_v2  ;;  %v1209_v2 = vcombine.low %v152_v58, %v156_v59 }
  0x58   :  { %938 = vmatprep.subr.bf16.mxu0 %v1098_v15  ;;  %981 = vmatprep.subr.bf16.mxu1 %v1100_v16  ;;  %v1155_v15 = vcombine.low %v97_v3, %v101_v4  ;;  %v1162_v16 = vcombine.high %v104_v9, %v108_v11  ;;  %v1164_v17 = vcombine.high %v105_v12, %v109_v13  ;;  %v160_v4 = vlaneseq }
  0x59   :  { %968 = vmatprep.mubr.bf16.mxu0 %v1297_v56  ;;  %1011 = vmatprep.mubr.bf16.mxu1 %v1297_v56  ;;  %v1124_v56 = vcombine.high %v65_v35, %v69_v36  ;;  %v132_v35 = vld [vmem:[#allocation2 + $0x330] sm:$0xff]  ;;  %v129_v36 = vld [vmem:[#allocation2 + $0x318] sm:$0xff] }
  0x5b   :  { %939 = vmatpush1.bf16.msra.mxu0 %v1097_v21  ;;  %982 = vmatpush1.bf16.msra.mxu1 %v1099_v22  ;;  %v117_v21 = vld [vmem:[#allocation2 + $0x2b8] sm:$0xff]  ;;  %v1161_v22 = vcombine.low %v104_v9, %v108_v11 }
  0x5c   :  { %940 = vmatprep.subr.bf16.mxu0 %v1106_v23  ;;  %983 = vmatprep.subr.bf16.mxu1 %v1108_v24  ;;  %v1163_v23 = vcombine.low %v105_v12, %v109_v13  ;;  %v1170_v24 = vcombine.high %v112_v18, %v116_v19  ;;  %v1172_v25 = vcombine.high %v113_v20, %v117_v21 }
  0x5f   :  { %941 = vmatpush1.bf16.msra.mxu0 %v1105_v29  ;;  %984 = vmatpush1.bf16.msra.mxu1 %v1107_v30  ;;  %v125_v29 = vld [vmem:[#allocation2 + $0x2f8] sm:$0xff]  ;;  %v1169_v30 = vcombine.low %v112_v18, %v116_v19 }
  0x60   :  { %942 = vmatprep.subr.bf16.mxu0 %v1114_v31  ;;  %985 = vmatprep.subr.bf16.mxu1 %v1116_v32  ;;  %v1171_v31 = vcombine.low %v113_v20, %v117_v21  ;;  %v1178_v32 = vcombine.high %v120_v26, %v124_v27  ;;  %v1180_v33 = vcombine.high %v121_v28, %v125_v29 }
  0x63   :  { %943 = vmatpush1.bf16.msra.mxu0 %v1113_v37  ;;  %986 = vmatpush1.bf16.msra.mxu1 %v1115_v38  ;;  %v133_v37 = vld [vmem:[#allocation2 + $0x338] sm:$0xff]  ;;  %v1177_v38 = vcombine.low %v120_v26, %v124_v27 }
  0x64   :  { %944 = vmatprep.subr.bf16.mxu0 %v1122_v39  ;;  %987 = vmatprep.subr.bf16.mxu1 %v1124_v56  ;;  %v1179_v39 = vcombine.low %v121_v28, %v125_v29  ;;  %v1186_v56 = vcombine.high %v128_v34, %v132_v35  ;;  %v1188_v40 = vcombine.high %v129_v36, %v133_v37 }
  0x67   :  { %945 = vmatpush1.bf16.msra.mxu0 %v1121_v44  ;;  %988 = vmatpush1.bf16.msra.mxu1 %v1123_v45  ;;  %v141_v44 = vld [vmem:[#allocation2 + $0x378] sm:$0xff]  ;;  %v1185_v45 = vcombine.low %v128_v34, %v132_v35 }
  0x68   :  { %946 = vmatprep.subr.bf16.mxu0 %v1130_v46  ;;  %989 = vmatprep.subr.bf16.mxu1 %v1132_v47  ;;  %v1187_v46 = vcombine.low %v129_v36, %v133_v37  ;;  %v1194_v47 = vcombine.high %v136_v41, %v140_v42  ;;  %v1196_v48 = vcombine.high %v137_v43, %v141_v44 }
  0x6b   :  { %947 = vmatpush1.bf16.msra.mxu0 %v1129_v52  ;;  %990 = vmatpush1.bf16.msra.mxu1 %v1131_v53  ;;  %v149_v52 = vld [vmem:[#allocation2 + $0x3b8] sm:$0xff]  ;;  %v1193_v53 = vcombine.low %v136_v41, %v140_v42 }
  0x6c   :  { %948 = vmatprep.subr.bf16.mxu0 %v1138_v54  ;;  %991 = vmatprep.subr.bf16.mxu1 %v1140_v55  ;;  %v1195_v54 = vcombine.low %v137_v43, %v141_v44  ;;  %v1202_v55 = vcombine.high %v144_v49, %v148_v50  ;;  %v1204_v57 = vcombine.high %v145_v51, %v149_v52 }
  0x6f   :  { %949 = vmatpush1.bf16.msra.mxu0 %v1137_v61  ;;  %992 = vmatpush1.bf16.msra.mxu1 %v1139_v62  ;;  %v157_v61 = vld [vmem:[#allocation2 + $0x3f8] sm:$0xff]  ;;  %v1201_v62 = vcombine.low %v144_v49, %v148_v50 }
  0x70   :  { %950 = vmatprep.subr.bf16.mxu0 %v1146_v63  ;;  %993 = vmatprep.subr.bf16.mxu1 %v1148_v0  ;;  %v1203_v63 = vcombine.low %v145_v51, %v149_v52  ;;  %v1210_v0 = vcombine.high %v152_v58, %v156_v59  ;;  %v1212_v1 = vcombine.high %v153_v60, %v157_v61 }
  0x71   :  { %v1211_v3 = vcombine.low %v153_v60, %v157_v61 }
  0x73   :  { %951 = vmatpush1.bf16.msra.mxu0 %v1145_v5  ;;  %994 = vmatpush1.bf16.msra.mxu1 %v1147_v6  ;;  %v161_v5 = vshrl.u32 %v160_v4, 7 }
  0x74   :  { %952 = vmatprep.subr.bf16.mxu0 %v1154_v7  ;;  %995 = vmatprep.subr.bf16.mxu1 %v1156_v8  ;;  %v158_v7 = vld [vmem:[%s1341_s2] sm:$0xff] }
  0x75   :  { %v162_v6 = vsub.s32 0, %v161_v5  ;;  %v170_v8 = vsub.s32 2, %v161_v5  ;;  %v166_v9 = vsub.s32 1, %v161_v5  ;;  %v174_v11 = vsub.s32 3, %v161_v5 }
  0x76   :  { %v178_v35 = vsub.s32 4, %v161_v5  ;;  %v186_v36 = vsub.s32 6, %v161_v5  ;;  %v182_v37 = vsub.s32 5, %v161_v5 }
  0x77   :  { %953 = vmatpush1.bf16.msra.mxu0 %v1153_v14  ;;  %996 = vmatpush1.bf16.msra.mxu1 %v1155_v15  ;;  %v163_v12 = vrot.slane %v158_v7, %v162_v6  ;;  %v171_v13 = vrot.slane %v158_v7, %v170_v8  ;;  %v167_v14 = vrot.slane %v158_v7, %v166_v9 }
  0x78   :  { %954 = vmatprep.subr.bf16.mxu0 %v1162_v16  ;;  %997 = vmatprep.subr.bf16.mxu1 %v1164_v17  ;;  %v175_v15 = vrot.slane %v158_v7, %v174_v11 }
  0x7b   :  { %955 = vmatpush1.bf16.msra.mxu0 %v1161_v22  ;;  %998 = vmatpush1.bf16.msra.mxu1 %v1163_v23 }
  0x7c   :  { %956 = vmatprep.subr.bf16.mxu0 %v1170_v24  ;;  %999 = vmatprep.subr.bf16.mxu1 %v1172_v25 }
  0x7f   :  { %957 = vmatpush1.bf16.msra.mxu0 %v1169_v30  ;;  %1000 = vmatpush1.bf16.msra.mxu1 %v1171_v31 }
  0x80   :  { %958 = vmatprep.subr.bf16.mxu0 %v1178_v32  ;;  %1001 = vmatprep.subr.bf16.mxu1 %v1180_v33 }
  0x83   :  { %959 = vmatpush1.bf16.msra.mxu0 %v1177_v38  ;;  %1002 = vmatpush1.bf16.msra.mxu1 %v1179_v39  ;;  %v190_v38 = vsub.s32 7, %v161_v5  ;;  %v179_v39 = vrot.slane %v158_v7, %v178_v35 }
  0x84   :  { %960 = vmatprep.subr.bf16.mxu0 %v1186_v56  ;;  %1003 = vmatprep.subr.bf16.mxu1 %v1188_v40  ;;  %v187_v56 = vrot.slane %v158_v7, %v186_v36  ;;  %v183_v40 = vrot.slane %v158_v7, %v182_v37 }
  0x85   :  { %v191_v41 = vrot.slane %v158_v7, %v190_v38 }
  0x87   :  { %961 = vmatpush1.bf16.msra.mxu0 %v1185_v45  ;;  %1004 = vmatpush1.bf16.msra.mxu1 %v1187_v46 }
  0x88   :  { %962 = vmatprep.subr.bf16.mxu0 %v1194_v47  ;;  %1005 = vmatprep.subr.bf16.mxu1 %v1196_v48 }
  0x8b   :  { %963 = vmatpush1.bf16.msra.mxu0 %v1193_v53  ;;  %1006 = vmatpush1.bf16.msra.mxu1 %v1195_v54 }
  0x8c   :  { %964 = vmatprep.subr.bf16.mxu0 %v1202_v55  ;;  %1007 = vmatprep.subr.bf16.mxu1 %v1204_v57 }
  0x8f   :  { %965 = vmatpush1.bf16.msra.mxu0 %v1201_v62  ;;  %1008 = vmatpush1.bf16.msra.mxu1 %v1203_v63 }
  0x90   :  { %966 = vmatprep.subr.bf16.mxu0 %v1210_v0  ;;  %1009 = vmatprep.subr.bf16.mxu1 %v1212_v1 }
  0x93   :  { %967 = vmatpush1.bf16.msra.mxu0 %v1209_v2  ;;  %1010 = vmatpush1.bf16.msra.mxu1 %v1211_v3 }
  0x96   :  { %969 = vmatmul.mubr.bf16.vlgmr.msra.gmra.mrb[4].mxu0 %v1304_v10  ;;  %1012 = vmatmul.mubr.bf16.vlgmr.msra.gmra.mrb[4].mxu1 %v1304_v10 }
 0x129   :  { %v884_v16 = vpop.f32.mrb[0].mxu0  ;;  %v927_v18 = vpop.f32.mrb[0].mxu1 }
 0x12a   :  { %v885_v17 = vadd.f32 %v884_v16, %v163_v12  ;;  %v886_v19 = vpop.f32.mrb[1].mxu0  ;;  %v928_v20 = vadd.f32 %v927_v18, %v171_v13  ;;  %v929_v21 = vpop.f32.mrb[1].mxu1 }
 0x12b   :  { %v887_v10 = vadd.f32 %v886_v19, %v167_v14  ;;  %v888_v22 = vpop.f32.mrb[2].mxu0  ;;  %v930_v23 = vadd.f32 %v929_v21, %v175_v15  ;;  %v931_v25 = vpop.f32.mrb[2].mxu1 }
 0x12c   :  { %v889_v24 = vadd.f32 %v888_v22, %v163_v12  ;;  %v890_v26 = vpop.f32.mrb[3].mxu0  ;;  %v932_v28 = vadd.f32 %v931_v25, %v171_v13  ;;  %v933_v30 = vpop.f32.mrb[3].mxu1 }
 0x12d   :  { %v1221_v27 = vpack.c.bf16 %v887_v10, %v885_v17  ;;  %v891_v29 = vadd.f32 %v890_v26, %v167_v14  ;;  %v1222_v31 = vpack.c.bf16 %v930_v23, %v928_v20  ;;  %v934_v32 = vadd.f32 %v933_v30, %v175_v15 }
 0x12f   :  { %1070 = vst [vmem:[%s1342_s3] sm:$0xff] %v1221_v27  ;;  %v1225_v33 = vpack.c.bf16 %v891_v29, %v889_v24  ;;  %1071 = vst [vmem:[%s1342_s3 + $0x8] sm:$0xff] %v1222_v31  ;;  %v1226_v34 = vpack.c.bf16 %v934_v32, %v932_v28 }
 0x131   :  { %1074 = vst [vmem:[%s1342_s3 + $0x20] sm:$0xff] %v1225_v33  ;;  %1075 = vst [vmem:[%s1342_s3 + $0x28] sm:$0xff] %v1226_v34 }
 0x169   :  { %v970_v42 = vpop.f32.mrb[4].mxu0  ;;  %v1013_v44 = vpop.f32.mrb[4].mxu1 }
 0x16a   :  { %v971_v43 = vadd.f32 %v970_v42, %v179_v39  ;;  %v972_v45 = vpop.f32.mrb[5].mxu0  ;;  %v1014_v46 = vadd.f32 %v1013_v44, %v187_v56  ;;  %v1015_v48 = vpop.f32.mrb[5].mxu1 }
 0x16b   :  { %v973_v47 = vadd.f32 %v972_v45, %v183_v40  ;;  %v974_v49 = vpop.f32.mrb[6].mxu0  ;;  %v1016_v50 = vadd.f32 %v1015_v48, %v191_v41  ;;  %v1017_v52 = vpop.f32.mrb[6].mxu1 }
 0x16c   :  { %v975_v51 = vadd.f32 %v974_v49, %v179_v39  ;;  %v976_v53 = vpop.f32.mrb[7].mxu0  ;;  %v1018_v55 = vadd.f32 %v1017_v52, %v187_v56  ;;  %v1019_v58 = vpop.f32.mrb[7].mxu1 }
 0x16d   :  { %v1223_v54 = vpack.c.bf16 %v973_v47, %v971_v43  ;;  %v977_v57 = vadd.f32 %v976_v53, %v183_v40  ;;  %v1224_v59 = vpack.c.bf16 %v1016_v50, %v1014_v46  ;;  %v1020_v60 = vadd.f32 %v1019_v58, %v191_v41 }
 0x16f   :  { %1072 = vst [vmem:[%s1342_s3 + $0x10] sm:$0xff] %v1223_v54  ;;  %v1227_v61 = vpack.c.bf16 %v977_v57, %v975_v51  ;;  %1073 = vst [vmem:[%s1342_s3 + $0x18] sm:$0xff] %v1224_v59  ;;  %v1228_v62 = vpack.c.bf16 %v1020_v60, %v1018_v55 }
 0x171   :  { %1076 = vst [vmem:[%s1342_s3 + $0x30] sm:$0xff] %v1227_v61  ;;  %1077 = vst [vmem:[%s1342_s3 + $0x38] sm:$0xff] %v1228_v62 }
 0x172   :  { %1082 = vsyncpa [#allocation3], 1 }

// kernel: word_tag_parser_forward.11
= control target key start
LH: loop header
LB: loop body
LE: loop exit
PB: predicated region body
PF: predicated region fallthrough
CT: control target
= control target key end

     0   :  { %8 = vsyncpa [#allocation3], 0  ;;  %s789_s12 = smov [#allocation2]   ;;  %s845_s0 = inlined_call_operand.vmem [shape: bf16[16,256], index: 0, kind: input, shape index: {}]   ;;  %s846_s1 = inlined_call_operand.hbm [shape: bf16[256,512], index: 1, kind: input, shape index: {}]   ;;  %s847_s2 = inlined_call_operand.vmem [shape: f32[1,512], index: 2, kind: input, shape index: {}]   ;;  %s848_s3 = inlined_call_operand.vmem [shape: bf16[16,512], index: 3, kind: output, shape index: {}]  }
   0x1   :  { %s16_s13 = sshll.u32 %s789_s12, 4  ;;  %s765_s16 = scalar_lea.hbm %s846_s1, 8192  ;;  %s17_s13 = int_to_ptr.vmem [resolvable:$true] %s16_s13 }
   0x2   :  { %p766_p0 = scmp.ne.s32.totalorder %s846_s1, %s765_s16  ;;  %p769_p1 = scmp.lt.u32.totalorder %s765_s16, %s846_s1 }
   0x4   :  { %p771_p2 = pnand %p769_p1, %p766_p0 }
   0x6   :  { %774 = shalt.err (!%p771_p2)
}
   0x7   :  { %s775_s21 = scalar_lea.vmem %s17_s13, 8192  ;;  %p780_p4 = scmp.lt.s32.totalorder %s17_s13, %s17_s13 }
   0x8   :  { %p776_p3 = scmp.ne.s32.totalorder %s17_s13, %s775_s21  ;;  %p781_p5 = scmp.lt.s32.totalorder %s775_s21, %s775_s21 }
   0xa   :  { %p782_p6 = por %p781_p5, %p780_p4 }
   0xc   :  { %p783_p7 = pnand %p782_p6, %p776_p3 }
   0xe   :  { %786 = shalt.err (!%p783_p7)
}
   0xf   :  { %s790_s22 = smov 256   ;;  %s791_s23 = smov 16  }
  0x10   :  { %22 = dma.hbm_to_vmem [thread:$0]  %s846_s1, 8192, %s17_s13, [#allocation3], %s790_s22, %s790_s22, %s791_s23  }
  0x11   :  { %787 = dma.done.wait [#allocation3], 8192  }
  0x12   :  { %788 = vsyncadd [#allocation3], 4294959104  ;;  %v666_v0 = vld [vmem:[#allocation2 + $0x4] ss:$16 sps:$4 sm:$0xff]   ;;  %v668_v1 = vld [vmem:[#allocation2 + $0xc] ss:$16 sps:$4 sm:$0xff]  }
  0x13   :  { %446 = vmatprep.subr.bf16.mxu0 %v666_v0  ;;  %v670_v2 = vld [vmem:[#allocation2] ss:$16 sps:$4 sm:$0xff]   ;;  %v671_v3 = vld [vmem:[#allocation2 + $0x8] ss:$16 sps:$4 sm:$0xff]   ;;  %489 = vmatprep.subr.bf16.mxu1 %v668_v1  ;;  %v672_v4 = vld [vmem:[#allocation2 + $0x24] ss:$16 sps:$4 sm:$0xff]  }
  0x14   :  { %447 = vmatpush1.bf16.msra.mxu0 %v670_v2  ;;  %490 = vmatpush1.bf16.msra.mxu1 %v671_v3  ;;  %v674_v5 = vld [vmem:[#allocation2 + $0x2c] ss:$16 sps:$4 sm:$0xff]   ;;  %v676_v6 = vld [vmem:[#allocation2 + $0x20] ss:$16 sps:$4 sm:$0xff]   ;;  %v677_v7 = vld [vmem:[#allocation2 + $0x28] ss:$16 sps:$4 sm:$0xff]   ;;  %v96_v2 = vlaneseq }
  0x15   :  { %448 = vmatprep.subr.bf16.mxu0 %v672_v4  ;;  %491 = vmatprep.subr.bf16.mxu1 %v674_v5  ;;  %v678_v8 = vld [vmem:[#allocation2 + $0x44] ss:$16 sps:$4 sm:$0xff]   ;;  %v680_v9 = vld [vmem:[#allocation2 + $0x4c] ss:$16 sps:$4 sm:$0xff]   ;;  %v682_v10 = vld [vmem:[#allocation2 + $0x40] ss:$16 sps:$4 sm:$0xff]  }
  0x16   :  { %v683_v11 = vld [vmem:[#allocation2 + $0x48] ss:$16 sps:$4 sm:$0xff]   ;;  %v684_v12 = vld [vmem:[#allocation2 + $0x64] ss:$16 sps:$4 sm:$0xff]   ;;  %v686_v13 = vld [vmem:[#allocation2 + $0x6c] ss:$16 sps:$4 sm:$0xff]  }
  0x17   :  { %v688_v14 = vld [vmem:[#allocation2 + $0x60] ss:$16 sps:$4 sm:$0xff]   ;;  %v689_v15 = vld [vmem:[#allocation2 + $0x68] ss:$16 sps:$4 sm:$0xff]   ;;  %v690_v16 = vld [vmem:[#allocation2 + $0x84] ss:$16 sps:$4 sm:$0xff]  }
  0x18   :  { %449 = vmatpush1.bf16.msra.mxu0 %v676_v6  ;;  %492 = vmatpush1.bf16.msra.mxu1 %v677_v7  ;;  %v692_v17 = vld [vmem:[#allocation2 + $0x8c] ss:$16 sps:$4 sm:$0xff]   ;;  %v694_v18 = vld [vmem:[#allocation2 + $0x80] ss:$16 sps:$4 sm:$0xff]   ;;  %v695_v19 = vld [vmem:[#allocation2 + $0x88] ss:$16 sps:$4 sm:$0xff]  }
  0x19   :  { %450 = vmatprep.subr.bf16.mxu0 %v678_v8  ;;  %493 = vmatprep.subr.bf16.mxu1 %v680_v9  ;;  %v696_v20 = vld [vmem:[#allocation2 + $0xa4] ss:$16 sps:$4 sm:$0xff]   ;;  %v698_v21 = vld [vmem:[#allocation2 + $0xac] ss:$16 sps:$4 sm:$0xff]   ;;  %v700_v22 = vld [vmem:[#allocation2 + $0xa0] ss:$16 sps:$4 sm:$0xff]  }
  0x1a   :  { %v701_v23 = vld [vmem:[#allocation2 + $0xa8] ss:$16 sps:$4 sm:$0xff]   ;;  %v702_v24 = vld [vmem:[#allocation2 + $0xc4] ss:$16 sps:$4 sm:$0xff]   ;;  %v704_v25 = vld [vmem:[#allocation2 + $0xcc] ss:$16 sps:$4 sm:$0xff]  }
  0x1b   :  { %v706_v26 = vld [vmem:[#allocation2 + $0xc0] ss:$16 sps:$4 sm:$0xff]   ;;  %v707_v27 = vld [vmem:[#allocation2 + $0xc8] ss:$16 sps:$4 sm:$0xff]   ;;  %v708_v28 = vld [vmem:[#allocation2 + $0xe4] ss:$16 sps:$4 sm:$0xff]  }
  0x1c   :  { %451 = vmatpush1.bf16.msra.mxu0 %v682_v10  ;;  %494 = vmatpush1.bf16.msra.mxu1 %v683_v11  ;;  %v710_v29 = vld [vmem:[#allocation2 + $0xec] ss:$16 sps:$4 sm:$0xff]   ;;  %v712_v30 = vld [vmem:[#allocation2 + $0xe0] ss:$16 sps:$4 sm:$0xff]   ;;  %v713_v31 = vld [vmem:[#allocation2 + $0xe8] ss:$16 sps:$4 sm:$0xff]  }
  0x1d   :  { %452 = vmatprep.subr.bf16.mxu0 %v684_v12  ;;  %495 = vmatprep.subr.bf16.mxu1 %v686_v13  ;;  %v714_v32 = vld [vmem:[#allocation2 + $0x104] ss:$16 sps:$4 sm:$0xff]   ;;  %v716_v33 = vld [vmem:[#allocation2 + $0x10c] ss:$16 sps:$4 sm:$0xff]   ;;  %v718_v34 = vld [vmem:[#allocation2 + $0x100] ss:$16 sps:$4 sm:$0xff]  }
  0x1e   :  { %v719_v35 = vld [vmem:[#allocation2 + $0x108] ss:$16 sps:$4 sm:$0xff]   ;;  %v720_v36 = vld [vmem:[#allocation2 + $0x124] ss:$16 sps:$4 sm:$0xff]   ;;  %v722_v37 = vld [vmem:[#allocation2 + $0x12c] ss:$16 sps:$4 sm:$0xff]  }
  0x1f   :  { %v724_v38 = vld [vmem:[#allocation2 + $0x120] ss:$16 sps:$4 sm:$0xff]   ;;  %v725_v39 = vld [vmem:[#allocation2 + $0x128] ss:$16 sps:$4 sm:$0xff]   ;;  %v726_v40 = vld [vmem:[#allocation2 + $0x144] ss:$16 sps:$4 sm:$0xff]  }
  0x20   :  { %453 = vmatpush1.bf16.msra.mxu0 %v688_v14  ;;  %496 = vmatpush1.bf16.msra.mxu1 %v689_v15  ;;  %v728_v41 = vld [vmem:[#allocation2 + $0x14c] ss:$16 sps:$4 sm:$0xff]   ;;  %v730_v42 = vld [vmem:[#allocation2 + $0x140] ss:$16 sps:$4 sm:$0xff]   ;;  %v731_v43 = vld [vmem:[#allocation2 + $0x148] ss:$16 sps:$4 sm:$0xff]  }
  0x21   :  { %454 = vmatprep.subr.bf16.mxu0 %v690_v16  ;;  %497 = vmatprep.subr.bf16.mxu1 %v692_v17  ;;  %v732_v44 = vld [vmem:[#allocation2 + $0x164] ss:$16 sps:$4 sm:$0xff]   ;;  %v734_v45 = vld [vmem:[#allocation2 + $0x16c] ss:$16 sps:$4 sm:$0xff]   ;;  %v736_v47 = vld [vmem:[#allocation2 + $0x160] ss:$16 sps:$4 sm:$0xff]  }
  0x22   :  { %v764_v46 = vld [vmem:[%s845_s0 + $0x4] ss:$8 sps:$4 sm:$0xff]   ;;  %v737_v48 = vld [vmem:[#allocation2 + $0x168] ss:$16 sps:$4 sm:$0xff]   ;;  %v742_v51 = vld [vmem:[#allocation2 + $0x180] ss:$16 sps:$4 sm:$0xff]  }
  0x23   :  { %v738_v49 = vld [vmem:[#allocation2 + $0x184] ss:$16 sps:$4 sm:$0xff]   ;;  %v740_v50 = vld [vmem:[#allocation2 + $0x18c] ss:$16 sps:$4 sm:$0xff]   ;;  %478 = vmatprep.mubr.bf16.mxu0 %v764_v46  ;;  %521 = vmatprep.mubr.bf16.mxu1 %v764_v46  ;;  %v743_v52 = vld [vmem:[#allocation2 + $0x188] ss:$16 sps:$4 sm:$0xff]  }
  0x24   :  { %455 = vmatpush1.bf16.msra.mxu0 %v694_v18  ;;  %498 = vmatpush1.bf16.msra.mxu1 %v695_v19  ;;  %v744_v53 = vld [vmem:[#allocation2 + $0x1a4] ss:$16 sps:$4 sm:$0xff]   ;;  %v746_v54 = vld [vmem:[#allocation2 + $0x1ac] ss:$16 sps:$4 sm:$0xff]   ;;  %v748_v55 = vld [vmem:[#allocation2 + $0x1a0] ss:$16 sps:$4 sm:$0xff]  }
  0x25   :  { %456 = vmatprep.subr.bf16.mxu0 %v696_v20  ;;  %499 = vmatprep.subr.bf16.mxu1 %v698_v21  ;;  %v749_v56 = vld [vmem:[#allocation2 + $0x1a8] ss:$16 sps:$4 sm:$0xff]   ;;  %v750_v57 = vld [vmem:[#allocation2 + $0x1c4] ss:$16 sps:$4 sm:$0xff]   ;;  %v752_v58 = vld [vmem:[#allocation2 + $0x1cc] ss:$16 sps:$4 sm:$0xff]  }
  0x26   :  { %v754_v59 = vld [vmem:[#allocation2 + $0x1c0] ss:$16 sps:$4 sm:$0xff]   ;;  %v755_v60 = vld [vmem:[#allocation2 + $0x1c8] ss:$16 sps:$4 sm:$0xff]   ;;  %v756_v61 = vld [vmem:[#allocation2 + $0x1e4] ss:$16 sps:$4 sm:$0xff]  }
  0x27   :  { %v758_v62 = vld [vmem:[#allocation2 + $0x1ec] ss:$16 sps:$4 sm:$0xff]   ;;  %v760_v63 = vld [vmem:[#allocation2 + $0x1e0] ss:$16 sps:$4 sm:$0xff]   ;;  %v761_v0 = vld [vmem:[#allocation2 + $0x1e8] ss:$16 sps:$4 sm:$0xff]  }
  0x28   :  { %457 = vmatpush1.bf16.msra.mxu0 %v700_v22  ;;  %500 = vmatpush1.bf16.msra.mxu1 %v701_v23  ;;  %v762_v1 = vld [vmem:[%s845_s0] ss:$8 sps:$4 sm:$0xff]   ;;  %v97_v3 = vshrl.u32 %v96_v2, 7 }
  0x29   :  { %458 = vmatprep.subr.bf16.mxu0 %v702_v24  ;;  %501 = vmatprep.subr.bf16.mxu1 %v704_v25  ;;  %v94_v6 = vld [vmem:[%s847_s2] sm:$0xf] }
  0x2a   :  { %v98_v4 = vsub.s32 0, %v97_v3  ;;  %v106_v5 = vsub.s32 2, %v97_v3  ;;  %v102_v7 = vsub.s32 1, %v97_v3  ;;  %v110_v8 = vsub.s32 3, %v97_v3 }
  0x2c   :  { %459 = vmatpush1.bf16.msra.mxu0 %v706_v26  ;;  %502 = vmatpush1.bf16.msra.mxu1 %v707_v27  ;;  %v99_v9 = vrot.slane %v94_v6, %v98_v4  ;;  %v107_v10 = vrot.slane %v94_v6, %v106_v5  ;;  %v103_v11 = vrot.slane %v94_v6, %v102_v7 }
  0x2d   :  { %460 = vmatprep.subr.bf16.mxu0 %v708_v28  ;;  %503 = vmatprep.subr.bf16.mxu1 %v710_v29  ;;  %v111_v12 = vrot.slane %v94_v6, %v110_v8 }
  0x30   :  { %461 = vmatpush1.bf16.msra.mxu0 %v712_v30  ;;  %504 = vmatpush1.bf16.msra.mxu1 %v713_v31 }
  0x31   :  { %462 = vmatprep.subr.bf16.mxu0 %v714_v32  ;;  %505 = vmatprep.subr.bf16.mxu1 %v716_v33 }
  0x34   :  { %463 = vmatpush1.bf16.msra.mxu0 %v718_v34  ;;  %506 = vmatpush1.bf16.msra.mxu1 %v719_v35 }
  0x35   :  { %464 = vmatprep.subr.bf16.mxu0 %v720_v36  ;;  %507 = vmatprep.subr.bf16.mxu1 %v722_v37 }
  0x38   :  { %465 = vmatpush1.bf16.msra.mxu0 %v724_v38  ;;  %508 = vmatpush1.bf16.msra.mxu1 %v725_v39 }
  0x39   :  { %466 = vmatprep.subr.bf16.mxu0 %v726_v40  ;;  %509 = vmatprep.subr.bf16.mxu1 %v728_v41 }
  0x3c   :  { %467 = vmatpush1.bf16.msra.mxu0 %v730_v42  ;;  %510 = vmatpush1.bf16.msra.mxu1 %v731_v43 }
  0x3d   :  { %468 = vmatprep.subr.bf16.mxu0 %v732_v44  ;;  %511 = vmatprep.subr.bf16.mxu1 %v734_v45 }
  0x40   :  { %469 = vmatpush1.bf16.msra.mxu0 %v736_v47  ;;  %512 = vmatpush1.bf16.msra.mxu1 %v737_v48 }
  0x41   :  { %470 = vmatprep.subr.bf16.mxu0 %v738_v49  ;;  %513 = vmatprep.subr.bf16.mxu1 %v740_v50 }
  0x44   :  { %471 = vmatpush1.bf16.msra.mxu0 %v742_v51  ;;  %514 = vmatpush1.bf16.msra.mxu1 %v743_v52 }
  0x45   :  { %472 = vmatprep.subr.bf16.mxu0 %v744_v53  ;;  %515 = vmatprep.subr.bf16.mxu1 %v746_v54 }
  0x48   :  { %473 = vmatpush1.bf16.msra.mxu0 %v748_v55  ;;  %516 = vmatpush1.bf16.msra.mxu1 %v749_v56 }
  0x49   :  { %474 = vmatprep.subr.bf16.mxu0 %v750_v57  ;;  %517 = vmatprep.subr.bf16.mxu1 %v752_v58 }
  0x4c   :  { %475 = vmatpush1.bf16.msra.mxu0 %v754_v59  ;;  %518 = vmatpush1.bf16.msra.mxu1 %v755_v60 }
  0x4d   :  { %476 = vmatprep.subr.bf16.mxu0 %v756_v61  ;;  %519 = vmatprep.subr.bf16.mxu1 %v758_v62 }
  0x50   :  { %477 = vmatpush1.bf16.msra.mxu0 %v760_v63  ;;  %520 = vmatpush1.bf16.msra.mxu1 %v761_v0 }
  0x53   :  { %479 = vmatmul.mubr.bf16.vlgmr.msra.gmra.mrb[0].mxu0 %v762_v1  ;;  %522 = vmatmul.mubr.bf16.vlgmr.msra.gmra.mrb[0].mxu1 %v762_v1 }
 0x126   :  { %v480_v13 = vpop.f32.mrb[0].mxu0  ;;  %v523_v14 = vpop.f32.mrb[0].mxu1 }
 0x127   :  { %v481_v15 = vadd.f32 %v480_v13, %v99_v9  ;;  %v524_v16 = vadd.f32 %v523_v14, %v107_v10  ;;  %v482_v17 = vpop.f32.mrb[1].mxu0  ;;  %v525_v18 = vpop.f32.mrb[1].mxu1 }
 0x128   :  { %v483_v19 = vadd.f32 %v482_v17, %v103_v11  ;;  %v526_v20 = vadd.f32 %v525_v18, %v111_v12  ;;  %v484_v21 = vpop.f32.mrb[2].mxu0  ;;  %v527_v22 = vpop.f32.mrb[2].mxu1 }
 0x129   :  { %vm532_vm0 = vcmp.gt.f32.partialorder %v481_v15, 0.0  ;;  %v540_v23 = vmul.f32 0.1, %v481_v15  ;;  %vm534_vm1 = vcmp.gt.f32.partialorder %v524_v16, 0.0  ;;  %v542_v24 = vmul.f32 0.1, %v524_v16 }
 0x12a   :  { %vm533_vm2 = vcmp.gt.f32.partialorder %v483_v19, 0.0  ;;  %v541_v25 = vmul.f32 0.1, %v483_v19  ;;  %vm535_vm3 = vcmp.gt.f32.partialorder %v526_v20, 0.0  ;;  %v543_v26 = vmul.f32 0.1, %v526_v20 }
 0x12b   :  { %v548_v27 = vsel %vm532_vm0, %v481_v15, %v540_v23  ;;  %v550_v28 = vsel %vm534_vm1, %v524_v16, %v542_v24  ;;  %v485_v29 = vadd.f32 %v484_v21, %v99_v9  ;;  %v528_v30 = vadd.f32 %v527_v22, %v107_v10  ;;  %v486_v31 = vpop.f32.mrb[3].mxu0  ;;  %v529_v32 = vpop.f32.mrb[3].mxu1 }
 0x12c   :  { %v549_v33 = vsel %vm533_vm2, %v483_v19, %v541_v25  ;;  %v551_v34 = vsel %vm535_vm3, %v526_v20, %v543_v26  ;;  %v487_v35 = vadd.f32 %v486_v31, %v103_v11  ;;  %v530_v36 = vadd.f32 %v529_v32, %v111_v12 }
 0x12d   :  { %v659_v37 = vpack.c.bf16 %v549_v33, %v548_v27  ;;  %v660_v38 = vpack.c.bf16 %v551_v34, %v550_v28  ;;  %vm536_vm4 = vcmp.gt.f32.partialorder %v485_v29, 0.0  ;;  %v544_v39 = vmul.f32 0.1, %v485_v29 }
 0x12e   :  { %vm538_vm5 = vcmp.gt.f32.partialorder %v528_v30, 0.0  ;;  %v546_v40 = vmul.f32 0.1, %v528_v30  ;;  %vm537_vm6 = vcmp.gt.f32.partialorder %v487_v35, 0.0  ;;  %v545_v41 = vmul.f32 0.1, %v487_v35 }
 0x12f   :  { %580 = vst [vmem:[%s848_s3] sm:$0xff] %v659_v37  ;;  %581 = vst [vmem:[%s848_s3 + $0x8] sm:$0xff] %v660_v38  ;;  %v552_v42 = vsel %vm536_vm4, %v485_v29, %v544_v39  ;;  %vm539_vm7 = vcmp.gt.f32.partialorder %v530_v36, 0.0  ;;  %v547_v43 = vmul.f32 0.1, %v530_v36 }
 0x130   :  { %v554_v44 = vsel %vm538_vm5, %v528_v30, %v546_v40  ;;  %v553_v45 = vsel %vm537_vm6, %v487_v35, %v545_v41 }
 0x131   :  { %v661_v46 = vpack.c.bf16 %v553_v45, %v552_v42  ;;  %v555_v47 = vsel %vm539_vm7, %v530_v36, %v547_v43 }
 0x132   :  { %v662_v48 = vpack.c.bf16 %v555_v47, %v554_v44 }
 0x133   :  { %582 = vst [vmem:[%s848_s3 + $0x10] sm:$0xff] %v661_v46 }
 0x134   :  { %583 = vst [vmem:[%s848_s3 + $0x18] sm:$0xff] %v662_v48 }
 0x135   :  { %588 = vsyncpa [#allocation3], 1 }

// kernel: word_tag_parser_forward.12
= control target key start
LH: loop header
LB: loop body
LE: loop exit
PB: predicated region body
PF: predicated region fallthrough
CT: control target
= control target key end

     0   :  { %9 = vsyncpa [#allocation3], 0  ;;  %s926_s0 = inlined_call_operand.vmem [shape: bf16[16,128], index: 0, kind: input, shape index: {}]   ;;  %s927_s1 = inlined_call_operand.vmem [shape: bf16[128,128], index: 1, kind: input, shape index: {}]   ;;  %s928_s2 = inlined_call_operand.vmem [shape: bf16[2,128,8], index: 2, kind: input, shape index: {}]   ;;  %s929_s3 = inlined_call_operand.vmem [shape: f32[2,1,8], index: 3, kind: input, shape index: {}]   ;;  %s930_s4 = inlined_call_operand.hbm [shape: f32[2,8,8], index: 4, kind: output, shape index: {}]  }
   0x1   :  { %11 = vsyncpa [#allocation3 + $0x1], 0  ;;  %s781_s15 = smov 0   ;;  %s783_s16 = smov 0  }
   0x2   :  { %s785_s17 = smov 0   ;;  %s787_s18 = smov 0  }
   0x3 LB: > { %s802_s19 = sadd.s32 4294967295, %s750_s18   ;;  %s543_s20 = sadd.s32 4294967294, %s750_s18   ;;  %s750_s18 = sphi %s787_s18, %s936_s18   ;;  %s746_s17 = sphi %s785_s17, %s935_s17   ;;  %s742_s16 = sphi %s783_s16, %s934_s16   ;;  %s738_s15 = sphi %s781_s15, %s933_s15  }
   0x4   : > { %s806_s21 = sadd.s32 1, %s750_s18   ;;  %s123_s22 = sadd.s32 1, %s746_s17 }
   0x5   : > { %s120_s23 = ssub.s32 %s750_s18, %s806_s21  ;;  %p133_p0 = scmp.ne.s32.totalorder %s746_s17, %s742_s16 }
   0x6   : > { %p121_p1 = scmp.eq.s32.totalorder %s120_s23, 0  ;;  %p134_p2 = scmp.eq.s32.totalorder %s802_s19, 1 }
   0x7   : > { %p139_p3 = scmp.ne.s32.totalorder %s742_s16, %s738_s15  ;;  %p140_p4 = scmp.eq.s32.totalorder %s543_s20, 1 }
   0x8   : > { %s817_s24 = scalar_select %p121_p1, %s746_s17, %s123_s22  }
   0x9   : > { %p819_p5 = por %p134_p2, %p133_p0  ;;  %p823_p6 = por %p140_p4, %p139_p3 }
   0xa   : > { %p546_p7 = scmp.ge.s32.totalorder %s750_s18, 1  ;;  %p182_p8 = scmp.lt.s32.totalorder %s750_s18, 3 }
   0xc   : > { %p183_p9 = pnand %p546_p7, %p182_p8 }
   0xd   : > { %v672_v0 = vld [vmem:[%s927_s1] sm:$0xff] (!%p183_p9)   ;;  %v752_v1 = vmov (!%p183_p9), 0.0   ;;  %v673_v2 = vld [vmem:[%s927_s1 + $0x8] sm:$0xff] (!%p183_p9)   ;;  %vm753_vm0 = vmmov (!%p183_p9), 0   ;;  %p215_p10 = scmp.lt.s32.totalorder (!%p183_p9), %s802_s19, 1  ;;  %v674_v3 = vld [vmem:[%s927_s1 + $0x10] sm:$0xff] (!%p183_p9)   ;;  %v441_v23 = vlaneseq (!%p183_p9) }
   0xe   : > { %186 = sbr.rel (%p183_p9) target bundleno = 488 (0x1e8), region = 36  ;;  %590 = vmatprep.subr.bf16.mxu0 (!%p183_p9), %v752_v1  ;;  %610 = vmatprep.subr.bf16.mxu1 (!%p183_p9), %v752_v1  ;;  %v675_v5 = vld [vmem:[%s927_s1 + $0x18] sm:$0xff] (!%p183_p9)   ;;  %v676_v7 = vld [vmem:[%s927_s1 + $0x20] sm:$0xff] (!%p183_p9)   ;;  %v677_v9 = vld [vmem:[%s927_s1 + $0x28] sm:$0xff] (!%p183_p9)   ;;  %s212_s14 = sand.u32 (!%p183_p9), 1, %s742_s16   ;;  %v754_v27 = vmov (!%p183_p9), 0  }
   0xf   : > { %591 = vmatpush3.bf16.msra.mxu0 (!%p183_p9), %v672_v0  ;;  %606 = vmatprep.mubr.msk.bf16.mxu0 (!%p183_p9), %vm753_vm0, %v752_v1  ;;  %v678_v11 = vld [vmem:[%s927_s1 + $0x30] sm:$0xff] (!%p183_p9)   ;;  %v679_v13 = vld [vmem:[%s927_s1 + $0x38] sm:$0xff] (!%p183_p9)   ;;  %v442_v25 = vshrl.u32 (!%p183_p9), %v441_v23, 7  ;;  %s547_s20 = sshll.u32 (!%p183_p9), %s212_s14, 3  ;;  %vm447_vm3 = vcmask (!%p183_p9), 64512   ;;  %s755_s30 = smov (!%p183_p9), [#allocation2]  }
  0x10   : > { %592 = vmatprep.subr.bf16.mxu0 (!%p183_p9), %v752_v1  ;;  %626 = vmatprep.mubr.msk.bf16.mxu1 (!%p183_p9), %vm753_vm0, %v752_v1  ;;  %s214_s22 = scalar_lea.vmem (!%p183_p9), [#allocation2], %s547_s20  ;;  %s692_s6 = sshll.u32 (!%p183_p9), %s755_s30, 4  ;;  %s693_s6 = int_to_ptr.vmem [resolvable:$false] %s692_s6 }
  0x11   : > { %v443_v26 = vsub.s32 (!%p183_p9), 0, %v442_v25  ;;  %s463_s23 = sshll.u32 (!%p183_p9), %s214_s22, 4  ;;  %s694_s7 = scalar_lea.vmem (!%p183_p9), %s693_s6, 256  ;;  %s886_s23 = int_to_ptr.vmem [resolvable:$true] %s463_s23 }
  0x12   : > { %p695_p0 = scmp.lt.s32.totalorder (!%p183_p9), %s886_s23, %s693_s6 }
  0x13   : > { %593 = vmatpush3.bf16.msra.mxu0 (!%p183_p9), %v673_v2 }
  0x14   : > { %594 = vmatprep.subr.bf16.mxu0 (!%p183_p9), %v752_v1 }
  0x15   : > { %s837_s5 = scalar_select %p215_p10, %s802_s19, 1 }
  0x17   : > { %s571_s8 = sshll.u32 %s837_s5, 6  ;;  %595 = vmatpush3.bf16.msra.mxu0 %v674_v3  ;;  %s548_s29 = sshll.u32 %s837_s5, 2 }
  0x18   : > { %s846_s11 = scalar_lea.vmem %s928_s2, %s571_s8  ;;  %596 = vmatprep.subr.bf16.mxu0 %v752_v1  ;;  %s218_s9 = scalar_lea.vmem %s926_s0, %s548_s29 }
  0x19   : > { %v680_v4 = vld [vmem:[%s846_s11] sm:$0xff]   ;;  %v681_v6 = vld [vmem:[%s846_s11 + $0x8] sm:$0xff]   ;;  %v682_v8 = vld [vmem:[%s846_s11 + $0x10] sm:$0xff]   ;;  %s226_s13 = scalar_lea.vmem %s929_s3, %s837_s5  ;;  %s688_s29 = scalar_lea.vmem %s886_s23, 128 }
  0x1a   : > { %611 = vmatpush3.bf16.msra.mxu1 %v680_v4  ;;  %v683_v10 = vld [vmem:[%s846_s11 + $0x18] sm:$0xff]   ;;  %v684_v12 = vld [vmem:[%s846_s11 + $0x20] sm:$0xff]   ;;  %v685_v14 = vld [vmem:[%s846_s11 + $0x28] sm:$0xff]   ;;  %p689_p11 = scmp.ne.s32.totalorder %s886_s23, %s688_s29  ;;  %p696_p1 = scmp.lt.s32.totalorder %s694_s7, %s688_s29 }
  0x1b   : > { %612 = vmatprep.subr.bf16.mxu1 %v752_v1  ;;  %597 = vmatpush3.bf16.msra.mxu0 %v675_v5  ;;  %v228_v15 = vld [vmem:[%s218_s9] sm:$0xf]  ;;  %v686_v16 = vld [vmem:[%s846_s11 + $0x30] sm:$0xff]   ;;  %v687_v17 = vld [vmem:[%s846_s11 + $0x38] sm:$0xff]   ;;  %s568_s11 = sshll.u32 %s802_s19, 7  ;;  %s450_s19 = scalar_lea.sflag [#allocation3], %s212_s14 }
  0x1c   : > { %598 = vmatprep.subr.bf16.mxu0 %v752_v1  ;;  %v438_v24 = vld [vmem:[%s226_s13] sm:$0x1]  ;;  %s884_s5 = scalar_lea.hbm %s930_s4, %s568_s11  ;;  %p690_p12 = pnand %p689_p11, %p819_p5 }
  0x1d   : > { %vm439_vm1 = vcmp.gt.f32.partialorder %v438_v24, 0.5  ;;  %p697_p2 = por %p696_p1, %p695_p0 }
  0x1e   : > { %613 = vmatpush3.bf16.msra.mxu1 %v681_v6  ;;  %v440_v28 = vsel %vm439_vm1, 1, %v754_v27  ;;  %p691_p13 = pneg %p690_p12 }
  0x1f   : > { %614 = vmatprep.subr.bf16.mxu1 %v752_v1  ;;  %599 = vmatpush3.bf16.msra.mxu0 %v676_v7  ;;  %v444_v29 = vrot.slane %v440_v28, %v443_v26 }
  0x20   : > { %600 = vmatprep.subr.bf16.mxu0 %v752_v1  ;;  %p698_p3 = pnand %p697_p2, %p691_p13 }
  0x21   : > { %vm445_vm2 = vcmp.eq.s32.totalorder %v444_v29, 1 }
  0x22   : > { %615 = vmatpush3.bf16.msra.mxu1 %v682_v8 }
  0x23   : > { %616 = vmatprep.subr.bf16.mxu1 %v752_v1  ;;  %601 = vmatpush3.bf16.msra.mxu0 %v677_v9 }
  0x24   : > { %602 = vmatprep.subr.bf16.mxu0 %v752_v1 }
  0x26   : > { %617 = vmatpush3.bf16.msra.mxu1 %v683_v10 }
  0x27   : > { %618 = vmatprep.subr.bf16.mxu1 %v752_v1  ;;  %603 = vmatpush3.bf16.msra.mxu0 %v678_v11 }
  0x28   : > { %604 = vmatprep.subr.bf16.mxu0 %v752_v1 }
  0x2a   : > { %619 = vmatpush3.bf16.msra.mxu1 %v684_v12 }
  0x2b   : > { %620 = vmatprep.subr.bf16.mxu1 %v752_v1  ;;  %605 = vmatpush3.bf16.msra.mxu0 %v679_v13 }
  0x2e   : > { %621 = vmatpush3.bf16.msra.mxu1 %v685_v14  ;;  %607 = vmatmul.mubr.bf16.vlgmr.msra.gmra.mrb[0].mxu0 %v228_v15 }
  0x2f   : > { %622 = vmatprep.subr.bf16.mxu1 %v752_v1 }
  0x32   : > { %623 = vmatpush3.bf16.msra.mxu1 %v686_v16 }
  0x33   : > { %624 = vmatprep.subr.bf16.mxu1 %v752_v1 }
  0x36   : > { %625 = vmatpush3.bf16.msra.mxu1 %v687_v17 }
 0x101   : > { %v327_v18 = vpop.f32.mrb[0].mxu0 }
 0x102   : > { %v333_v19 = vpack.c.bf16 %v327_v18, %v327_v18  ;;  %v608_v20 = vpop.f32.mrb[1].mxu0 }
 0x103   : > { %v330_v21 = vpop.f32.mrb[2].mxu0 }
 0x104   : > { %v609_v22 = vpop.f32.mrb[3].mxu0  ;;  %627 = vmatmul.mubr.bf16.vlgmr.msra.gmra.mrb[0].mxu1 %v333_v19 }
 0x1d7   : > { %v432_v30 = vpop.f32.mrb[0].mxu1 }
 0x1d8   : > { %v446_v31 = vsel %vm445_vm2, %v432_v30, -inf  ;;  %v628_v32 = vpop.f32.mrb[1].mxu1 }
 0x1d9   : > { %448 = vst.msk [vmem:[%s214_s22] sm:$0xff] %vm447_vm3, %v446_v31  ;;  %v435_v33 = vpop.f32.mrb[2].mxu1 }
 0x1da   : > { %v629_v34 = vpop.f32.mrb[3].mxu1 }
 0x1db   : > { %701 = shalt.err (!%p698_p3)
}
 0x1dc   : > { %s702_s8 = scalar_lea.hbm %s884_s5, 128  ;;  %s706_s12 = scalar_lea.hbm %s930_s4, 256 }
 0x1dd   : > { %p703_p4 = scmp.ne.s32.totalorder %s884_s5, %s702_s8  ;;  %p707_p9 = scmp.lt.u32.totalorder %s884_s5, %s930_s4 }
 0x1de   : > { %p708_p10 = scmp.lt.u32.totalorder %s706_s12, %s702_s8  ;;  %p710_p12 = scmp.lt.u32.totalorder %s702_s8, %s884_s5 }
 0x1df   : > { %p704_p7 = pnand %p703_p4, %p819_p5 }
 0x1e0   : > { %p709_p11 = por %p708_p10, %p707_p9 }
 0x1e1   : > { %p705_p8 = pneg %p704_p7 }
 0x1e2   : > { %p711_p13 = por %p710_p12, %p709_p11 }
 0x1e4   : > { %p712_p0 = pnand %p711_p13, %p705_p8 }
 0x1e6   : > { %715 = shalt.err (!%p712_p0)
}
 0x1e7   : > { %630 = dma.vmem_to_hbm [thread:$0]  (%p819_p5), %s886_s23, 128, %s884_s5, %s450_s19  }
 0x1e8 PF: > { %p636_p1 = scmp.ge.s32.totalorder %s750_s18, 2  ;;  %s475_s20 = sand.u32 1, %s738_s15  }
 0x1e9   : > { %s476_s11 = scalar_lea.sflag [#allocation3], %s475_s20 }
 0x1ea   : > { %p633_p2 = pnand %p636_p1, %p823_p6 }
 0x1ec   : > { %733 = dma.done.wait (!%p633_p2), %s476_s11, 128  }
 0x1ed   : > { %735 = vsyncadd (!%p633_p2), %s476_s11, 4294967168  ;;  %p14_p3 = scmp.ge.s32.totalorder %s806_s21, 4   ;;  %s933_s15 = smov %s742_s16 }
 0x1ee   : > { %s934_s16 = smov %s746_s17  ;;  %s935_s17 = smov %s817_s24 }
 0x1ef   : > { %s936_s18 = smov %s806_s21  ;;  %16 = sbr.rel (!%p14_p3) target bundleno = 3 (0x3), region = 77 }
 0x1f6   :  { %481 = vsyncpa [#allocation3], 1 }
 0x1f7   :  { %483 = vsyncpa [#allocation3 + $0x1], 1 }

// kernel: word_tag_parser_forward.13
= control target key start
LH: loop header
LB: loop body
LE: loop exit
PB: predicated region body
PF: predicated region fallthrough
CT: control target
= control target key end

     0   :  { %s1588_s12 = smov 0   ;;  %s2018_s0 = inlined_call_operand.vmem [shape: bf16[16,128], index: 0, kind: input, shape index: {}]   ;;  %s2019_s1 = inlined_call_operand.vmem [shape: bf16[128,1024], index: 1, kind: input, shape index: {}]   ;;  %s2020_s2 = inlined_call_operand.vmem [shape: bf16[2,128,8], index: 2, kind: input, shape index: {}]   ;;  %s2021_s3 = inlined_call_operand.vmem [shape: f32[2,8,8,8], index: 3, kind: output, shape index: {}]  }
   0x1 LB: > { %s1213_s13 = sadd.s32 4294967295, %s1563_s12   ;;  %p1217_p0 = scmp.ge.s32.totalorder %s1563_s12, 1  ;;  %s1563_s12 = sphi %s1588_s12, %s13_s12  }
   0x2   : > { %p146_p1 = scmp.lt.s32.totalorder %s1563_s12, 3 }
   0x4   : > { %p147_p2 = pnand %p1217_p0, %p146_p1 }
   0x5   : > { %v190_v0 = vld [vmem:[%s2019_s1] sm:$0xff] (!%p147_p2)  ;;  %v1565_v6 = vmov (!%p147_p2), 0   ;;  %v191_v13 = vld [vmem:[%s2019_s1 + $0x8] sm:$0xff] (!%p147_p2)  ;;  %p174_p3 = scmp.lt.s32.totalorder (!%p147_p2), %s1213_s13, 1  ;;  %v192_v59 = vld [vmem:[%s2019_s1 + $0x10] sm:$0xff] (!%p147_p2)  ;;  %vm1567_vm0 = vmmov (!%p147_p2), 0  }
   0x6   : > { %150 = sbr.rel (%p147_p2) target bundleno = 567 (0x237), region = 32  ;;  %v194_v1 = vld [vmem:[%s2019_s1 + $0x20] sm:$0xff] (!%p147_p2)  ;;  %606 = vmatprep.mubr.bf16.mxu0 (!%p147_p2), %v1565_v6  ;;  %647 = vmatprep.mubr.bf16.mxu1 (!%p147_p2), %v1565_v6  ;;  %v195_v14 = vld [vmem:[%s2019_s1 + $0x28] sm:$0xff] (!%p147_p2)  ;;  %v196_v61 = vld [vmem:[%s2019_s1 + $0x30] sm:$0xff] (!%p147_p2)  ;;  %vm850_vm1 = vcmask (!%p147_p2), 64512  }
   0x7   : > { %v198_v2 = vld [vmem:[%s2019_s1 + $0x40] sm:$0xff] (!%p147_p2)  ;;  %v1224_v3 = vcombine.high (!%p147_p2), %v190_v0, %v194_v1  ;;  %v1223_v4 = vcombine.low (!%p147_p2), %v190_v0, %v194_v1  ;;  %v1226_v16 = vcombine.high (!%p147_p2), %v191_v13, %v195_v14  ;;  %v1225_v17 = vcombine.low (!%p147_p2), %v191_v13, %v195_v14  ;;  %v199_v18 = vld [vmem:[%s2019_s1 + $0x48] sm:$0xff] (!%p147_p2)  ;;  %v212_v13 = vld [vmem:[%s2019_s1 + $0xb0] sm:$0xff] (!%p147_p2) }
   0x8   : > { %v202_v5 = vld [vmem:[%s2019_s1 + $0x60] sm:$0xff] (!%p147_p2)  ;;  %v203_v19 = vld [vmem:[%s2019_s1 + $0x68] sm:$0xff] (!%p147_p2)  ;;  %v1228_v1 = vcombine.high (!%p147_p2), %v192_v59, %v196_v61 }
   0x9   : > { %v1232_v7 = vcombine.high (!%p147_p2), %v198_v2, %v202_v5  ;;  %v206_v8 = vld [vmem:[%s2019_s1 + $0x80] sm:$0xff] (!%p147_p2)  ;;  %574 = vmatprep.subr.bf16.mxu0 (!%p147_p2), %v1224_v3  ;;  %v1231_v10 = vcombine.low (!%p147_p2), %v198_v2, %v202_v5  ;;  %v1234_v20 = vcombine.high (!%p147_p2), %v199_v18, %v203_v19  ;;  %v207_v21 = vld [vmem:[%s2019_s1 + $0x88] sm:$0xff] (!%p147_p2)  ;;  %615 = vmatprep.subr.bf16.mxu1 (!%p147_p2), %v1226_v16  ;;  %v200_v3 = vld [vmem:[%s2019_s1 + $0x50] sm:$0xff] (!%p147_p2) }
   0xa   : > { %v210_v9 = vld [vmem:[%s2019_s1 + $0xa0] sm:$0xff] (!%p147_p2)  ;;  %575 = vmatpush1.bf16.msra.mxu0 (!%p147_p2), %v1223_v4  ;;  %v211_v22 = vld [vmem:[%s2019_s1 + $0xa8] sm:$0xff] (!%p147_p2)  ;;  %616 = vmatpush1.bf16.msra.mxu1 (!%p147_p2), %v1225_v17  ;;  %v1233_v25 = vcombine.low (!%p147_p2), %v199_v18, %v203_v19  ;;  %v204_v4 = vld [vmem:[%s2019_s1 + $0x70] sm:$0xff] (!%p147_p2) }
   0xb   : > { %576 = vmatprep.subr.bf16.mxu0 (!%p147_p2), %v1232_v7  ;;  %v1240_v11 = vcombine.high (!%p147_p2), %v206_v8, %v210_v9  ;;  %v214_v12 = vld [vmem:[%s2019_s1 + $0xc0] sm:$0xff] (!%p147_p2)  ;;  %v1239_v23 = vcombine.low (!%p147_p2), %v206_v8, %v210_v9  ;;  %617 = vmatprep.subr.bf16.mxu1 (!%p147_p2), %v1234_v20  ;;  %v1242_v28 = vcombine.high (!%p147_p2), %v207_v21, %v211_v22  ;;  %v215_v29 = vld [vmem:[%s2019_s1 + $0xc8] sm:$0xff] (!%p147_p2)  ;;  %v193_v5 = vld [vmem:[%s2019_s1 + $0x18] sm:$0xff] (!%p147_p2) }
   0xc   : > { %v218_v15 = vld [vmem:[%s2019_s1 + $0xe0] sm:$0xff] (!%p147_p2)  ;;  %v219_v30 = vld [vmem:[%s2019_s1 + $0xe8] sm:$0xff] (!%p147_p2)  ;;  %v1241_v33 = vcombine.low (!%p147_p2), %v207_v21, %v211_v22  ;;  %v197_v7 = vld [vmem:[%s2019_s1 + $0x38] sm:$0xff] (!%p147_p2)  ;;  %v1227_v9 = vcombine.low (!%p147_p2), %v192_v59, %v196_v61  ;;  %v1235_v17 = vcombine.low (!%p147_p2), %v200_v3, %v204_v4 }
   0xd   : > { %v1248_v24 = vcombine.high %v214_v12, %v218_v15  ;;  %v222_v26 = vld [vmem:[%s2019_s1 + $0x100] sm:$0xff]  ;;  %v1247_v31 = vcombine.low %v214_v12, %v218_v15  ;;  %v1250_v36 = vcombine.high %v215_v29, %v219_v30  ;;  %s2023_s13 = smov (!%p174_p3, %s1213_s13), 1  ;;  %v223_v37 = vld [vmem:[%s2019_s1 + $0x108] sm:$0xff]  ;;  %v1249_v41 = vcombine.low %v215_v29, %v219_v30  ;;  %v208_v12 = vld [vmem:[%s2019_s1 + $0x90] sm:$0xff] }
   0xe   : > { %577 = vmatpush1.bf16.msra.mxu0 %v1231_v10  ;;  %v226_v27 = vld [vmem:[%s2019_s1 + $0x120] sm:$0xff]  ;;  %618 = vmatpush1.bf16.msra.mxu1 %v1233_v25  ;;  %v227_v38 = vld [vmem:[%s2019_s1 + $0x128] sm:$0xff]  ;;  %s1304_s6 = sshll.u32 %s2023_s13, 6  ;;  %s1218_s5 = sshll.u32 %s2023_s13, 2  ;;  %v1230_v14 = vcombine.high %v193_v5, %v197_v7  ;;  %v201_v15 = vld [vmem:[%s2019_s1 + $0x58] sm:$0xff]  ;;  %v1244_v18 = vcombine.high %v208_v12, %v212_v13  ;;  %v1229_v19 = vcombine.low %v193_v5, %v197_v7 }
   0xf   : > { %578 = vmatprep.subr.bf16.mxu0 %v1240_v11  ;;  %v1256_v32 = vcombine.high %v222_v26, %v226_v27  ;;  %v230_v34 = vld [vmem:[%s2019_s1 + $0x140] sm:$0xff]  ;;  %619 = vmatprep.subr.bf16.mxu1 %v1242_v28  ;;  %v1255_v39 = vcombine.low %v222_v26, %v226_v27  ;;  %v1258_v44 = vcombine.high %v223_v37, %v227_v38  ;;  %v231_v45 = vld [vmem:[%s2019_s1 + $0x148] sm:$0xff]  ;;  %s1688_s19 = scalar_lea.vmem %s2020_s2, %s1304_s6  ;;  %s177_s15 = scalar_lea.vmem %s2018_s0, %s1218_s5  ;;  %v205_v16 = vld [vmem:[%s2019_s1 + $0x78] sm:$0xff] }
  0x10   : > { %v234_v35 = vld [vmem:[%s2019_s1 + $0x160] sm:$0xff]  ;;  %v235_v46 = vld [vmem:[%s2019_s1 + $0x168] sm:$0xff]  ;;  %v1257_v51 = vcombine.low %v223_v37, %v227_v38  ;;  %v1236_v11 = vcombine.high %v200_v3, %v204_v4  ;;  %v216_v20 = vld [vmem:[%s2019_s1 + $0xd0] sm:$0xff]  ;;  %v1238_v22 = vcombine.high %v201_v15, %v205_v16  ;;  %v1243_v25 = vcombine.low %v208_v12, %v212_v13  ;;  %s1997_s5 = scalar_lea.vmem %s2021_s3, %s1304_s6 }
  0x11   : > { %v1264_v40 = vcombine.high %v230_v34, %v234_v35  ;;  %v238_v42 = vld [vmem:[%s2019_s1 + $0x180] sm:$0xff]  ;;  %v1263_v47 = vcombine.low %v230_v34, %v234_v35  ;;  %v1266_v52 = vcombine.high %v231_v45, %v235_v46  ;;  %v239_v53 = vld [vmem:[%s2019_s1 + $0x188] sm:$0xff]  ;;  %v1265_v57 = vcombine.low %v231_v45, %v235_v46  ;;  %v220_v21 = vld [vmem:[%s2019_s1 + $0xf0] sm:$0xff] }
  0x12   : > { %579 = vmatpush1.bf16.msra.mxu0 %v1239_v23  ;;  %620 = vmatpush1.bf16.msra.mxu1 %v1241_v33  ;;  %v242_v43 = vld [vmem:[%s2019_s1 + $0x1a0] sm:$0xff]  ;;  %v243_v54 = vld [vmem:[%s2019_s1 + $0x1a8] sm:$0xff]  ;;  %v209_v23 = vld [vmem:[%s2019_s1 + $0x98] sm:$0xff]  ;;  %v1252_v26 = vcombine.high %v216_v20, %v220_v21  ;;  %v1237_v27 = vcombine.low %v201_v15, %v205_v16  ;;  %v1251_v33 = vcombine.low %v216_v20, %v220_v21  ;;  %v1566_v3 = vmov 0.0  }
  0x13   : > { %580 = vmatprep.subr.bf16.mxu0 %v1248_v24  ;;  %621 = vmatprep.subr.bf16.mxu1 %v1250_v36  ;;  %v1272_v48 = vcombine.high %v238_v42, %v242_v43  ;;  %v246_v49 = vld [vmem:[%s2019_s1 + $0x1c0] sm:$0xff]  ;;  %v1271_v55 = vcombine.low %v238_v42, %v242_v43  ;;  %v247_v58 = vld [vmem:[%s2019_s1 + $0x1c8] sm:$0xff]  ;;  %v1274_v60 = vcombine.high %v239_v53, %v243_v54  ;;  %v213_v24 = vld [vmem:[%s2019_s1 + $0xb8] sm:$0xff] }
  0x14   : > { %v250_v50 = vld [vmem:[%s2019_s1 + $0x1e0] sm:$0xff]  ;;  %v251_v62 = vld [vmem:[%s2019_s1 + $0x1e8] sm:$0xff]  ;;  %v1273_v0 = vcombine.low %v239_v53, %v243_v54  ;;  %v224_v28 = vld [vmem:[%s2019_s1 + $0x110] sm:$0xff]  ;;  %v1246_v30 = vcombine.high %v209_v23, %v213_v24  ;;  %v1245_v35 = vcombine.low %v209_v23, %v213_v24 }
  0x15   : > { %v1280_v56 = vcombine.high %v246_v49, %v250_v50  ;;  %v1279_v63 = vcombine.low %v246_v49, %v250_v50  ;;  %v1282_v2 = vcombine.high %v247_v58, %v251_v62  ;;  %v1730_v8 = vld [vmem:[%s177_s15] sm:$0xf]  ;;  %v1281_v10 = vcombine.low %v247_v58, %v251_v62  ;;  %v228_v29 = vld [vmem:[%s2019_s1 + $0x130] sm:$0xff]  ;;  %v225_v38 = vld [vmem:[%s2019_s1 + $0x118] sm:$0xff] }
  0x16   : > { %581 = vmatpush1.bf16.msra.mxu0 %v1247_v31  ;;  %622 = vmatpush1.bf16.msra.mxu1 %v1249_v41  ;;  %v217_v31 = vld [vmem:[%s2019_s1 + $0xd8] sm:$0xff]  ;;  %v1260_v34 = vcombine.high %v224_v28, %v228_v29  ;;  %v232_v36 = vld [vmem:[%s2019_s1 + $0x150] sm:$0xff]  ;;  %v1821_v4 = vld [vmem:[%s1688_s19 + $0x8] sm:$0xff]  }
  0x17   : > { %582 = vmatprep.subr.bf16.mxu0 %v1256_v32  ;;  %623 = vmatprep.subr.bf16.mxu1 %v1258_v44  ;;  %v221_v32 = vld [vmem:[%s2019_s1 + $0xf8] sm:$0xff]  ;;  %v240_v43 = vld [vmem:[%s2019_s1 + $0x190] sm:$0xff] }
  0x18   : > { %v1254_v37 = vcombine.high %v217_v31, %v221_v32  ;;  %v1253_v42 = vcombine.low %v217_v31, %v221_v32  ;;  %v244_v44 = vld [vmem:[%s2019_s1 + $0x1b0] sm:$0xff]  ;;  %v233_v46 = vld [vmem:[%s2019_s1 + $0x158] sm:$0xff] }
  0x19   : > { %v1276_v49 = vcombine.high %v240_v43, %v244_v44  ;;  %v241_v54 = vld [vmem:[%s2019_s1 + $0x198] sm:$0xff]  ;;  %v1828_v5 = vld [vmem:[%s1688_s19 + $0x10] sm:$0xff]  }
  0x1a   : > { %583 = vmatpush1.bf16.msra.mxu0 %v1255_v39  ;;  %624 = vmatpush1.bf16.msra.mxu1 %v1257_v51  ;;  %v229_v39 = vld [vmem:[%s2019_s1 + $0x138] sm:$0xff]  ;;  %v248_v51 = vld [vmem:[%s2019_s1 + $0x1d0] sm:$0xff] }
  0x1b   : > { %584 = vmatprep.subr.bf16.mxu0 %v1264_v40  ;;  %625 = vmatprep.subr.bf16.mxu1 %v1266_v52  ;;  %v1259_v40 = vcombine.low %v224_v28, %v228_v29  ;;  %v1262_v45 = vcombine.high %v225_v38, %v229_v39  ;;  %v1261_v50 = vcombine.low %v225_v38, %v229_v39  ;;  %v252_v52 = vld [vmem:[%s2019_s1 + $0x1f0] sm:$0xff]  ;;  %v253_v61 = vld [vmem:[%s2019_s1 + $0x1f8] sm:$0xff] }
  0x1c   : > { %v1283_v62 = vcombine.low %v248_v51, %v252_v52  ;;  %v1835_v7 = vld [vmem:[%s1688_s19 + $0x18] sm:$0xff]  }
  0x1e   : > { %585 = vmatpush1.bf16.msra.mxu0 %v1263_v47  ;;  %626 = vmatpush1.bf16.msra.mxu1 %v1265_v57  ;;  %v237_v47 = vld [vmem:[%s2019_s1 + $0x178] sm:$0xff]  ;;  %v1284_v57 = vcombine.high %v248_v51, %v252_v52 }
  0x1f   : > { %586 = vmatprep.subr.bf16.mxu0 %v1272_v48  ;;  %627 = vmatprep.subr.bf16.mxu1 %v1274_v60  ;;  %v1270_v53 = vcombine.high %v233_v46, %v237_v47  ;;  %v1269_v58 = vcombine.low %v233_v46, %v237_v47  ;;  %v249_v60 = vld [vmem:[%s2019_s1 + $0x1d8] sm:$0xff] }
  0x22   : > { %587 = vmatpush1.bf16.msra.mxu0 %v1271_v55  ;;  %628 = vmatpush1.bf16.msra.mxu1 %v1273_v0  ;;  %v245_v55 = vld [vmem:[%s2019_s1 + $0x1b8] sm:$0xff]  ;;  %v1286_v0 = vcombine.high %v249_v60, %v253_v61 }
  0x23   : > { %588 = vmatprep.subr.bf16.mxu0 %v1280_v56  ;;  %629 = vmatprep.subr.bf16.mxu1 %v1282_v2  ;;  %v1275_v56 = vcombine.low %v240_v43, %v244_v44  ;;  %v1278_v59 = vcombine.high %v241_v54, %v245_v55  ;;  %v1285_v2 = vcombine.low %v249_v60, %v253_v61 }
  0x26   : > { %589 = vmatpush1.bf16.msra.mxu0 %v1279_v63  ;;  %630 = vmatpush1.bf16.msra.mxu1 %v1281_v10  ;;  %v1277_v63 = vcombine.low %v241_v54, %v245_v55  ;;  %v1856_v10 = vld [vmem:[%s1688_s19 + $0x30] sm:$0xff]  }
  0x27   : > { %656 = vmatprep.subr.bf16.mxu0 %v1228_v1  ;;  %697 = vmatprep.subr.bf16.mxu1 %v1230_v14  ;;  %v1815_v1 = vld [vmem:[%s1688_s19] sm:$0xff]  }
  0x29   : > { %607 = vmatmul.mubr.bf16.vlgmr.msra.gmra.mrb[0].mxu0 %v1730_v8  ;;  %648 = vmatmul.mubr.bf16.vlgmr.msra.gmra.mrb[0].mxu1 %v1730_v8 }
  0x2a   : > { %657 = vmatpush1.bf16.msra.mxu0 %v1227_v9  ;;  %688 = vmatprep.mubr.bf16.mxu0 %v1565_v6  ;;  %v1849_v9 = vld [vmem:[%s1688_s19 + $0x28] sm:$0xff]  }
  0x2b   : > { %658 = vmatprep.subr.bf16.mxu0 %v1236_v11  ;;  %698 = vmatpush1.bf16.msra.mxu1 %v1229_v19  ;;  %v1863_v11 = vld [vmem:[%s1688_s19 + $0x38] sm:$0xff]  }
  0x2c   : > { %699 = vmatprep.subr.bf16.mxu1 %v1238_v22  ;;  %729 = vmatprep.mubr.bf16.mxu1 %v1565_v6  ;;  %v236_v6 = vld [vmem:[%s2019_s1 + $0x170] sm:$0xff] }
  0x2d   : > { %v1268_v41 = vcombine.high %v232_v36, %v236_v6  ;;  %v1267_v48 = vcombine.low %v232_v36, %v236_v6 }
  0x2e   : > { %659 = vmatpush1.bf16.msra.mxu0 %v1235_v17 }
  0x2f   : > { %660 = vmatprep.subr.bf16.mxu0 %v1244_v18  ;;  %700 = vmatpush1.bf16.msra.mxu1 %v1237_v27 }
  0x30   : > { %701 = vmatprep.subr.bf16.mxu1 %v1246_v30 }
  0x32   : > { %661 = vmatpush1.bf16.msra.mxu0 %v1243_v25 }
  0x33   : > { %662 = vmatprep.subr.bf16.mxu0 %v1252_v26  ;;  %702 = vmatpush1.bf16.msra.mxu1 %v1245_v35 }
  0x34   : > { %703 = vmatprep.subr.bf16.mxu1 %v1254_v37 }
  0x36   : > { %663 = vmatpush1.bf16.msra.mxu0 %v1251_v33 }
  0x37   : > { %664 = vmatprep.subr.bf16.mxu0 %v1260_v34  ;;  %704 = vmatpush1.bf16.msra.mxu1 %v1253_v42 }
  0x38   : > { %705 = vmatprep.subr.bf16.mxu1 %v1262_v45 }
  0x3a   : > { %665 = vmatpush1.bf16.msra.mxu0 %v1259_v40 }
  0x3b   : > { %666 = vmatprep.subr.bf16.mxu0 %v1268_v41  ;;  %706 = vmatpush1.bf16.msra.mxu1 %v1261_v50 }
  0x3c   : > { %707 = vmatprep.subr.bf16.mxu1 %v1270_v53 }
  0x3e   : > { %667 = vmatpush1.bf16.msra.mxu0 %v1267_v48 }
  0x3f   : > { %668 = vmatprep.subr.bf16.mxu0 %v1276_v49  ;;  %708 = vmatpush1.bf16.msra.mxu1 %v1269_v58 }
  0x40   : > { %709 = vmatprep.subr.bf16.mxu1 %v1278_v59 }
  0x42   : > { %669 = vmatpush1.bf16.msra.mxu0 %v1275_v56 }
  0x43   : > { %670 = vmatprep.subr.bf16.mxu0 %v1284_v57  ;;  %710 = vmatpush1.bf16.msra.mxu1 %v1277_v63 }
  0x44   : > { %711 = vmatprep.subr.bf16.mxu1 %v1286_v0 }
  0x46   : > { %671 = vmatpush1.bf16.msra.mxu0 %v1283_v62 }
  0x47   : > { %1378 = vmatprep.subr.bf16.mxu0 %v1566_v3  ;;  %712 = vmatpush1.bf16.msra.mxu1 %v1285_v2 }
  0x48   : > { %1398 = vmatprep.subr.bf16.mxu1 %v1566_v3 }
  0x49   : > { %689 = vmatmul.mubr.bf16.vlgmr.msra.gmra.mrb[4].mxu0 %v1730_v8 }
  0x4a   : > { %1379 = vmatpush3.bf16.msra.mxu0 %v1815_v1  ;;  %730 = vmatmul.mubr.bf16.vlgmr.msra.gmra.mrb[4].mxu1 %v1730_v8  ;;  %v1842_v8 = vld [vmem:[%s1688_s19 + $0x20] sm:$0xff]  }
  0x4b   : > { %1380 = vmatprep.subr.bf16.mxu0 %v1566_v3  ;;  %1399 = vmatpush3.bf16.msra.mxu1 %v1815_v1 }
  0x4c   : > { %1400 = vmatprep.subr.bf16.mxu1 %v1566_v3  ;;  %1394 = vmatprep.mubr.msk.bf16.mxu0 %vm1567_vm0, %v1566_v3 }
  0x4d   : > { %1414 = vmatprep.mubr.msk.bf16.mxu1 %vm1567_vm0, %v1566_v3 }
  0x4e   : > { %1381 = vmatpush3.bf16.msra.mxu0 %v1821_v4 }
  0x4f   : > { %1382 = vmatprep.subr.bf16.mxu0 %v1566_v3  ;;  %1401 = vmatpush3.bf16.msra.mxu1 %v1821_v4 }
  0x50   : > { %1402 = vmatprep.subr.bf16.mxu1 %v1566_v3 }
  0x52   : > { %1383 = vmatpush3.bf16.msra.mxu0 %v1828_v5 }
  0x53   : > { %1384 = vmatprep.subr.bf16.mxu0 %v1566_v3  ;;  %1403 = vmatpush3.bf16.msra.mxu1 %v1828_v5 }
  0x54   : > { %1404 = vmatprep.subr.bf16.mxu1 %v1566_v3 }
  0x56   : > { %1385 = vmatpush3.bf16.msra.mxu0 %v1835_v7 }
  0x57   : > { %1386 = vmatprep.subr.bf16.mxu0 %v1566_v3  ;;  %1405 = vmatpush3.bf16.msra.mxu1 %v1835_v7 }
  0x58   : > { %1406 = vmatprep.subr.bf16.mxu1 %v1566_v3 }
  0x5a   : > { %1387 = vmatpush3.bf16.msra.mxu0 %v1842_v8 }
  0x5b   : > { %1388 = vmatprep.subr.bf16.mxu0 %v1566_v3  ;;  %1407 = vmatpush3.bf16.msra.mxu1 %v1842_v8 }
  0x5c   : > { %1408 = vmatprep.subr.bf16.mxu1 %v1566_v3 }
  0x5e   : > { %1389 = vmatpush3.bf16.msra.mxu0 %v1849_v9 }
  0x5f   : > { %1390 = vmatprep.subr.bf16.mxu0 %v1566_v3  ;;  %1409 = vmatpush3.bf16.msra.mxu1 %v1849_v9 }
  0x60   : > { %1410 = vmatprep.subr.bf16.mxu1 %v1566_v3 }
  0x62   : > { %1391 = vmatpush3.bf16.msra.mxu0 %v1856_v10 }
  0x63   : > { %1392 = vmatprep.subr.bf16.mxu0 %v1566_v3  ;;  %1411 = vmatpush3.bf16.msra.mxu1 %v1856_v10 }
  0x64   : > { %1412 = vmatprep.subr.bf16.mxu1 %v1566_v3 }
  0x66   : > { %1393 = vmatpush3.bf16.msra.mxu0 %v1863_v11 }
  0x67   : > { %1418 = vmatprep.subr.bf16.mxu0 %v1566_v3  ;;  %1413 = vmatpush3.bf16.msra.mxu1 %v1863_v11 }
  0x68   : > { %1438 = vmatprep.subr.bf16.mxu1 %v1566_v3 }
  0xfc   : > { %v608_v12 = vpop.f32.mrb[0].mxu0  ;;  %v649_v18 = vpop.f32.mrb[0].mxu1 }
  0xfd   : > { %v738_v13 = vpack.c.bf16 %v608_v12, %v608_v12  ;;  %v610_v14 = vpop.f32.mrb[1].mxu0  ;;  %v651_v19 = vpop.f32.mrb[1].mxu1  ;;  %v740_v22 = vpack.c.bf16 %v649_v18, %v649_v18 }
  0xfe   : > { %v739_v15 = vpack.c.bf16 %v610_v14, %v610_v14  ;;  %v612_v16 = vpop.f32.mrb[2].mxu0  ;;  %v653_v20 = vpop.f32.mrb[2].mxu1  ;;  %v741_v23 = vpack.c.bf16 %v651_v19, %v651_v19 }
  0xff   : > { %v613_v17 = vpop.f32.mrb[3].mxu0  ;;  %1395 = vmatmul.mubr.bf16.vlgmr.msra.gmra.mrb[8].mxu0 %v738_v13  ;;  %v654_v21 = vpop.f32.mrb[3].mxu1 }
 0x100   : > { %1419 = vmatpush3.bf16.msra.mxu0 %v1815_v1  ;;  %1415 = vmatmul.mubr.bf16.vlgmr.msra.gmra.mrb[8].mxu1 %v739_v15 }
 0x101   : > { %1439 = vmatpush3.bf16.msra.mxu1 %v1815_v1  ;;  %1420 = vmatprep.subr.bf16.mxu0 %v1566_v3 }
 0x102   : > { %1440 = vmatprep.subr.bf16.mxu1 %v1566_v3  ;;  %1434 = vmatprep.mubr.msk.bf16.mxu0 %vm1567_vm0, %v1566_v3 }
 0x103   : > { %1454 = vmatprep.mubr.msk.bf16.mxu1 %vm1567_vm0, %v1566_v3 }
 0x104   : > { %1421 = vmatpush3.bf16.msra.mxu0 %v1821_v4 }
 0x105   : > { %1441 = vmatpush3.bf16.msra.mxu1 %v1821_v4  ;;  %1422 = vmatprep.subr.bf16.mxu0 %v1566_v3 }
 0x106   : > { %1442 = vmatprep.subr.bf16.mxu1 %v1566_v3 }
 0x108   : > { %1423 = vmatpush3.bf16.msra.mxu0 %v1828_v5 }
 0x109   : > { %1443 = vmatpush3.bf16.msra.mxu1 %v1828_v5  ;;  %1424 = vmatprep.subr.bf16.mxu0 %v1566_v3 }
 0x10a   : > { %1444 = vmatprep.subr.bf16.mxu1 %v1566_v3 }
 0x10c   : > { %1425 = vmatpush3.bf16.msra.mxu0 %v1835_v7 }
 0x10d   : > { %1445 = vmatpush3.bf16.msra.mxu1 %v1835_v7  ;;  %1426 = vmatprep.subr.bf16.mxu0 %v1566_v3 }
 0x10e   : > { %1446 = vmatprep.subr.bf16.mxu1 %v1566_v3 }
 0x110   : > { %1427 = vmatpush3.bf16.msra.mxu0 %v1842_v8 }
 0x111   : > { %1447 = vmatpush3.bf16.msra.mxu1 %v1842_v8  ;;  %1428 = vmatprep.subr.bf16.mxu0 %v1566_v3 }
 0x112   : > { %1448 = vmatprep.subr.bf16.mxu1 %v1566_v3 }
 0x114   : > { %1429 = vmatpush3.bf16.msra.mxu0 %v1849_v9 }
 0x115   : > { %1449 = vmatpush3.bf16.msra.mxu1 %v1849_v9  ;;  %1430 = vmatprep.subr.bf16.mxu0 %v1566_v3 }
 0x116   : > { %1450 = vmatprep.subr.bf16.mxu1 %v1566_v3 }
 0x118   : > { %1431 = vmatpush3.bf16.msra.mxu0 %v1856_v10 }
 0x119   : > { %1451 = vmatpush3.bf16.msra.mxu1 %v1856_v10  ;;  %1432 = vmatprep.subr.bf16.mxu0 %v1566_v3 }
 0x11a   : > { %1452 = vmatprep.subr.bf16.mxu1 %v1566_v3 }
 0x11c   : > { %1433 = vmatpush3.bf16.msra.mxu0 %v1863_v11  ;;  %v690_v24 = vpop.f32.mrb[4].mxu0 }
 0x11d   : > { %1453 = vmatpush3.bf16.msra.mxu1 %v1863_v11  ;;  %1458 = vmatprep.subr.bf16.mxu0 %v1566_v3  ;;  %v692_v25 = vpop.f32.mrb[5].mxu0  ;;  %v1917_v28 = vpop.f32.mrb[4].mxu1  ;;  %v742_v32 = vpack.c.bf16 %v690_v24, %v690_v24 }
 0x11e   : > { %1478 = vmatprep.subr.bf16.mxu1 %v1566_v3  ;;  %v694_v26 = vpop.f32.mrb[6].mxu0  ;;  %v1922_v29 = vpop.f32.mrb[5].mxu1  ;;  %v743_v33 = vpack.c.bf16 %v692_v25, %v692_v25  ;;  %v744_v34 = vpack.c.bf16 %v1917_v28, %v1917_v28 }
 0x11f   : > { %1435 = vmatmul.mubr.bf16.vlgmr.msra.gmra.mrb[12].mxu0 %v740_v22  ;;  %v695_v27 = vpop.f32.mrb[7].mxu0  ;;  %v735_v30 = vpop.f32.mrb[6].mxu1  ;;  %v745_v35 = vpack.c.bf16 %v1922_v29, %v1922_v29 }
 0x120   : > { %1455 = vmatmul.mubr.bf16.vlgmr.msra.gmra.mrb[12].mxu1 %v741_v23  ;;  %1459 = vmatpush3.bf16.msra.mxu0 %v1815_v1  ;;  %v736_v31 = vpop.f32.mrb[7].mxu1 }
 0x121   : > { %1479 = vmatpush3.bf16.msra.mxu1 %v1815_v1  ;;  %1460 = vmatprep.subr.bf16.mxu0 %v1566_v3 }
 0x122   : > { %1480 = vmatprep.subr.bf16.mxu1 %v1566_v3  ;;  %1474 = vmatprep.mubr.msk.bf16.mxu0 %vm1567_vm0, %v1566_v3 }
 0x123   : > { %1494 = vmatprep.mubr.msk.bf16.mxu1 %vm1567_vm0, %v1566_v3 }
 0x124   : > { %1461 = vmatpush3.bf16.msra.mxu0 %v1821_v4 }
 0x125   : > { %1481 = vmatpush3.bf16.msra.mxu1 %v1821_v4  ;;  %1462 = vmatprep.subr.bf16.mxu0 %v1566_v3 }
 0x126   : > { %1482 = vmatprep.subr.bf16.mxu1 %v1566_v3 }
 0x128   : > { %1463 = vmatpush3.bf16.msra.mxu0 %v1828_v5 }
 0x129   : > { %1483 = vmatpush3.bf16.msra.mxu1 %v1828_v5  ;;  %1464 = vmatprep.subr.bf16.mxu0 %v1566_v3 }
 0x12a   : > { %1484 = vmatprep.subr.bf16.mxu1 %v1566_v3 }
 0x12c   : > { %1465 = vmatpush3.bf16.msra.mxu0 %v1835_v7 }
 0x12d   : > { %1485 = vmatpush3.bf16.msra.mxu1 %v1835_v7  ;;  %1466 = vmatprep.subr.bf16.mxu0 %v1566_v3 }
 0x12e   : > { %1486 = vmatprep.subr.bf16.mxu1 %v1566_v3 }
 0x130   : > { %1467 = vmatpush3.bf16.msra.mxu0 %v1842_v8 }
 0x131   : > { %1487 = vmatpush3.bf16.msra.mxu1 %v1842_v8  ;;  %1468 = vmatprep.subr.bf16.mxu0 %v1566_v3 }
 0x132   : > { %1488 = vmatprep.subr.bf16.mxu1 %v1566_v3 }
 0x134   : > { %1469 = vmatpush3.bf16.msra.mxu0 %v1849_v9 }
 0x135   : > { %1489 = vmatpush3.bf16.msra.mxu1 %v1849_v9  ;;  %1470 = vmatprep.subr.bf16.mxu0 %v1566_v3 }
 0x136   : > { %1490 = vmatprep.subr.bf16.mxu1 %v1566_v3 }
 0x138   : > { %1471 = vmatpush3.bf16.msra.mxu0 %v1856_v10 }
 0x139   : > { %1491 = vmatpush3.bf16.msra.mxu1 %v1856_v10  ;;  %1472 = vmatprep.subr.bf16.mxu0 %v1566_v3 }
 0x13a   : > { %1492 = vmatprep.subr.bf16.mxu1 %v1566_v3 }
 0x13c   : > { %1473 = vmatpush3.bf16.msra.mxu0 %v1863_v11 }
 0x13d   : > { %1493 = vmatpush3.bf16.msra.mxu1 %v1863_v11  ;;  %1498 = vmatprep.subr.bf16.mxu0 %v1566_v3 }
 0x13e   : > { %1518 = vmatprep.subr.bf16.mxu1 %v1566_v3 }
 0x13f   : > { %1475 = vmatmul.mubr.bf16.vlgmr.msra.gmra.mrb[16].mxu0 %v742_v32 }
 0x140   : > { %1495 = vmatmul.mubr.bf16.vlgmr.msra.gmra.mrb[16].mxu1 %v743_v33  ;;  %1499 = vmatpush3.bf16.msra.mxu0 %v1815_v1 }
 0x141   : > { %1519 = vmatpush3.bf16.msra.mxu1 %v1815_v1  ;;  %1500 = vmatprep.subr.bf16.mxu0 %v1566_v3 }
 0x142   : > { %1520 = vmatprep.subr.bf16.mxu1 %v1566_v3  ;;  %1514 = vmatprep.mubr.msk.bf16.mxu0 %vm1567_vm0, %v1566_v3 }
 0x143   : > { %1534 = vmatprep.mubr.msk.bf16.mxu1 %vm1567_vm0, %v1566_v3 }
 0x144   : > { %1501 = vmatpush3.bf16.msra.mxu0 %v1821_v4 }
 0x145   : > { %1521 = vmatpush3.bf16.msra.mxu1 %v1821_v4  ;;  %1502 = vmatprep.subr.bf16.mxu0 %v1566_v3 }
 0x146   : > { %1522 = vmatprep.subr.bf16.mxu1 %v1566_v3 }
 0x148   : > { %1503 = vmatpush3.bf16.msra.mxu0 %v1828_v5 }
 0x149   : > { %1523 = vmatpush3.bf16.msra.mxu1 %v1828_v5  ;;  %1504 = vmatprep.subr.bf16.mxu0 %v1566_v3 }
 0x14a   : > { %1524 = vmatprep.subr.bf16.mxu1 %v1566_v3 }
 0x14c   : > { %1505 = vmatpush3.bf16.msra.mxu0 %v1835_v7 }
 0x14d   : > { %1525 = vmatpush3.bf16.msra.mxu1 %v1835_v7  ;;  %1506 = vmatprep.subr.bf16.mxu0 %v1566_v3 }
 0x14e   : > { %1526 = vmatprep.subr.bf16.mxu1 %v1566_v3 }
 0x150   : > { %1507 = vmatpush3.bf16.msra.mxu0 %v1842_v8 }
 0x151   : > { %1527 = vmatpush3.bf16.msra.mxu1 %v1842_v8  ;;  %1508 = vmatprep.subr.bf16.mxu0 %v1566_v3 }
 0x152   : > { %1528 = vmatprep.subr.bf16.mxu1 %v1566_v3 }
 0x154   : > { %1509 = vmatpush3.bf16.msra.mxu0 %v1849_v9 }
 0x155   : > { %1529 = vmatpush3.bf16.msra.mxu1 %v1849_v9  ;;  %1510 = vmatprep.subr.bf16.mxu0 %v1566_v3 }
 0x156   : > { %1530 = vmatprep.subr.bf16.mxu1 %v1566_v3 }
 0x158   : > { %1511 = vmatpush3.bf16.msra.mxu0 %v1856_v10 }
 0x159   : > { %1531 = vmatpush3.bf16.msra.mxu1 %v1856_v10  ;;  %1512 = vmatprep.subr.bf16.mxu0 %v1566_v3 }
 0x15a   : > { %1532 = vmatprep.subr.bf16.mxu1 %v1566_v3 }
 0x15c   : > { %1513 = vmatpush3.bf16.msra.mxu0 %v1863_v11 }
 0x15d   : > { %1533 = vmatpush3.bf16.msra.mxu1 %v1863_v11 }
 0x15f   : > { %1515 = vmatmul.mubr.bf16.vlgmr.msra.gmra.mrb[20].mxu0 %v744_v34 }
 0x160   : > { %1535 = vmatmul.mubr.bf16.vlgmr.msra.gmra.mrb[20].mxu1 %v745_v35 }
 0x1d2   : > { %v844_v36 = vpop.f32.mrb[8].mxu0 }
 0x1d3   : > { %851 = vst.msk [vmem:[%s1997_s5] sm:$0xff] %vm850_vm1, %v844_v36  ;;  %v1396_v6 = vpop.f32.mrb[9].mxu0  ;;  %v886_v37 = vpop.f32.mrb[8].mxu1 }
 0x1d4   : > { %1295 = vst.msk [vmem:[%s1997_s5 + $0x8] sm:$0xff] %vm850_vm1, %v886_v37  ;;  %v847_v38 = vpop.f32.mrb[10].mxu0  ;;  %v1416_v39 = vpop.f32.mrb[9].mxu1 }
 0x1d5   : > { %v1397_v40 = vpop.f32.mrb[11].mxu0  ;;  %v889_v41 = vpop.f32.mrb[10].mxu1 }
 0x1d6   : > { %v1417_v42 = vpop.f32.mrb[11].mxu1 }
 0x1f2   : > { %v928_v43 = vpop.f32.mrb[12].mxu0 }
 0x1f3   : > { %1296 = vst.msk [vmem:[%s1997_s5 + $0x10] sm:$0xff] %vm850_vm1, %v928_v43  ;;  %v1436_v44 = vpop.f32.mrb[13].mxu0  ;;  %v970_v45 = vpop.f32.mrb[12].mxu1 }
 0x1f4   : > { %1297 = vst.msk [vmem:[%s1997_s5 + $0x18] sm:$0xff] %vm850_vm1, %v970_v45  ;;  %v931_v46 = vpop.f32.mrb[14].mxu0  ;;  %v1456_v47 = vpop.f32.mrb[13].mxu1 }
 0x1f5   : > { %v1437_v48 = vpop.f32.mrb[15].mxu0  ;;  %v973_v49 = vpop.f32.mrb[14].mxu1 }
 0x1f6   : > { %v1457_v50 = vpop.f32.mrb[15].mxu1 }
 0x212   : > { %v1012_v51 = vpop.f32.mrb[16].mxu0 }
 0x213   : > { %1298 = vst.msk [vmem:[%s1997_s5 + $0x20] sm:$0xff] %vm850_vm1, %v1012_v51  ;;  %v1476_v52 = vpop.f32.mrb[17].mxu0  ;;  %v1054_v53 = vpop.f32.mrb[16].mxu1 }
 0x214   : > { %1299 = vst.msk [vmem:[%s1997_s5 + $0x28] sm:$0xff] %vm850_vm1, %v1054_v53  ;;  %v1015_v54 = vpop.f32.mrb[18].mxu0  ;;  %v1496_v55 = vpop.f32.mrb[17].mxu1 }
 0x215   : > { %v1477_v56 = vpop.f32.mrb[19].mxu0  ;;  %v1057_v57 = vpop.f32.mrb[18].mxu1 }
 0x216   : > { %v1497_v58 = vpop.f32.mrb[19].mxu1 }
 0x232   : > { %v1096_v59 = vpop.f32.mrb[20].mxu0 }
 0x233   : > { %1300 = vst.msk [vmem:[%s1997_s5 + $0x30] sm:$0xff] %vm850_vm1, %v1096_v59  ;;  %v1516_v60 = vpop.f32.mrb[21].mxu0  ;;  %v1138_v61 = vpop.f32.mrb[20].mxu1 }
 0x234   : > { %1301 = vst.msk [vmem:[%s1997_s5 + $0x38] sm:$0xff] %vm850_vm1, %v1138_v61  ;;  %v1099_v62 = vpop.f32.mrb[22].mxu0  ;;  %v1536_v63 = vpop.f32.mrb[21].mxu1 }
 0x235   : > { %v1517_v0 = vpop.f32.mrb[23].mxu0  ;;  %v1141_v1 = vpop.f32.mrb[22].mxu1 }
 0x236   : > { %v1537_v2 = vpop.f32.mrb[23].mxu1 }
 0x237 PF: > { %s13_s12 = sadd.s32 1, %s1563_s12  }
 0x238   : > { %p10_p4 = scmp.ge.s32.totalorder %s13_s12, 4  }
 0x23a   :  { %12 = sbr.rel (!%p10_p4) target bundleno = 1 (0x1), region = 72 }

</bundles_post_ra>
